<compile_context>
chip_gen: v7x
topology: tpu7x:2x2x1
jax: 0.10.0
libtpu: 0.0.40
codegen_flags: <defaults>
</compile_context>

<pallas_src>
import jax
import jax.numpy as jnp
from jax import lax
from jax.experimental import pallas as pl
from jax.experimental.pallas import tpu as pltpu

_VMEM_LIMIT = 32 * 1024 * 1024   # <= 48 MiB (v7x guidance), far above our footprints


def _round_up(x, m):
    return (x + m - 1) // m * m


def _choose_h_tile(n, h, w, target_rows=2048):
    """Largest divisor `th` of h with th*w <= target_rows (amortizes ~0.35us/step
    grid overhead); halve while that would leave <2 total grid steps so
    megacore / v7x's two TensorCores both get work."""
    th = 1
    for cand in range(1, h + 1):
        if h % cand == 0 and cand * w <= target_rows:
            th = cand
    while n * (h // th) < 2 and th % 2 == 0:
        th //= 2
    return th


# ----------------------------------------------------------------------------
# Fused stride-2 Conv + BN (inference) + ReLU
# ----------------------------------------------------------------------------
def conv_bn_relu_layer(x_nhwc, w_oihw, bias, gamma, beta, mean, var, pad, eps=1e-5):
    """Stride-2 Conv2d + inference-mode BatchNorm + ReLU with im2col fused in VMEM.

    Returns (y, cout): y is (N, Ho, Wo, Cp) bfloat16 with Cp = round_up(cout, 128)
    (lane-dense stores; padded lanes are exact zeros) and cout the real channels.
    InitialLayer only uses stride 2, which is what the parity folding assumes.
    """
    n, h, w, cin = x_nhwc.shape
    cout, _, kh, kw = w_oihw.shape
    ho = (h + 2 * pad - kh) // 2 + 1
    wo = (w + 2 * pad - kw) // 2 + 1
    qh, qw = (kh + 1) // 2, (kw + 1) // 2

    # Activation: zero-pad, then fold the stride-2 H/W parity into channels.
    # One small XLA pass over the activation; replaces the old 49x/9x HBM im2col.
    hraw, wraw = 2 * (ho + qh - 1), 2 * (wo + qw - 1)
    x = x_nhwc.astype(jnp.bfloat16)
    x = jnp.pad(x, ((0, 0), (pad, hraw - pad - h), (pad, wraw - pad - w), (0, 0)))
    hh, wh = hraw // 2, wraw // 2
    xf = (x.reshape(n, hh, 2, wh, 2, cin)
           .transpose(0, 1, 3, 2, 4, 5)
           .reshape(n, hh, wh, 4 * cin))        # last dim = (ph, pw, cin)

    # Weights: regroup taps (ki, kj) -> (dqi, dqj, ph, pw, cin) to match the folded
    # activation layout, fold the BN scale in, pad K and Cout to multiples of 128.
    scale = gamma / jnp.sqrt(var + eps)
    shift = (bias - mean) * scale + beta
    wt = jnp.transpose(w_oihw, (2, 3, 1, 0)).astype(jnp.float32)   # (kh, kw, cin, cout)
    w_big = jnp.zeros((qh, qw, 2, 2, cin, cout), jnp.float32)      # phantom taps stay 0
    for ki in range(kh):
        for kj in range(kw):
            w_big = w_big.at[ki // 2, kj // 2, ki % 2, kj % 2].set(wt[ki, kj])
    k = qh * qw * 4 * cin
    kp = _round_up(k, 128)
    cp = _round_up(cout, 128)
    w_mat = w_big.reshape(k, cout) * scale[None, :]
    w_mat = jnp.pad(w_mat, ((0, kp - k), (0, cp - cout))).astype(jnp.bfloat16)
    shift = jnp.pad(shift, (0, cp - cout)).reshape(1, cp).astype(jnp.float32)

    th = _choose_h_tile(n, ho, wo)          # th | ho, th*wo <= ~2048 rows per step
    nt = ho // th

    def kernel(x_ref, w_ref, s_ref, o_ref):
        # x_ref: (1, hh, wh, 4*cin) whole folded image, resident across h-tiles.
        # o_ref: (1, th, wo, cp) bf16.
        row0 = pl.program_id(1) * th
        taps = []
        for dqi in range(qh):
            for dqj in range(qw):
                taps.append(x_ref[0, pl.ds(row0 + dqi, th), dqj:dqj + wo, :])
        if kp > k:
            taps.append(jnp.zeros((th, wo, kp - k), jnp.bfloat16))
        patches = jnp.concatenate(taps, axis=-1)                 # (th, wo, kp) in VMEM
        acc = jnp.dot(patches.reshape(th * wo, kp), w_ref[...],
                      preferred_element_type=jnp.float32)
        y = jnp.maximum(acc + s_ref[...], 0.0)
        o_ref[0] = y.reshape(th, wo, cp).astype(o_ref.dtype)

    bytes_accessed = (n * hh * wh * 4 * cin * 2 + kp * cp * 2 + cp * 4
                      + n * ho * wo * cp * 2)
    out = pl.pallas_call(
        kernel,
        out_shape=jax.ShapeDtypeStruct((n, ho, wo, cp), jnp.bfloat16),
        grid=(n, nt),
        in_specs=[
            pl.BlockSpec((1, hh, wh, 4 * cin), lambda i, t: (i, 0, 0, 0)),
            pl.BlockSpec((kp, cp), lambda i, t: (0, 0)),
            pl.BlockSpec((1, cp), lambda i, t: (0, 0)),
        ],
        out_specs=pl.BlockSpec((1, th, wo, cp), lambda i, t: (i, t, 0, 0)),
        compiler_params=pltpu.CompilerParams(
            dimension_semantics=("parallel", "parallel"),
            vmem_limit_bytes=_VMEM_LIMIT),
        cost_estimate=pl.CostEstimate(
            flops=2 * n * ho * wo * kp * cp,
            transcendentals=0,
            bytes_accessed=bytes_accessed),
    )(xf, w_mat, shift)
    return out, cout


# ----------------------------------------------------------------------------
# MaxPool2d(3, 2, 1) -- vectorized over H, H-tiled output, real channels only
# ----------------------------------------------------------------------------
def maxpool3x3s2_pallas(y, cout):
    """MaxPool2d(3, 2, 1) over the channel-padded, post-ReLU conv output.

    Input MUST be >= 0 (post-ReLU): zero padding (top row / left col / bottom &
    right even-ization / padded lanes) is only then equivalent to PyTorch's -inf
    padding.  Output carries only the real `cout` channels (Cp zero lanes dropped).
    """
    n, ho, wo, cp = y.shape
    hp = (ho - 1) // 2 + 1
    wp = (wo - 1) // 2 + 1
    y = jnp.pad(y, ((0, 0), (0, 2 * hp - ho), (0, 2 * wp - wo), (0, 0)))
    yv = y.reshape(n, 2 * hp, wp, 2 * cp)        # fold W parity into lanes (free)
    tp = _choose_h_tile(n, hp, wp, target_rows=4096)   # tp | hp
    nt = hp // tp

    # TODO(synk): for very large images on v7x, halo-tile the *input* as well
    # (manual DMA of a (2*tp+1)-row slab) instead of keeping the whole folded image
    # resident in VMEM across the h-tiles.
    def kernel(x_ref, o_ref):
        r0 = pl.program_id(1) * 2 * tp

        def wmax3(rows):
            # rows: (r, wp, 2*cp) -> (r, wp, cout): max over w in {2q, 2q+1, 2q-1}.
            ev = rows[:, :, :cout]                       # w = 2q
            od = rows[:, :, cp:cp + cout]                # w = 2q + 1
            od_l = jnp.concatenate(                      # w = 2q - 1 (zero pad OK, x>=0)
                [jnp.zeros_like(od[:, :1, :]), od[:, :-1, :]], axis=1)
            return jnp.maximum(jnp.maximum(ev, od), od_l)

        wm = wmax3(x_ref[0, pl.ds(r0, 2 * tp)])          # (2*tp, wp, cout)
        wm = wm.reshape(tp, 2, wp, cout)                 # split H parity (free reshape)
        ev_h, od_h = wm[:, 0], wm[:, 1]                  # rows 2p and 2p+1
        prev = wmax3(x_ref[0, pl.ds(jnp.maximum(r0 - 1, 0), 1)])   # row r0 - 1
        prev = jnp.where(r0 > 0, prev, jnp.zeros_like(prev))       # top pad row
        od_up = jnp.concatenate([prev, od_h[:-1]], axis=0)         # rows 2p - 1
        o_ref[0] = jnp.maximum(jnp.maximum(ev_h, od_h), od_up).astype(o_ref.dtype)

    bytes_accessed = n * 2 * hp * wp * 2 * cp * 2 + n * hp * wp * cout * 2
    return pl.pallas_call(
        kernel,
        out_shape=jax.ShapeDtypeStruct((n, hp, wp, cout), jnp.bfloat16),
        grid=(n, nt),
        in_specs=[pl.BlockSpec((1, 2 * hp, wp, 2 * cp), lambda i, t: (i, 0, 0, 0))],
        out_specs=pl.BlockSpec((1, tp, wp, cout), lambda i, t: (i, t, 0, 0)),
        compiler_params=pltpu.CompilerParams(
            dimension_semantics=("parallel", "parallel"),
            vmem_limit_bytes=_VMEM_LIMIT),
        cost_estimate=pl.CostEstimate(
            flops=8 * n * hp * wp * cout,
            transcendentals=0,
            bytes_accessed=bytes_accessed),
    )(yv)


# ----------------------------------------------------------------------------
# InitialLayer: parameter init + forward
# ----------------------------------------------------------------------------
def init_initial_layer_params(key, in_c, out_c, gr_factor, n_scales=3):
    params = []
    ks = iter(jax.random.split(key, 8 * n_scales))

    def bn_params(k, c):
        k1, k2, k3, k4 = jax.random.split(k, 4)
        return dict(
            gamma=jax.random.normal(k1, (c,)) * 0.1 + 1.0,
            beta=jax.random.normal(k2, (c,)) * 0.1,
            mean=jax.random.normal(k3, (c,)) * 0.1,
            var=jax.random.uniform(k4, (c,), minval=0.5, maxval=1.5),
        )

    # layer 0: Conv2d(in_c, out_c, 7, 2, 3) + BN + ReLU + MaxPool(3, 2, 1)
    params.append(dict(
        w=jax.random.normal(next(ks), (out_c, in_c, 7, 7)) * 0.1,
        b=jax.random.normal(next(ks), (out_c,)) * 0.1,
        bn=bn_params(next(ks), out_c),
    ))
    prev = out_c
    # layers 1..n_scales-1: Conv2d(prev, out_c*gr_factor[i], 3, 2, 1, bias=False)+BN+ReLU
    for i in range(1, n_scales):
        oc = out_c * gr_factor[i]
        params.append(dict(
            w=jax.random.normal(next(ks), (oc, prev, 3, 3)) * 0.1,
            b=jnp.zeros((oc,)),
            bn=bn_params(next(ks), oc),
        ))
        prev = oc
    return params


def initial_layer_forward(x_nchw, params):
    """Returns list of NCHW feature maps, reversed (coarsest scale first)."""
    x = jnp.transpose(x_nchw, (0, 2, 3, 1))                       # NCHW -> NHWC
    ret = []
    # scale 0: conv7x7/s2 + BN + ReLU + maxpool3x3/s2
    p0 = params[0]
    y, c = conv_bn_relu_layer(x, p0["w"], p0["b"], p0["bn"]["gamma"], p0["bn"]["beta"],
                              p0["bn"]["mean"], p0["bn"]["var"], pad=3)
    x = maxpool3x3s2_pallas(y, c)                                  # bf16, real channels
    ret.append(x)
    # scales 1..n-1: conv3x3/s2 + BN + ReLU
    for pi in params[1:]:
        y, c = conv_bn_relu_layer(x, pi["w"], pi["b"], pi["bn"]["gamma"],
                                  pi["bn"]["beta"], pi["bn"]["mean"], pi["bn"]["var"],
                                  pad=1)
        x = y[..., :c]            # drop zero lanes; fused by XLA into the consumers
        ret.append(x)
    # back to NCHW (f32), reversed like the PyTorch module
    return [jnp.transpose(t, (0, 3, 1, 2)).astype(jnp.float32) for t in ret[::-1]]


# ----------------------------------------------------------------------------
# Pure-JAX (XLA) reference for correctness checking
# ----------------------------------------------------------------------------
def reference_forward(x_nchw, params, eps=1e-5):
    def conv(x, w, b, stride, pad):
        y = lax.conv_general_dilated(
            x, w, (stride, stride), [(pad, pad), (pad, pad)],
            dimension_numbers=("NCHW", "OIHW", "NCHW"))
        return y + b[None, :, None, None]

    def bn_relu(x, bn):
        s = bn["gamma"] / jnp.sqrt(bn["var"] + eps)
        sh = bn["beta"] - bn["mean"] * s
        return jnp.maximum(x * s[None, :, None, None] + sh[None, :, None, None], 0.0)

    def maxpool(x):
        return lax.reduce_window(
            x, -jnp.inf, lax.max, (1, 1, 3, 3), (1, 1, 2, 2),
            [(0, 0), (0, 0), (1, 1), (1, 1)])

    x = x_nchw.astype(jnp.float32)
    ret = []
    p0 = params[0]
    x = maxpool(bn_relu(conv(x, p0["w"], p0["b"], 2, 3), p0["bn"]))
    ret.append(x)
    for pi in params[1:]:
        x = bn_relu(conv(x, pi["w"], pi["b"], 2, 1), pi["bn"])
        ret.append(x)
    return ret[::-1]


if __name__ == "__main__":
    key = jax.random.PRNGKey(0)
    k_x, k_p = jax.random.split(key)

    # small shapes: batch=2, in_c=3, spatial=32, out_c=8, gr_factor=[1, 2, 4]
    in_c, out_c, gr_factor, n_scales = 3, 8, [1, 2, 4], 3
    x = jax.random.normal(k_x, (2, in_c, 32, 32), dtype=jnp.float32)
    params = init_initial_layer_params(k_p, in_c, out_c, gr_factor, n_scales)

    fwd = jax.jit(initial_layer_forward)
    outs = jax.block_until_ready(fwd(x, params))

    refs = reference_forward(x, params)
    assert len(outs) == len(refs)
    for o, r in zip(outs, refs):
        assert o.shape == r.shape, (o.shape, r.shape)
        # bf16 MXU inputs + bf16 intermediates (f32 accumulation) -> loose tolerance
        # vs the f32 XLA reference.
        err = float(jnp.max(jnp.abs(o - r)))
        tol = 6e-2 * (1.0 + float(jnp.max(jnp.abs(r))))
        assert err < tol, (err, tol)

    print("KERNEL_OK")
</pallas_src>

<mosaic_0001>
module attributes {stable_mosaic.version = 11 : i64} {
  func.func @kernel(%arg0: i32, %arg1: i32, %arg2: memref<1x16x8x256xbf16, #tpu.memory_space<vmem>>, %arg3: memref<1x8x8x8xbf16, #tpu.memory_space<vmem>>) attributes {dimension_semantics = [#tpu.dimension_semantics<parallel>, #tpu.dimension_semantics<parallel>], iteration_bounds = array<i64: 2, 1>, scalar_prefetch = 0 : i64, scratch_operands = 0 : i64, tpu.core_type = #tpu.core_type<tc>, window_params = [{transform_indices = @transform_0, window_bounds = array<i64: 1, 16, 8, 256>}, {transform_indices = @transform_1, window_bounds = array<i64: 1, 8, 8, 8>}]} {
    %c2_i32 = arith.constant 2 : i32
    %0 = arith.muli %arg1, %c2_i32 : i32
    %c8_i32 = arith.constant 8 : i32
    %1 = arith.muli %0, %c8_i32 : i32
    %c0 = arith.constant 0 : index
    %2 = arith.index_cast %1 : i32 to index
    %c0_0 = arith.constant 0 : index
    %c0_1 = arith.constant 0 : index
    %3 = vector.load %arg2[%c0, %2, %c0_0, %c0_1] : memref<1x16x8x256xbf16, #tpu.memory_space<vmem>>, vector<1x16x8x256xbf16>
    %4 = vector.shape_cast %3 : vector<1x16x8x256xbf16> to vector<16x8x256xbf16>
    %5 = vector.extract_strided_slice %4 {offsets = [0, 0, 0], sizes = [16, 8, 8], strides = [1, 1, 1]} : vector<16x8x256xbf16> to vector<16x8x8xbf16>
    %6 = vector.extract_strided_slice %4 {offsets = [0, 0, 128], sizes = [16, 8, 8], strides = [1, 1, 1]} : vector<16x8x256xbf16> to vector<16x8x8xbf16>
    %cst = arith.constant 0.000000e+00 : bf16
    %7 = vector.broadcast %cst : bf16 to vector<16x1x8xbf16>
    %8 = vector.extract_strided_slice %6 {offsets = [0, 0, 0], sizes = [16, 7, 8], strides = [1, 1, 1]} : vector<16x8x8xbf16> to vector<16x7x8xbf16>
    %9 = tpu.concatenate %7, %8 in 1 : vector<16x1x8xbf16>, vector<16x7x8xbf16> -> vector<16x8x8xbf16>
    %10 = arith.maximumf %5, %6 : vector<16x8x8xbf16>
    %11 = arith.maximumf %10, %9 : vector<16x8x8xbf16>
    %12 = vector.shape_cast %11 : vector<16x8x8xbf16> to vector<8x2x8x8xbf16>
    %13 = vector.extract_strided_slice %12 {offsets = [0, 0, 0, 0], sizes = [8, 1, 8, 8], strides = [1, 1, 1, 1]} : vector<8x2x8x8xbf16> to vector<8x1x8x8xbf16>
    %14 = vector.shape_cast %13 : vector<8x1x8x8xbf16> to vector<8x8x8xbf16>
    %15 = vector.extract_strided_slice %12 {offsets = [0, 1, 0, 0], sizes = [8, 1, 8, 8], strides = [1, 1, 1, 1]} : vector<8x2x8x8xbf16> to vector<8x1x8x8xbf16>
    %16 = vector.shape_cast %15 : vector<8x1x8x8xbf16> to vector<8x8x8xbf16>
    %c1_i32 = arith.constant 1 : i32
    %17 = arith.subi %1, %c1_i32 : i32
    %c0_i32 = arith.constant 0 : i32
    %18 = arith.maxsi %17, %c0_i32 : i32
    %c0_2 = arith.constant 0 : index
    %19 = arith.index_cast %18 : i32 to index
    %c0_3 = arith.constant 0 : index
    %c0_4 = arith.constant 0 : index
    %20 = vector.load %arg2[%c0_2, %19, %c0_3, %c0_4] : memref<1x16x8x256xbf16, #tpu.memory_space<vmem>>, vector<1x1x8x256xbf16>
    %21 = vector.shape_cast %20 : vector<1x1x8x256xbf16> to vector<1x8x256xbf16>
    %22 = vector.extract_strided_slice %21 {offsets = [0, 0, 0], sizes = [1, 8, 8], strides = [1, 1, 1]} : vector<1x8x256xbf16> to vector<1x8x8xbf16>
    %23 = vector.extract_strided_slice %21 {offsets = [0, 0, 128], sizes = [1, 8, 8], strides = [1, 1, 1]} : vector<1x8x256xbf16> to vector<1x8x8xbf16>
    %cst_5 = arith.constant 0.000000e+00 : bf16
    %24 = vector.broadcast %cst_5 : bf16 to vector<1x1x8xbf16>
    %25 = vector.extract_strided_slice %23 {offsets = [0, 0, 0], sizes = [1, 7, 8], strides = [1, 1, 1]} : vector<1x8x8xbf16> to vector<1x7x8xbf16>
    %26 = tpu.concatenate %24, %25 in 1 : vector<1x1x8xbf16>, vector<1x7x8xbf16> -> vector<1x8x8xbf16>
    %27 = arith.maximumf %22, %23 : vector<1x8x8xbf16>
    %28 = arith.maximumf %27, %26 : vector<1x8x8xbf16>
    %c0_i32_6 = arith.constant 0 : i32
    %29 = arith.cmpi sgt, %1, %c0_i32_6 : i32
    %cst_7 = arith.constant 0.000000e+00 : bf16
    %30 = vector.broadcast %cst_7 : bf16 to vector<1x8x8xbf16>
    %31 = arith.select %29, %28, %30 : vector<1x8x8xbf16>
    %32 = vector.extract_strided_slice %16 {offsets = [0, 0, 0], sizes = [7, 8, 8], strides = [1, 1, 1]} : vector<8x8x8xbf16> to vector<7x8x8xbf16>
    %33 = tpu.concatenate %31, %32 in 0 : vector<1x8x8xbf16>, vector<7x8x8xbf16> -> vector<8x8x8xbf16>
    %34 = arith.maximumf %14, %16 : vector<8x8x8xbf16>
    %35 = arith.maximumf %34, %33 : vector<8x8x8xbf16>
    %c0_8 = arith.constant 0 : index
    %c0_9 = arith.constant 0 : index
    %c0_10 = arith.constant 0 : index
    %c0_11 = arith.constant 0 : index
    %36 = vector.load %arg3[%c0_8, %c0_9, %c0_10, %c0_11] : memref<1x8x8x8xbf16, #tpu.memory_space<vmem>>, vector<1x8x8x8xbf16>
    %37 = vector.shape_cast %36 : vector<1x8x8x8xbf16> to vector<8x8x8xbf16>
    %38 = vector.shape_cast %35 : vector<8x8x8xbf16> to vector<1x8x8x8xbf16>
    tpu.vector_store %arg3[%c0_8, %c0_9, %c0_10, %c0_11], %38 {strides = array<i32>} : memref<1x8x8x8xbf16, #tpu.memory_space<vmem>>, vector<1x8x8x8xbf16>,
    return
  }
  func.func @transform_0(%arg0: i32, %arg1: i32) -> (i32, i32, i32, i32) {
    %c0_i32 = arith.constant 0 : i32
    %c0_i32_0 = arith.constant 0 : i32
    %c0_i32_1 = arith.constant 0 : i32
    %c0_i32_2 = arith.constant 0 : i32
    return %arg0, %c0_i32, %c0_i32_0, %c0_i32_1 : i32, i32, i32, i32
  }
  func.func @transform_1(%arg0: i32, %arg1: i32) -> (i32, i32, i32, i32) {
    %c0_i32 = arith.constant 0 : i32
    %c0_i32_0 = arith.constant 0 : i32
    %c0_i32_1 = arith.constant 0 : i32
    return %arg0, %arg1, %c0_i32, %c0_i32_0 : i32, i32, i32, i32
  }
}

module attributes {stable_mosaic.version = 11 : i64} {
  func.func @kernel(%arg0: i32, %arg1: i32, %arg2: memref<1x19x19x12xbf16, #tpu.memory_space<vmem>>, %arg3: memref<256x128xbf16, #tpu.memory_space<vmem>>, %arg4: memref<1x128xf32, #tpu.memory_space<vmem>>, %arg5: memref<1x16x16x128xbf16, #tpu.memory_space<vmem>>) attributes {dimension_semantics = [#tpu.dimension_semantics<parallel>, #tpu.dimension_semantics<parallel>], iteration_bounds = array<i64: 2, 1>, scalar_prefetch = 0 : i64, scratch_operands = 0 : i64, tpu.core_type = #tpu.core_type<tc>, window_params = [{transform_indices = @transform_0, window_bounds = array<i64: 1, 19, 19, 12>}, {pipeline_mode = #tpu.pipeline_mode<synchronous>, transform_indices = @transform_1, window_bounds = array<i64: 256, 128>}, {pipeline_mode = #tpu.pipeline_mode<synchronous>, transform_indices = @transform_2, window_bounds = array<i64: 1, 128>}, {transform_indices = @transform_3, window_bounds = array<i64: 1, 16, 16, 128>}]} {
    %c16_i32 = arith.constant 16 : i32
    %0 = arith.muli %arg1, %c16_i32 : i32
    %c0_i32 = arith.constant 0 : i32
    %1 = arith.addi %0, %c0_i32 : i32
    %c0 = arith.constant 0 : index
    %2 = arith.index_cast %1 : i32 to index
    %c0_0 = arith.constant 0 : index
    %c0_1 = arith.constant 0 : index
    %3 = vector.load %arg2[%c0, %2, %c0_0, %c0_1] : memref<1x19x19x12xbf16, #tpu.memory_space<vmem>>, vector<1x16x16x12xbf16>
    %4 = vector.shape_cast %3 : vector<1x16x16x12xbf16> to vector<16x16x12xbf16>
    %c0_i32_2 = arith.constant 0 : i32
    %5 = arith.addi %0, %c0_i32_2 : i32
    %c0_3 = arith.constant 0 : index
    %6 = arith.index_cast %5 : i32 to index
    %c1 = arith.constant 1 : index
    %c0_4 = arith.constant 0 : index
    %7 = vector.load %arg2[%c0_3, %6, %c1, %c0_4] : memref<1x19x19x12xbf16, #tpu.memory_space<vmem>>, vector<1x16x16x12xbf16>
    %8 = vector.shape_cast %7 : vector<1x16x16x12xbf16> to vector<16x16x12xbf16>
    %c0_i32_5 = arith.constant 0 : i32
    %9 = arith.addi %0, %c0_i32_5 : i32
    %c0_6 = arith.constant 0 : index
    %10 = arith.index_cast %9 : i32 to index
    %c2 = arith.constant 2 : index
    %c0_7 = arith.constant 0 : index
    %11 = vector.load %arg2[%c0_6, %10, %c2, %c0_7] : memref<1x19x19x12xbf16, #tpu.memory_space<vmem>>, vector<1x16x16x12xbf16>
    %12 = vector.shape_cast %11 : vector<1x16x16x12xbf16> to vector<16x16x12xbf16>
    %c0_i32_8 = arith.constant 0 : i32
    %13 = arith.addi %0, %c0_i32_8 : i32
    %c0_9 = arith.constant 0 : index
    %14 = arith.index_cast %13 : i32 to index
    %c3 = arith.constant 3 : index
    %c0_10 = arith.constant 0 : index
    %15 = vector.load %arg2[%c0_9, %14, %c3, %c0_10] : memref<1x19x19x12xbf16, #tpu.memory_space<vmem>>, vector<1x16x16x12xbf16>
    %16 = vector.shape_cast %15 : vector<1x16x16x12xbf16> to vector<16x16x12xbf16>
    %c1_i32 = arith.constant 1 : i32
    %17 = arith.addi %0, %c1_i32 : i32
    %c0_11 = arith.constant 0 : index
    %18 = arith.index_cast %17 : i32 to index
    %c0_12 = arith.constant 0 : index
    %c0_13 = arith.constant 0 : index
    %19 = vector.load %arg2[%c0_11, %18, %c0_12, %c0_13] : memref<1x19x19x12xbf16, #tpu.memory_space<vmem>>, vector<1x16x16x12xbf16>
    %20 = vector.shape_cast %19 : vector<1x16x16x12xbf16> to vector<16x16x12xbf16>
    %c1_i32_14 = arith.constant 1 : i32
    %21 = arith.addi %0, %c1_i32_14 : i32
    %c0_15 = arith.constant 0 : index
    %22 = arith.index_cast %21 : i32 to index
    %c1_16 = arith.constant 1 : index
    %c0_17 = arith.constant 0 : index
    %23 = vector.load %arg2[%c0_15, %22, %c1_16, %c0_17] : memref<1x19x19x12xbf16, #tpu.memory_space<vmem>>, vector<1x16x16x12xbf16>
    %24 = vector.shape_cast %23 : vector<1x16x16x12xbf16> to vector<16x16x12xbf16>
    %c1_i32_18 = arith.constant 1 : i32
    %25 = arith.addi %0, %c1_i32_18 : i32
    %c0_19 = arith.constant 0 : index
    %26 = arith.index_cast %25 : i32 to index
    %c2_20 = arith.constant 2 : index
    %c0_21 = arith.constant 0 : index
    %27 = vector.load %arg2[%c0_19, %26, %c2_20, %c0_21] : memref<1x19x19x12xbf16, #tpu.memory_space<vmem>>, vector<1x16x16x12xbf16>
    %28 = vector.shape_cast %27 : vector<1x16x16x12xbf16> to vector<16x16x12xbf16>
    %c1_i32_22 = arith.constant 1 : i32
    %29 = arith.addi %0, %c1_i32_22 : i32
    %c0_23 = arith.constant 0 : index
    %30 = arith.index_cast %29 : i32 to index
    %c3_24 = arith.constant 3 : index
    %c0_25 = arith.constant 0 : index
    %31 = vector.load %arg2[%c0_23, %30, %c3_24, %c0_25] : memref<1x19x19x12xbf16, #tpu.memory_space<vmem>>, vector<1x16x16x12xbf16>
    %32 = vector.shape_cast %31 : vector<1x16x16x12xbf16> to vector<16x16x12xbf16>
    %c2_i32 = arith.constant 2 : i32
    %33 = arith.addi %0, %c2_i32 : i32
    %c0_26 = arith.constant 0 : index
    %34 = arith.index_cast %33 : i32 to index
    %c0_27 = arith.constant 0 : index
    %c0_28 = arith.constant 0 : index
    %35 = vector.load %arg2[%c0_26, %34, %c0_27, %c0_28] : memref<1x19x19x12xbf16, #tpu.memory_space<vmem>>, vector<1x16x16x12xbf16>
    %36 = vector.shape_cast %35 : vector<1x16x16x12xbf16> to vector<16x16x12xbf16>
    %c2_i32_29 = arith.constant 2 : i32
    %37 = arith.addi %0, %c2_i32_29 : i32
    %c0_30 = arith.constant 0 : index
    %38 = arith.index_cast %37 : i32 to index
    %c1_31 = arith.constant 1 : index
    %c0_32 = arith.constant 0 : index
    %39 = vector.load %arg2[%c0_30, %38, %c1_31, %c0_32] : memref<1x19x19x12xbf16, #tpu.memory_space<vmem>>, vector<1x16x16x12xbf16>
    %40 = vector.shape_cast %39 : vector<1x16x16x12xbf16> to vector<16x16x12xbf16>
    %c2_i32_33 = arith.constant 2 : i32
    %41 = arith.addi %0, %c2_i32_33 : i32
    %c0_34 = arith.constant 0 : index
    %42 = arith.index_cast %41 : i32 to index
    %c2_35 = arith.constant 2 : index
    %c0_36 = arith.constant 0 : index
    %43 = vector.load %arg2[%c0_34, %42, %c2_35, %c0_36] : memref<1x19x19x12xbf16, #tpu.memory_space<vmem>>, vector<1x16x16x12xbf16>
    %44 = vector.shape_cast %43 : vector<1x16x16x12xbf16> to vector<16x16x12xbf16>
    %c2_i32_37 = arith.constant 2 : i32
    %45 = arith.addi %0, %c2_i32_37 : i32
    %c0_38 = arith.constant 0 : index
    %46 = arith.index_cast %45 : i32 to index
    %c3_39 = arith.constant 3 : index
    %c0_40 = arith.constant 0 : index
    %47 = vector.load %arg2[%c0_38, %46, %c3_39, %c0_40] : memref<1x19x19x12xbf16, #tpu.memory_space<vmem>>, vector<1x16x16x12xbf16>
    %48 = vector.shape_cast %47 : vector<1x16x16x12xbf16> to vector<16x16x12xbf16>
    %c3_i32 = arith.constant 3 : i32
    %49 = arith.addi %0, %c3_i32 : i32
    %c0_41 = arith.constant 0 : index
    %50 = arith.index_cast %49 : i32 to index
    %c0_42 = arith.constant 0 : index
    %c0_43 = arith.constant 0 : index
    %51 = vector.load %arg2[%c0_41, %50, %c0_42, %c0_43] : memref<1x19x19x12xbf16, #tpu.memory_space<vmem>>, vector<1x16x16x12xbf16>
    %52 = vector.shape_cast %51 : vector<1x16x16x12xbf16> to vector<16x16x12xbf16>
    %c3_i32_44 = arith.constant 3 : i32
    %53 = arith.addi %0, %c3_i32_44 : i32
    %c0_45 = arith.constant 0 : index
    %54 = arith.index_cast %53 : i32 to index
    %c1_46 = arith.constant 1 : index
    %c0_47 = arith.constant 0 : index
    %55 = vector.load %arg2[%c0_45, %54, %c1_46, %c0_47] : memref<1x19x19x12xbf16, #tpu.memory_space<vmem>>, vector<1x16x16x12xbf16>
    %56 = vector.shape_cast %55 : vector<1x16x16x12xbf16> to vector<16x16x12xbf16>
    %c3_i32_48 = arith.constant 3 : i32
    %57 = arith.addi %0, %c3_i32_48 : i32
    %c0_49 = arith.constant 0 : index
    %58 = arith.index_cast %57 : i32 to index
    %c2_50 = arith.constant 2 : index
    %c0_51 = arith.constant 0 : index
    %59 = vector.load %arg2[%c0_49, %58, %c2_50, %c0_51] : memref<1x19x19x12xbf16, #tpu.memory_space<vmem>>, vector<1x16x16x12xbf16>
    %60 = vector.shape_cast %59 : vector<1x16x16x12xbf16> to vector<16x16x12xbf16>
    %c3_i32_52 = arith.constant 3 : i32
    %61 = arith.addi %0, %c3_i32_52 : i32
    %c0_53 = arith.constant 0 : index
    %62 = arith.index_cast %61 : i32 to index
    %c3_54 = arith.constant 3 : index
    %c0_55 = arith.constant 0 : index
    %63 = vector.load %arg2[%c0_53, %62, %c3_54, %c0_55] : memref<1x19x19x12xbf16, #tpu.memory_space<vmem>>, vector<1x16x16x12xbf16>
    %64 = vector.shape_cast %63 : vector<1x16x16x12xbf16> to vector<16x16x12xbf16>
    %cst = arith.constant 0.000000e+00 : bf16
    %65 = vector.broadcast %cst : bf16 to vector<16x16x64xbf16>
    %66 = tpu.concatenate %4, %8, %12, %16, %20, %24, %28, %32, %36, %40, %44, %48, %52, %56, %60, %64 in 2 : vector<16x16x12xbf16>, vector<16x16x12xbf16>, vector<16x16x12xbf16>, vector<16x16x12xbf16>, vector<16x16x12xbf16>, vector<16x16x12xbf16>, vector<16x16x12xbf16>, vector<16x16x12xbf16>, vector<16x16x12xbf16>, vector<16x16x12xbf16>, vector<16x16x12xbf16>, vector<16x16x12xbf16>, vector<16x16x12xbf16>, vector<16x16x12xbf16>, vector<16x16x12xbf16>, vector<16x16x12xbf16> -> vector<16x16x192xbf16>
    %67 = tpu.concatenate %66, %65 in 2 : vector<16x16x192xbf16>, vector<16x16x64xbf16> -> vector<16x16x256xbf16>
    %68 = vector.shape_cast %67 : vector<16x16x256xbf16> to vector<256x256xbf16>
    %c0_56 = arith.constant 0 : index
    %c0_57 = arith.constant 0 : index
    %69 = vector.load %arg3[%c0_56, %c0_57] : memref<256x128xbf16, #tpu.memory_space<vmem>>, vector<256x128xbf16>
    %cst_58 = arith.constant dense<0.000000e+00> : vector<256x128xf32>
    %70 = tpu.matmul %68, %69, %cst_58 {dimension_numbers = #tpu.dot_dimension_numbers<[1], [0], [0], [1], [0, 0, 1, 1], [], []>} : vector<256x256xbf16>, vector<256x128xbf16>, vector<256x128xf32> -> vector<256x128xf32>
    %c0_59 = arith.constant 0 : index
    %c0_60 = arith.constant 0 : index
    %71 = vector.load %arg4[%c0_59, %c0_60] : memref<1x128xf32, #tpu.memory_space<vmem>>, vector<1x128xf32>
    %72 = vector.broadcast %71 : vector<1x128xf32> to vector<256x128xf32>
    %73 = arith.addf %70, %72 : vector<256x128xf32>
    %cst_61 = arith.constant 0.000000e+00 : f32
    %74 = vector.broadcast %cst_61 : f32 to vector<256x128xf32>
    %75 = arith.maximumf %73, %74 : vector<256x128xf32>
    %76 = vector.shape_cast %75 : vector<256x128xf32> to vector<16x16x128xf32>
    %77 = arith.truncf %76 : vector<16x16x128xf32> to vector<16x16x128xbf16>
    %c0_62 = arith.constant 0 : index
    %c0_63 = arith.constant 0 : index
    %c0_64 = arith.constant 0 : index
    %c0_65 = arith.constant 0 : index
    %78 = vector.load %arg5[%c0_62, %c0_63, %c0_64, %c0_65] : memref<1x16x16x128xbf16, #tpu.memory_space<vmem>>, vector<1x16x16x128xbf16>
    %79 = vector.shape_cast %78 : vector<1x16x16x128xbf16> to vector<16x16x128xbf16>
    %80 = vector.shape_cast %77 : vector<16x16x128xbf16> to vector<1x16x16x128xbf16>
    tpu.vector_store %arg5[%c0_62, %c0_63, %c0_64, %c0_65], %80 {strides = array<i32>} : memref<1x16x16x128xbf16, #tpu.memory_space<vmem>>, vector<1x16x16x128xbf16>,
    return
  }
  func.func @transform_0(%arg0: i32, %arg1: i32) -> (i32, i32, i32, i32) {
    %c0_i32 = arith.constant 0 : i32
    %c0_i32_0 = arith.constant 0 : i32
    %c0_i32_1 = arith.constant 0 : i32
    %c0_i32_2 = arith.constant 0 : i32
    return %arg0, %c0_i32, %c0_i32_0, %c0_i32_1 : i32, i32, i32, i32
  }
  func.func @transform_1(%arg0: i32, %arg1: i32) -> (i32, i32) {
    %c0_i32 = arith.constant 0 : i32
    %c0_i32_0 = arith.constant 0 : i32
    %c0_i32_1 = arith.constant 0 : i32
    return %c0_i32, %c0_i32_0 : i32, i32
  }
  func.func @transform_2(%arg0: i32, %arg1: i32) -> (i32, i32) {
    %c0_i32 = arith.constant 0 : i32
    %c0_i32_0 = arith.constant 0 : i32
    %c0_i32_1 = arith.constant 0 : i32
    return %c0_i32, %c0_i32_0 : i32, i32
  }
  func.func @transform_3(%arg0: i32, %arg1: i32) -> (i32, i32, i32, i32) {
    %c0_i32 = arith.constant 0 : i32
    %c0_i32_0 = arith.constant 0 : i32
    %c0_i32_1 = arith.constant 0 : i32
    return %arg0, %arg1, %c0_i32, %c0_i32_0 : i32, i32, i32, i32
  }
}

module attributes {stable_mosaic.version = 11 : i64} {
  func.func @kernel(%arg0: i32, %arg1: i32, %arg2: memref<1x5x5x32xbf16, #tpu.memory_space<vmem>>, %arg3: memref<128x128xbf16, #tpu.memory_space<vmem>>, %arg4: memref<1x128xf32, #tpu.memory_space<vmem>>, %arg5: memref<1x4x4x128xbf16, #tpu.memory_space<vmem>>) attributes {dimension_semantics = [#tpu.dimension_semantics<parallel>, #tpu.dimension_semantics<parallel>], iteration_bounds = array<i64: 2, 1>, scalar_prefetch = 0 : i64, scratch_operands = 0 : i64, tpu.core_type = #tpu.core_type<tc>, window_params = [{transform_indices = @transform_0, window_bounds = array<i64: 1, 5, 5, 32>}, {pipeline_mode = #tpu.pipeline_mode<synchronous>, transform_indices = @transform_1, window_bounds = array<i64: 128, 128>}, {pipeline_mode = #tpu.pipeline_mode<synchronous>, transform_indices = @transform_2, window_bounds = array<i64: 1, 128>}, {transform_indices = @transform_3, window_bounds = array<i64: 1, 4, 4, 128>}]} {
    %c4_i32 = arith.constant 4 : i32
    %0 = arith.muli %arg1, %c4_i32 : i32
    %c0_i32 = arith.constant 0 : i32
    %1 = arith.addi %0, %c0_i32 : i32
    %c0 = arith.constant 0 : index
    %2 = arith.index_cast %1 : i32 to index
    %c0_0 = arith.constant 0 : index
    %c0_1 = arith.constant 0 : index
    %3 = vector.load %arg2[%c0, %2, %c0_0, %c0_1] : memref<1x5x5x32xbf16, #tpu.memory_space<vmem>>, vector<1x4x4x32xbf16>
    %4 = vector.shape_cast %3 : vector<1x4x4x32xbf16> to vector<4x4x32xbf16>
    %c0_i32_2 = arith.constant 0 : i32
    %5 = arith.addi %0, %c0_i32_2 : i32
    %c0_3 = arith.constant 0 : index
    %6 = arith.index_cast %5 : i32 to index
    %c1 = arith.constant 1 : index
    %c0_4 = arith.constant 0 : index
    %7 = vector.load %arg2[%c0_3, %6, %c1, %c0_4] : memref<1x5x5x32xbf16, #tpu.memory_space<vmem>>, vector<1x4x4x32xbf16>
    %8 = vector.shape_cast %7 : vector<1x4x4x32xbf16> to vector<4x4x32xbf16>
    %c1_i32 = arith.constant 1 : i32
    %9 = arith.addi %0, %c1_i32 : i32
    %c0_5 = arith.constant 0 : index
    %10 = arith.index_cast %9 : i32 to index
    %c0_6 = arith.constant 0 : index
    %c0_7 = arith.constant 0 : index
    %11 = vector.load %arg2[%c0_5, %10, %c0_6, %c0_7] : memref<1x5x5x32xbf16, #tpu.memory_space<vmem>>, vector<1x4x4x32xbf16>
    %12 = vector.shape_cast %11 : vector<1x4x4x32xbf16> to vector<4x4x32xbf16>
    %c1_i32_8 = arith.constant 1 : i32
    %13 = arith.addi %0, %c1_i32_8 : i32
    %c0_9 = arith.constant 0 : index
    %14 = arith.index_cast %13 : i32 to index
    %c1_10 = arith.constant 1 : index
    %c0_11 = arith.constant 0 : index
    %15 = vector.load %arg2[%c0_9, %14, %c1_10, %c0_11] : memref<1x5x5x32xbf16, #tpu.memory_space<vmem>>, vector<1x4x4x32xbf16>
    %16 = vector.shape_cast %15 : vector<1x4x4x32xbf16> to vector<4x4x32xbf16>
    %17 = tpu.concatenate %4, %8, %12, %16 in 2 : vector<4x4x32xbf16>, vector<4x4x32xbf16>, vector<4x4x32xbf16>, vector<4x4x32xbf16> -> vector<4x4x128xbf16>
    %18 = vector.shape_cast %17 : vector<4x4x128xbf16> to vector<16x128xbf16>
    %c0_12 = arith.constant 0 : index
    %c0_13 = arith.constant 0 : index
    %19 = vector.load %arg3[%c0_12, %c0_13] : memref<128x128xbf16, #tpu.memory_space<vmem>>, vector<128x128xbf16>
    %cst = arith.constant dense<0.000000e+00> : vector<16x128xf32>
    %20 = tpu.matmul %18, %19, %cst {dimension_numbers = #tpu.dot_dimension_numbers<[1], [0], [0], [1], [0, 0, 1, 1], [], []>} : vector<16x128xbf16>, vector<128x128xbf16>, vector<16x128xf32> -> vector<16x128xf32>
    %c0_14 = arith.constant 0 : index
    %c0_15 = arith.constant 0 : index
    %21 = vector.load %arg4[%c0_14, %c0_15] : memref<1x128xf32, #tpu.memory_space<vmem>>, vector<1x128xf32>
    %22 = vector.broadcast %21 : vector<1x128xf32> to vector<16x128xf32>
    %23 = arith.addf %20, %22 : vector<16x128xf32>
    %cst_16 = arith.constant 0.000000e+00 : f32
    %24 = vector.broadcast %cst_16 : f32 to vector<16x128xf32>
    %25 = arith.maximumf %23, %24 : vector<16x128xf32>
    %26 = vector.shape_cast %25 : vector<16x128xf32> to vector<4x4x128xf32>
    %27 = arith.truncf %26 : vector<4x4x128xf32> to vector<4x4x128xbf16>
    %c0_17 = arith.constant 0 : index
    %c0_18 = arith.constant 0 : index
    %c0_19 = arith.constant 0 : index
    %c0_20 = arith.constant 0 : index
    %28 = vector.load %arg5[%c0_17, %c0_18, %c0_19, %c0_20] : memref<1x4x4x128xbf16, #tpu.memory_space<vmem>>, vector<1x4x4x128xbf16>
    %29 = vector.shape_cast %28 : vector<1x4x4x128xbf16> to vector<4x4x128xbf16>
    %30 = vector.shape_cast %27 : vector<4x4x128xbf16> to vector<1x4x4x128xbf16>
    tpu.vector_store %arg5[%c0_17, %c0_18, %c0_19, %c0_20], %30 {strides = array<i32>} : memref<1x4x4x128xbf16, #tpu.memory_space<vmem>>, vector<1x4x4x128xbf16>,
    return
  }
  func.func @transform_0(%arg0: i32, %arg1: i32) -> (i32, i32, i32, i32) {
    %c0_i32 = arith.constant 0 : i32
    %c0_i32_0 = arith.constant 0 : i32
    %c0_i32_1 = arith.constant 0 : i32
    %c0_i32_2 = arith.constant 0 : i32
    return %arg0, %c0_i32, %c0_i32_0, %c0_i32_1 : i32, i32, i32, i32
  }
  func.func @transform_1(%arg0: i32, %arg1: i32) -> (i32, i32) {
    %c0_i32 = arith.constant 0 : i32
    %c0_i32_0 = arith.constant 0 : i32
    %c0_i32_1 = arith.constant 0 : i32
    return %c0_i32, %c0_i32_0 : i32, i32
  }
  func.func @transform_2(%arg0: i32, %arg1: i32) -> (i32, i32) {
    %c0_i32 = arith.constant 0 : i32
    %c0_i32_0 = arith.constant 0 : i32
    %c0_i32_1 = arith.constant 0 : i32
    return %c0_i32, %c0_i32_0 : i32, i32
  }
  func.func @transform_3(%arg0: i32, %arg1: i32) -> (i32, i32, i32, i32) {
    %c0_i32 = arith.constant 0 : i32
    %c0_i32_0 = arith.constant 0 : i32
    %c0_i32_1 = arith.constant 0 : i32
    return %arg0, %arg1, %c0_i32, %c0_i32_0 : i32, i32, i32, i32
  }
}

module attributes {stable_mosaic.version = 11 : i64} {
  func.func @kernel(%arg0: i32, %arg1: i32, %arg2: memref<1x3x3x64xbf16, #tpu.memory_space<vmem>>, %arg3: memref<256x128xbf16, #tpu.memory_space<vmem>>, %arg4: memref<1x128xf32, #tpu.memory_space<vmem>>, %arg5: memref<1x2x2x128xbf16, #tpu.memory_space<vmem>>) attributes {dimension_semantics = [#tpu.dimension_semantics<parallel>, #tpu.dimension_semantics<parallel>], iteration_bounds = array<i64: 2, 1>, scalar_prefetch = 0 : i64, scratch_operands = 0 : i64, tpu.core_type = #tpu.core_type<tc>, window_params = [{transform_indices = @transform_0, window_bounds = array<i64: 1, 3, 3, 64>}, {pipeline_mode = #tpu.pipeline_mode<synchronous>, transform_indices = @transform_1, window_bounds = array<i64: 256, 128>}, {pipeline_mode = #tpu.pipeline_mode<synchronous>, transform_indices = @transform_2, window_bounds = array<i64: 1, 128>}, {transform_indices = @transform_3, window_bounds = array<i64: 1, 2, 2, 128>}]} {
    %c2_i32 = arith.constant 2 : i32
    %0 = arith.muli %arg1, %c2_i32 : i32
    %c0_i32 = arith.constant 0 : i32
    %1 = arith.addi %0, %c0_i32 : i32
    %c0 = arith.constant 0 : index
    %2 = arith.index_cast %1 : i32 to index
    %c0_0 = arith.constant 0 : index
    %c0_1 = arith.constant 0 : index
    %3 = vector.load %arg2[%c0, %2, %c0_0, %c0_1] : memref<1x3x3x64xbf16, #tpu.memory_space<vmem>>, vector<1x2x2x64xbf16>
    %4 = vector.shape_cast %3 : vector<1x2x2x64xbf16> to vector<2x2x64xbf16>
    %c0_i32_2 = arith.constant 0 : i32
    %5 = arith.addi %0, %c0_i32_2 : i32
    %c0_3 = arith.constant 0 : index
    %6 = arith.index_cast %5 : i32 to index
    %c1 = arith.constant 1 : index
    %c0_4 = arith.constant 0 : index
    %7 = vector.load %arg2[%c0_3, %6, %c1, %c0_4] : memref<1x3x3x64xbf16, #tpu.memory_space<vmem>>, vector<1x2x2x64xbf16>
    %8 = vector.shape_cast %7 : vector<1x2x2x64xbf16> to vector<2x2x64xbf16>
    %c1_i32 = arith.constant 1 : i32
    %9 = arith.addi %0, %c1_i32 : i32
    %c0_5 = arith.constant 0 : index
    %10 = arith.index_cast %9 : i32 to index
    %c0_6 = arith.constant 0 : index
    %c0_7 = arith.constant 0 : index
    %11 = vector.load %arg2[%c0_5, %10, %c0_6, %c0_7] : memref<1x3x3x64xbf16, #tpu.memory_space<vmem>>, vector<1x2x2x64xbf16>
    %12 = vector.shape_cast %11 : vector<1x2x2x64xbf16> to vector<2x2x64xbf16>
    %c1_i32_8 = arith.constant 1 : i32
    %13 = arith.addi %0, %c1_i32_8 : i32
    %c0_9 = arith.constant 0 : index
    %14 = arith.index_cast %13 : i32 to index
    %c1_10 = arith.constant 1 : index
    %c0_11 = arith.constant 0 : index
    %15 = vector.load %arg2[%c0_9, %14, %c1_10, %c0_11] : memref<1x3x3x64xbf16, #tpu.memory_space<vmem>>, vector<1x2x2x64xbf16>
    %16 = vector.shape_cast %15 : vector<1x2x2x64xbf16> to vector<2x2x64xbf16>
    %17 = tpu.concatenate %4, %8, %12, %16 in 2 : vector<2x2x64xbf16>, vector<2x2x64xbf16>, vector<2x2x64xbf16>, vector<2x2x64xbf16> -> vector<2x2x256xbf16>
    %18 = vector.shape_cast %17 : vector<2x2x256xbf16> to vector<4x256xbf16>
    %c0_12 = arith.constant 0 : index
    %c0_13 = arith.constant 0 : index
    %19 = vector.load %arg3[%c0_12, %c0_13] : memref<256x128xbf16, #tpu.memory_space<vmem>>, vector<256x128xbf16>
    %cst = arith.constant dense<0.000000e+00> : vector<4x128xf32>
    %20 = tpu.matmul %18, %19, %cst {dimension_numbers = #tpu.dot_dimension_numbers<[1], [0], [0], [1], [0, 0, 1, 1], [], []>} : vector<4x256xbf16>, vector<256x128xbf16>, vector<4x128xf32> -> vector<4x128xf32>
    %c0_14 = arith.constant 0 : index
    %c0_15 = arith.constant 0 : index
    %21 = vector.load %arg4[%c0_14, %c0_15] : memref<1x128xf32, #tpu.memory_space<vmem>>, vector<1x128xf32>
    %22 = vector.broadcast %21 : vector<1x128xf32> to vector<4x128xf32>
    %23 = arith.addf %20, %22 : vector<4x128xf32>
    %cst_16 = arith.constant 0.000000e+00 : f32
    %24 = vector.broadcast %cst_16 : f32 to vector<4x128xf32>
    %25 = arith.maximumf %23, %24 : vector<4x128xf32>
    %26 = vector.shape_cast %25 : vector<4x128xf32> to vector<2x2x128xf32>
    %27 = arith.truncf %26 : vector<2x2x128xf32> to vector<2x2x128xbf16>
    %c0_17 = arith.constant 0 : index
    %c0_18 = arith.constant 0 : index
    %c0_19 = arith.constant 0 : index
    %c0_20 = arith.constant 0 : index
    %28 = vector.load %arg5[%c0_17, %c0_18, %c0_19, %c0_20] : memref<1x2x2x128xbf16, #tpu.memory_space<vmem>>, vector<1x2x2x128xbf16>
    %29 = vector.shape_cast %28 : vector<1x2x2x128xbf16> to vector<2x2x128xbf16>
    %30 = vector.shape_cast %27 : vector<2x2x128xbf16> to vector<1x2x2x128xbf16>
    tpu.vector_store %arg5[%c0_17, %c0_18, %c0_19, %c0_20], %30 {strides = array<i32>} : memref<1x2x2x128xbf16, #tpu.memory_space<vmem>>, vector<1x2x2x128xbf16>,
    return
  }
  func.func @transform_0(%arg0: i32, %arg1: i32) -> (i32, i32, i32, i32) {
    %c0_i32 = arith.constant 0 : i32
    %c0_i32_0 = arith.constant 0 : i32
    %c0_i32_1 = arith.constant 0 : i32
    %c0_i32_2 = arith.constant 0 : i32
    return %arg0, %c0_i32, %c0_i32_0, %c0_i32_1 : i32, i32, i32, i32
  }
  func.func @transform_1(%arg0: i32, %arg1: i32) -> (i32, i32) {
    %c0_i32 = arith.constant 0 : i32
    %c0_i32_0 = arith.constant 0 : i32
    %c0_i32_1 = arith.constant 0 : i32
    return %c0_i32, %c0_i32_0 : i32, i32
  }
  func.func @transform_2(%arg0: i32, %arg1: i32) -> (i32, i32) {
    %c0_i32 = arith.constant 0 : i32
    %c0_i32_0 = arith.constant 0 : i32
    %c0_i32_1 = arith.constant 0 : i32
    return %c0_i32, %c0_i32_0 : i32, i32
  }
  func.func @transform_3(%arg0: i32, %arg1: i32) -> (i32, i32, i32, i32) {
    %c0_i32 = arith.constant 0 : i32
    %c0_i32_0 = arith.constant 0 : i32
    %c0_i32_1 = arith.constant 0 : i32
    return %arg0, %arg1, %c0_i32, %c0_i32_0 : i32, i32, i32, i32
  }
}

</mosaic_0001>

<bundles_post_ra>
// kernel: initial_layer_forward.5
= control target key start
LH: loop header
LB: loop body
LE: loop exit
PB: predicated region body
PF: predicated region fallthrough
CT: control target
= control target key end

     0   :  { %s664_s6 = smov 0   ;;  %s666_s7 = smov 0   ;;  %s775_s0 = inlined_call_operand.vmem [shape: bf16[2,16,8,256], index: 0, kind: input, shape index: {}]   ;;  %s776_s1 = inlined_call_operand.vmem [shape: bf16[2,8,8,8], index: 1, kind: output, shape index: {}]  }
   0x1   :  { %s668_s8 = smov 0  }
   0x2 LB: > { %s23_s9 = sadd.s32 1, %s647_s7  ;;  %p562_p0 = scmp.ge.s32.totalorder %s651_s8, 1  ;;  %s651_s8 = sphi %s668_s8, %s11_s8   ;;  %s647_s7 = sphi %s666_s7, %s780_s7   ;;  %s643_s6 = sphi %s664_s6, %s779_s6  }
   0x3   : > { %p25_p1 = scmp.ge.s32.totalorder %s23_s9, 2  ;;  %p101_p2 = scmp.lt.s32.totalorder %s651_s8, 3 }
   0x5   : > { %s782_s9 = smov (%p25_p1, %s23_s9), 0  ;;  %p102_p3 = pnand %p562_p0, %p101_p2 }
   0x6   : > { %p125_p4 = scmp.lt.s32.totalorder (!%p102_p3), %s643_s6, 1  ;;  %vm337_vm0 = vcmask (!%p102_p3), 1040384   ;;  %vm338_vm1 = vsmask.f32 (!%p102_p3), 256  ;;  %vm464_vm2 = vcmask (!%p102_p3), 60416   ;;  %v653_v61 = vmov (!%p102_p3), 0  }
   0x7   : > { %105 = sbr.rel (%p102_p3) target bundleno = 67 (0x43), region = 24  ;;  %vm698_vm3 = vmand (!%p102_p3), %vm337_vm0, %vm338_vm1 }
   0xe   : > { %s784_s6 = smov (!%p125_p4, %s643_s6), 1 }
   0xf   : > { %s586_s10 = sshll.u32 %s784_s6, 7  ;;  %s587_s14 = sshll.u32 %s784_s6, 5 }
  0x10   : > { %s688_s13 = scalar_lea.vmem %s775_s0, %s586_s10  ;;  %s716_s17 = scalar_lea.vmem %s776_s1, %s587_s14 }
  0x11   : > { %v145_v0 = vld [vmem:[%s688_s13] sm:$0xff]  ;;  %v146_v1 = vld [vmem:[%s688_s13 + $0x8] sm:$0xff]  ;;  %v147_v2 = vld [vmem:[%s688_s13 + $0x10] sm:$0xff] }
  0x12   : > { %v567_v3 = vcombine.high %v145_v0, %v145_v0  ;;  %v568_v4 = vcombine.high %v146_v1, %v146_v1  ;;  %v356_v5 = vrot.slane %v145_v0, 4  ;;  %v357_v6 = vrot.slane %v146_v1, 4  ;;  %v148_v7 = vld [vmem:[%s688_s13 + $0x18] sm:$0xff]  ;;  %v149_v16 = vld [vmem:[%s688_s13 + $0x20] sm:$0xff]  ;;  %v150_v21 = vld [vmem:[%s688_s13 + $0x28] sm:$0xff] }
  0x13   : > { %v569_v8 = vcombine.high %v147_v2, %v147_v2  ;;  %v570_v9 = vcombine.high %v148_v7, %v148_v7  ;;  %v358_v10 = vrot.slane %v147_v2, 4  ;;  %v359_v11 = vrot.slane %v148_v7, 4  ;;  %v151_v47 = vld [vmem:[%s688_s13 + $0x30] sm:$0xff]  ;;  %v152_v48 = vld [vmem:[%s688_s13 + $0x38] sm:$0xff] }
  0x14   : > { %v210_v12 = vshrl.u32 %v567_v3, 16  ;;  %v213_v13 = vshll.u32 %v567_v3, 16  ;;  %v217_v14 = vshrl.u32 %v568_v4, 16  ;;  %v220_v15 = vshll.u32 %v568_v4, 16 }
  0x15   : > { %v388_v17 = vmax.bf16 %v356_v5, %v145_v0  ;;  %v389_v18 = vmax.bf16 %v357_v6, %v146_v1  ;;  %v224_v19 = vshrl.u32 %v569_v8, 16  ;;  %v227_v20 = vshll.u32 %v569_v8, 16 }
  0x16   : > { %v212_v22 = vrot.slane %v210_v12, 7  ;;  %v219_v23 = vrot.slane %v217_v14, 7  ;;  %v231_v24 = vshrl.u32 %v570_v9, 16  ;;  %v234_v25 = vshll.u32 %v570_v9, 16 }
  0x17   : > { %v226_v27 = vrot.slane %v224_v19, 7  ;;  %v390_v28 = vmax.bf16 %v358_v10, %v147_v2  ;;  %v391_v29 = vmax.bf16 %v359_v11, %v148_v7  ;;  %v571_v30 = vcombine.high %v149_v16, %v149_v16  ;;  %v153_v2 = vld [vmem:[%s688_s13 + $0x40] sm:$0xff]  ;;  %v154_v7 = vld [vmem:[%s688_s13 + $0x48] sm:$0xff] }
  0x18   : > { %v215_v31 = vor.u32 %v213_v13, %v212_v22  ;;  %v222_v32 = vor.u32 %v220_v15, %v219_v23  ;;  %v233_v33 = vrot.slane %v231_v24, 7  ;;  %v572_v34 = vcombine.high %v150_v21, %v150_v21 }
  0x19   : > { %v229_v35 = vor.u32 %v227_v20, %v226_v27  ;;  %v238_v36 = vshrl.u32 %v571_v30, 16  ;;  %v241_v37 = vshll.u32 %v571_v30, 16  ;;  %v360_v38 = vrot.slane %v149_v16, 4 }
  0x1a   : > { %v340_v39 = vsel %vm698_vm3, 0, %v215_v31  ;;  %v341_v40 = vsel %vm698_vm3, 0, %v222_v32  ;;  %v236_v41 = vor.u32 %v234_v25, %v233_v33  ;;  %v245_v42 = vshrl.u32 %v572_v34, 16 }
  0x1b   : > { %v404_v43 = vmax.bf16 %v388_v17, %v340_v39  ;;  %v405_v44 = vmax.bf16 %v389_v18, %v341_v40  ;;  %v342_v45 = vsel %vm698_vm3, 0, %v229_v35  ;;  %v240_v46 = vrot.slane %v238_v36, 7 }
  0x1c   : > { %v343_v49 = vsel %vm698_vm3, 0, %v236_v41  ;;  %v406_v50 = vmax.bf16 %v390_v28, %v342_v45  ;;  %v247_v51 = vrot.slane %v245_v42, 7  ;;  %v248_v52 = vshll.u32 %v572_v34, 16  ;;  %v156_v34 = vld [vmem:[%s688_s13 + $0x58] sm:$0xff] }
  0x1d   : > { %v448_v53 = vmax.bf16 %v405_v44, %v404_v43  ;;  %v407_v54 = vmax.bf16 %v391_v29, %v343_v49  ;;  %v243_v55 = vor.u32 %v241_v37, %v240_v46  ;;  %v361_v56 = vrot.slane %v150_v21, 4  ;;  %v155_v29 = vld [vmem:[%s688_s13 + $0x50] sm:$0xff] }
  0x1e   : > { %v250_v57 = vor.u32 %v248_v52, %v247_v51  ;;  %v392_v58 = vmax.bf16 %v360_v38, %v149_v16  ;;  %v573_v59 = vcombine.high %v151_v47, %v151_v47  ;;  %v574_v60 = vcombine.high %v152_v48, %v152_v48  ;;  %v157_v51 = vld [vmem:[%s688_s13 + $0x60] sm:$0xff]  ;;  %v158_v52 = vld [vmem:[%s688_s13 + $0x68] sm:$0xff] }
  0x1f   : > { %v456_v62 = vmax.bf16 %v653_v61, %v448_v53  ;;  %v449_v63 = vmax.bf16 %v407_v54, %v406_v50  ;;  %v344_v0 = vsel %vm698_vm3, 0, %v243_v55  ;;  %v393_v1 = vmax.bf16 %v361_v56, %v150_v21 }
  0x20   : > { %v345_v3 = vsel %vm698_vm3, 0, %v250_v57  ;;  %v408_v4 = vmax.bf16 %v392_v58, %v344_v0  ;;  %v252_v5 = vshrl.u32 %v573_v59, 16  ;;  %v255_v6 = vshll.u32 %v573_v59, 16 }
  0x21   : > { %465 = vst.msk [vmem:[%s716_s17] sm:$0xf] %vm464_vm2, %v456_v62  ;;  %v457_v8 = vmax.bf16 %v449_v63, %v405_v44  ;;  %v409_v9 = vmax.bf16 %v393_v1, %v345_v3  ;;  %v259_v10 = vshrl.u32 %v574_v60, 16  ;;  %v262_v11 = vshll.u32 %v574_v60, 16 }
  0x22   : > { %v254_v12 = vrot.slane %v252_v5, 7  ;;  %v362_v13 = vrot.slane %v151_v47, 4  ;;  %v363_v14 = vrot.slane %v152_v48, 4  ;;  %v575_v15 = vcombine.high %v153_v2, %v153_v2 }
  0x23   : > { %466 = vst.msk [vmem:[%s716_s17 + $0x4] sm:$0xf] %vm464_vm2, %v457_v8  ;;  %v450_v16 = vmax.bf16 %v409_v9, %v408_v4  ;;  %v261_v17 = vrot.slane %v259_v10, 7  ;;  %v576_v18 = vcombine.high %v154_v7, %v154_v7  ;;  %v364_v19 = vrot.slane %v153_v2, 4  ;;  %v160_v10 = vld [vmem:[%s688_s13 + $0x78] sm:$0xff] }
  0x24   : > { %v257_v20 = vor.u32 %v255_v6, %v254_v12  ;;  %v394_v21 = vmax.bf16 %v362_v13, %v151_v47  ;;  %v395_v22 = vmax.bf16 %v363_v14, %v152_v48  ;;  %v266_v23 = vshrl.u32 %v575_v15, 16 }
  0x25   : > { %v458_v24 = vmax.bf16 %v450_v16, %v407_v54  ;;  %v264_v25 = vor.u32 %v262_v11, %v261_v17  ;;  %v269_v27 = vshll.u32 %v575_v15, 16  ;;  %v273_v28 = vshrl.u32 %v576_v18, 16 }
  0x26   : > { %v346_v30 = vsel %vm698_vm3, 0, %v257_v20  ;;  %v268_v31 = vrot.slane %v266_v23, 7  ;;  %v276_v32 = vshll.u32 %v576_v18, 16  ;;  %v365_v33 = vrot.slane %v154_v7, 4 }
  0x27   : > { %467 = vst.msk [vmem:[%s716_s17 + $0x8] sm:$0xf] %vm464_vm2, %v458_v24  ;;  %v347_v35 = vsel %vm698_vm3, 0, %v264_v25  ;;  %v410_v36 = vmax.bf16 %v394_v21, %v346_v30  ;;  %v275_v37 = vrot.slane %v273_v28, 7  ;;  %v396_v38 = vmax.bf16 %v364_v19, %v153_v2 }
  0x28   : > { %v411_v39 = vmax.bf16 %v395_v22, %v347_v35  ;;  %v271_v40 = vor.u32 %v269_v27, %v268_v31  ;;  %v397_v41 = vmax.bf16 %v365_v33, %v154_v7  ;;  %v577_v42 = vcombine.high %v155_v29, %v155_v29 }
  0x29   : > { %v278_v43 = vor.u32 %v276_v32, %v275_v37  ;;  %v578_v44 = vcombine.high %v156_v34, %v156_v34  ;;  %v366_v45 = vrot.slane %v155_v29, 4  ;;  %v367_v46 = vrot.slane %v156_v34, 4 }
  0x2a   : > { %v451_v47 = vmax.bf16 %v411_v39, %v410_v36  ;;  %v348_v48 = vsel %vm698_vm3, 0, %v271_v40  ;;  %v280_v49 = vshrl.u32 %v577_v42, 16  ;;  %v283_v50 = vshll.u32 %v577_v42, 16 }
  0x2b   : > { %v349_v53 = vsel %vm698_vm3, 0, %v278_v43  ;;  %v412_v54 = vmax.bf16 %v396_v38, %v348_v48  ;;  %v287_v55 = vshrl.u32 %v578_v44, 16  ;;  %v290_v56 = vshll.u32 %v578_v44, 16 }
  0x2c   : > { %v459_v57 = vmax.bf16 %v451_v47, %v409_v9  ;;  %v413_v58 = vmax.bf16 %v397_v41, %v349_v53  ;;  %v282_v59 = vrot.slane %v280_v49, 7  ;;  %v398_v60 = vmax.bf16 %v366_v45, %v155_v29  ;;  %v159_v9 = vld [vmem:[%s688_s13 + $0x70] sm:$0xff] }
  0x2d   : > { %v289_v61 = vrot.slane %v287_v55, 7  ;;  %v399_v62 = vmax.bf16 %v367_v46, %v156_v34  ;;  %v579_v63 = vcombine.high %v157_v51, %v157_v51  ;;  %v580_v0 = vcombine.high %v158_v52, %v158_v52 }
  0x2e   : > { %468 = vst.msk [vmem:[%s716_s17 + $0xc] sm:$0xf] %vm464_vm2, %v459_v57  ;;  %v452_v1 = vmax.bf16 %v413_v58, %v412_v54  ;;  %v285_v2 = vor.u32 %v283_v50, %v282_v59  ;;  %v368_v3 = vrot.slane %v157_v51, 4  ;;  %v369_v4 = vrot.slane %v158_v52, 4 }
  0x2f   : > { %v292_v5 = vor.u32 %v290_v56, %v289_v61  ;;  %v294_v6 = vshrl.u32 %v579_v63, 16  ;;  %v297_v7 = vshll.u32 %v579_v63, 16  ;;  %v301_v8 = vshrl.u32 %v580_v0, 16 }
  0x30   : > { %v460_v11 = vmax.bf16 %v452_v1, %v411_v39  ;;  %v350_v12 = vsel %vm698_vm3, 0, %v285_v2  ;;  %v304_v13 = vshll.u32 %v580_v0, 16  ;;  %v400_v14 = vmax.bf16 %v368_v3, %v157_v51 }
  0x31   : > { %v351_v15 = vsel %vm698_vm3, 0, %v292_v5  ;;  %v414_v16 = vmax.bf16 %v398_v60, %v350_v12  ;;  %v296_v17 = vrot.slane %v294_v6, 7  ;;  %v303_v18 = vrot.slane %v301_v8, 7 }
  0x32   : > { %469 = vst.msk [vmem:[%s716_s17 + $0x10] sm:$0xf] %vm464_vm2, %v460_v11  ;;  %v415_v19 = vmax.bf16 %v399_v62, %v351_v15  ;;  %v401_v20 = vmax.bf16 %v369_v4, %v158_v52  ;;  %v581_v21 = vcombine.high %v159_v9, %v159_v9  ;;  %v582_v22 = vcombine.high %v160_v10, %v160_v10 }
  0x33   : > { %v299_v23 = vor.u32 %v297_v7, %v296_v17  ;;  %v306_v24 = vor.u32 %v304_v13, %v303_v18  ;;  %v370_v25 = vrot.slane %v159_v9, 4  ;;  %v371_v27 = vrot.slane %v160_v10, 4 }
  0x34   : > { %v453_v28 = vmax.bf16 %v415_v19, %v414_v16  ;;  %v308_v29 = vshrl.u32 %v581_v21, 16  ;;  %v311_v30 = vshll.u32 %v581_v21, 16  ;;  %v315_v31 = vshrl.u32 %v582_v22, 16 }
  0x35   : > { %v352_v32 = vsel %vm698_vm3, 0, %v299_v23  ;;  %v353_v33 = vsel %vm698_vm3, 0, %v306_v24  ;;  %v318_v34 = vshll.u32 %v582_v22, 16  ;;  %v402_v40 = vmax.bf16 %v370_v25, %v159_v9 }
  0x36   : > { %v461_v35 = vmax.bf16 %v453_v28, %v413_v58  ;;  %v416_v36 = vmax.bf16 %v400_v14, %v352_v32  ;;  %v417_v37 = vmax.bf16 %v401_v20, %v353_v33  ;;  %v310_v38 = vrot.slane %v308_v29, 7 }
  0x37   : > { %v317_v39 = vrot.slane %v315_v31, 7  ;;  %v403_v43 = vmax.bf16 %v371_v27, %v160_v10 }
  0x38   : > { %470 = vst.msk [vmem:[%s716_s17 + $0x14] sm:$0xf] %vm464_vm2, %v461_v35  ;;  %v454_v41 = vmax.bf16 %v417_v37, %v416_v36  ;;  %v313_v42 = vor.u32 %v311_v30, %v310_v38 }
  0x39   : > { %v320_v44 = vor.u32 %v318_v34, %v317_v39 }
  0x3a   : > { %v462_v45 = vmax.bf16 %v454_v41, %v415_v19  ;;  %v354_v46 = vsel %vm698_vm3, 0, %v313_v42 }
  0x3b   : > { %v355_v47 = vsel %vm698_vm3, 0, %v320_v44  ;;  %v418_v48 = vmax.bf16 %v402_v40, %v354_v46 }
  0x3c   : > { %471 = vst.msk [vmem:[%s716_s17 + $0x18] sm:$0xf] %vm464_vm2, %v462_v45  ;;  %v419_v49 = vmax.bf16 %v403_v43, %v355_v47 }
  0x3e   : > { %v455_v50 = vmax.bf16 %v419_v49, %v418_v48 }
  0x40   : > { %v463_v51 = vmax.bf16 %v455_v50, %v417_v37 }
  0x42   : > { %472 = vst.msk [vmem:[%s716_s17 + $0x1c] sm:$0xf] %vm464_vm2, %v463_v51 }
  0x43 PF: > { %s11_s8 = sadd.s32 1, %s651_s8   ;;  %s779_s6 = smov %s647_s7 }
  0x44   : > { %p8_p5 = scmp.ge.s32.totalorder %s11_s8, 4   ;;  %s780_s7 = smov %s782_s9 }
  0x46   :  { %10 = sbr.rel (!%p8_p5) target bundleno = 2 (0x2), region = 56 }

// kernel: initial_layer_forward.6
= control target key start
LH: loop header
LB: loop body
LE: loop exit
PB: predicated region body
PF: predicated region fallthrough
CT: control target
= control target key end

     0   :  { %s771_s12 = smov 0   ;;  %s773_s13 = smov 0   ;;  %s874_s0 = inlined_call_operand.vmem [shape: bf16[2,5,5,32], index: 0, kind: input, shape index: {}]   ;;  %s875_s1 = inlined_call_operand.vmem [shape: bf16[128,128], index: 1, kind: input, shape index: {}]   ;;  %s876_s2 = inlined_call_operand.vmem [shape: f32[1,128], index: 2, kind: input, shape index: {}]   ;;  %s877_s3 = inlined_call_operand.vmem [shape: bf16[2,4,4,128], index: 3, kind: output, shape index: {}]  }
   0x1   :  { %s775_s14 = smov 0  }
   0x2 LB: > { %s25_s15 = sadd.s32 1, %s739_s13  ;;  %p605_p0 = scmp.ge.s32.totalorder %s743_s14, 1  ;;  %s743_s14 = sphi %s775_s14, %s13_s14   ;;  %s739_s13 = sphi %s773_s13, %s879_s13   ;;  %s735_s12 = sphi %s771_s12, %s878_s12  }
   0x3   : > { %p27_p1 = scmp.ge.s32.totalorder %s25_s15, 2  ;;  %p151_p2 = scmp.lt.s32.totalorder %s743_s14, 3 }
   0x5   : > { %s881_s15 = smov (%p27_p1, %s25_s15), 0  ;;  %p152_p3 = pnand %p605_p0, %p151_p2 }
   0x6   : > { %p179_p4 = scmp.lt.s32.totalorder (!%p152_p3), %s735_s12, 1  ;;  %v713_v0 = vld [vmem:[%s875_s1] sm:$0xff] (!%p152_p3)   ;;  %v745_v1 = vmov (!%p152_p3), 0.0   ;;  %v714_v2 = vld [vmem:[%s875_s1 + $0x8] sm:$0xff] (!%p152_p3)   ;;  %v715_v3 = vld [vmem:[%s875_s1 + $0x10] sm:$0xff] (!%p152_p3)   ;;  %s746_s26 = smov (!%p152_p3), 64   ;;  %v396_v62 = vlaneseq (!%p152_p3) }
   0x7   : > { %155 = sbr.rel (%p152_p3) target bundleno = 384 (0x180), region = 32  ;;  %650 = vmatprep.subr.bf16.mxu0 (!%p152_p3), %v745_v1  ;;  %v716_v8 = vld [vmem:[%s875_s1 + $0x18] sm:$0xff] (!%p152_p3)   ;;  %v717_v16 = vld [vmem:[%s875_s1 + $0x20] sm:$0xff] (!%p152_p3)   ;;  %s747_s4 = smov (!%p152_p3), 32   ;;  %v718_v42 = vld [vmem:[%s875_s1 + $0x28] sm:$0xff] (!%p152_p3)   ;;  %vm748_vm0 = vmmov (!%p152_p3), 0  }
   0x8   : > { %651 = vmatpush3.bf16.msra.mxu0 (!%p152_p3), %v713_v0  ;;  %v719_v49 = vld [vmem:[%s875_s1 + $0x30] sm:$0xff] (!%p152_p3)   ;;  %666 = vmatprep.mubr.msk.bf16.mxu0 (!%p152_p3), %vm748_vm0, %v745_v1  ;;  %s749_s9 = smov (!%p152_p3), 96   ;;  %v720_v52 = vld [vmem:[%s875_s1 + $0x38] sm:$0xff] (!%p152_p3)   ;;  %vm333_vm1 = vcmask (!%p152_p3), 261120   ;;  %v750_v0 = vmov (!%p152_p3), 1983009808  }
   0x9   : > { %652 = vmatprep.subr.bf16.mxu0 (!%p152_p3), %v745_v1  ;;  %vm346_vm2 = vcmask (!%p152_p3), 523264   ;;  %vm355_vm3 = vcmask (!%p152_p3), 785408  }
   0xc   : > { %653 = vmatpush3.bf16.msra.mxu0 (!%p152_p3), %v714_v2  ;;  %v394_v2 = vunpack.c.l.s4 (!%p152_p3), %v750_v0 }
   0xd   : > { %654 = vmatprep.subr.bf16.mxu0 (!%p152_p3), %v745_v1 }
   0xe   : > { %s883_s12 = smov (!%p179_p4, %s735_s12), 1 }
   0xf   : > { %s670_s20 = smul.u32 20, %s883_s12  ;;  %s640_s18 = sshll.u32 %s883_s12, 3 }
  0x10   : > { %655 = vmatpush3.bf16.msra.mxu0 %v715_v3  ;;  %s192_s21 = scalar_lea.vmem %s877_s3, %s640_s18 }
  0x11   : > { %s806_s25 = scalar_lea.vmem %s874_s0, %s670_s20  ;;  %656 = vmatprep.subr.bf16.mxu0 %v745_v1 }
  0x12   : > { %v701_v4 = vld [vmem:[%s806_s25 + $0x8] ss:$0 sps:$4 sm:$0x33]   ;;  %v702_v5 = vld [vmem:[%s806_s25 + $0x4] ss:$0 sps:$4 sm:$0x33]  }
  0x13   : > { %279 = vrot.lane.b32.xlu1 %v701_v4, %s746_s26  ;;  %v703_v6 = vld [vmem:[%s806_s25 + $0x10] ss:$0 sps:$4 sm:$0x33]   ;;  %277 = vrot.lane.b32.xlu0 %v702_v5, %s746_s26  ;;  %v704_v7 = vld [vmem:[%s806_s25 + $0xc] ss:$0 sps:$4 sm:$0x33]  }
  0x14   : > { %v705_v9 = vld [vmem:[%s806_s25 + $0x8] ss:$0 sps:$4 sm:$0x77]   ;;  %v706_v10 = vld [vmem:[%s806_s25] ss:$0 sps:$4 sm:$0x77]   ;;  %657 = vmatpush3.bf16.msra.mxu0 %v716_v8 }
  0x15   : > { %v244_v11 = vshrl.u32 %v705_v9, 16  ;;  %v246_v12 = vshll.u32 %v705_v9, 16  ;;  %v230_v13 = vshrl.u32 %v706_v10, 16  ;;  %v232_v14 = vshll.u32 %v706_v10, 16  ;;  %658 = vmatprep.subr.bf16.mxu0 %v745_v1  ;;  %v198_v59 = vld [vmem:[%s806_s25] sm:$0x3] }
  0x16   : > { %v707_v15 = vld [vmem:[%s806_s25 + $0xc] ss:$0 sps:$4 sm:$0x77]   ;;  %v708_v18 = vld [vmem:[%s806_s25 + $0x4] ss:$0 sps:$4 sm:$0x77]   ;;  %v395_v10 = vunpack.c.0.s8 %v394_v2 }
  0x17   : > { %283 = vrot.lane.b32.xlu1 %v703_v6, %s746_s26  ;;  %281 = vrot.lane.b32.xlu0 %v704_v7, %s746_s26  ;;  %v248_v17 = vrot.slane %v246_v12, 1  ;;  %v234_v19 = vrot.slane %v232_v14, 1  ;;  %v251_v20 = vshrl.u32 %v707_v15, 16  ;;  %v253_v21 = vshll.u32 %v707_v15, 16  ;;  %v199_v60 = vld [vmem:[%s806_s25 + $0x4] sm:$0x3] }
  0x18   : > { %v709_v22 = vld [vmem:[%s806_s25 + $0x8] ss:$0 sps:$4 sm:$0x77]   ;;  %v237_v24 = vshrl.u32 %v708_v18, 16  ;;  %v239_v25 = vshll.u32 %v708_v18, 16  ;;  %659 = vmatpush3.bf16.msra.mxu0 %v717_v16  ;;  %v397_v7 = vshrl.u32 %v396_v62, 7 }
  0x19   : > { %v249_v23 = vor.u32 %v248_v17, %v244_v11  ;;  %v235_v26 = vor.u32 %v234_v19, %v230_v13  ;;  %v255_v27 = vrot.slane %v253_v21, 1  ;;  %v305_v28 = vshrl.u32 %v709_v22, 16  ;;  %v710_v30 = vld [vmem:[%s806_s25 + $0x4] ss:$0 sps:$4 sm:$0x77]   ;;  %660 = vmatprep.subr.bf16.mxu0 %v745_v1 }
  0x1a   : > { %v307_v29 = vshll.u32 %v709_v22, 16  ;;  %v241_v31 = vrot.slane %v239_v25, 1  ;;  %v711_v32 = vld [vmem:[%s806_s25 + $0x10] ss:$0 sps:$4 sm:$0x77]   ;;  %v298_v35 = vshrl.u32 %v710_v30, 16  ;;  %v398_v18 = vsub.s32 %v395_v10, %v397_v7 }
  0x1b   : > { %261 = vrot.lane.b32.xlu1 %v249_v23, %s747_s4  ;;  %257 = vrot.lane.b32.xlu0 %v235_v26, %s747_s4  ;;  %v256_v33 = vor.u32 %v255_v27, %v251_v20  ;;  %v300_v36 = vshll.u32 %v710_v30, 16  ;;  %v712_v37 = vld [vmem:[%s806_s25 + $0xc] ss:$0 sps:$4 sm:$0x77]   ;;  %v321_v39 = vshll.u32 %v711_v32, 16  ;;  %v319_v44 = vshrl.u32 %v711_v32, 16 }
  0x1c   : > { %v309_v34 = vrot.slane %v307_v29, 1  ;;  %v242_v38 = vor.u32 %v241_v31, %v237_v24  ;;  %v314_v41 = vshll.u32 %v712_v37, 16  ;;  %v312_v46 = vshrl.u32 %v712_v37, 16  ;;  %661 = vmatpush3.bf16.msra.mxu0 %v718_v42  ;;  %v201_v3 = vld [vmem:[%s806_s25 + $0xc] sm:$0x3] }
  0x1d   : > { %v302_v40 = vrot.slane %v300_v36, 1  ;;  %v323_v45 = vrot.slane %v321_v39, 1  ;;  %662 = vmatprep.subr.bf16.mxu0 %v745_v1  ;;  %v200_v5 = vld [vmem:[%s806_s25 + $0x8] sm:$0x3] }
  0x1e   : > { %v310_v43 = vor.u32 %v309_v34, %v305_v28  ;;  %v316_v48 = vrot.slane %v314_v41, 1  ;;  %v629_v28 = vld [vmem:[%s876_s2] ss:$0 sm:$0xff] }
  0x1f   : > { %263 = vrot.lane.b32.xlu1 %v256_v33, %s747_s4  ;;  %259 = vrot.lane.b32.xlu0 %v242_v38, %s747_s4  ;;  %v303_v47 = vor.u32 %v302_v40, %v298_v35  ;;  %v324_v50 = vor.u32 %v323_v45, %v319_v44 }
  0x20   : > { %v317_v51 = vor.u32 %v316_v48, %v312_v46  ;;  %663 = vmatpush3.bf16.msra.mxu0 %v719_v49 }
  0x21   : > { %664 = vmatprep.subr.bf16.mxu0 %v745_v1 }
  0x23   : > { %327 = vrot.lane.b32.xlu1 %v310_v43, %s749_s9  ;;  %325 = vrot.lane.b32.xlu0 %v303_v47, %s749_s9 }
  0x24   : > { %665 = vmatpush3.bf16.msra.mxu0 %v720_v52 }
  0x27   : > { %331 = vrot.lane.b32.xlu1 %v324_v50, %s749_s9  ;;  %329 = vrot.lane.b32.xlu0 %v317_v51, %s749_s9 }
  0x85   : > { %v280_v53 = vpop.permute.xlu1 %279  ;;  %v278_v54 = vpop.permute.xlu0 %277 }
  0x89   : > { %v284_v55 = vpop.permute.xlu1 %283  ;;  %v282_v56 = vpop.permute.xlu0 %281 }
  0x8d   : > { %v262_v57 = vpop.permute.xlu1 %261  ;;  %v258_v58 = vpop.permute.xlu0 %257 }
  0x8e   : > { %v336_v1 = vsel %vm333_vm1, %v198_v59, %v258_v58  ;;  %v342_v13 = vsel %vm333_vm1, %v200_v5, %v262_v57 }
  0x8f   : > { %v348_v12 = vsel %vm346_vm2, %v336_v1, %v278_v54  ;;  %v352_v22 = vsel %vm346_vm2, %v342_v13, %v282_v56 }
  0x91   : > { %v264_v61 = vpop.permute.xlu1 %263  ;;  %v260_v63 = vpop.permute.xlu0 %259 }
  0x92   : > { %v339_v4 = vsel %vm333_vm1, %v199_v60, %v260_v63  ;;  %v345_v8 = vsel %vm333_vm1, %v201_v3, %v264_v61 }
  0x93   : > { %v350_v9 = vsel %vm346_vm2, %v339_v4, %v280_v53  ;;  %v354_v17 = vsel %vm346_vm2, %v345_v8, %v284_v55 }
  0x95   : > { %v328_v6 = vpop.permute.xlu1 %327  ;;  %v326_v11 = vpop.permute.xlu0 %325 }
  0x96   : > { %v359_v14 = vsel %vm355_vm3, %v350_v9, %v328_v6  ;;  %v357_v15 = vsel %vm355_vm3, %v348_v12, %v326_v11 }
  0x97   : > { %v391_v19 = vcombine.low %v357_v15, %v359_v14 }
  0x99   : > { %v332_v16 = vpop.permute.xlu1 %331  ;;  %v330_v21 = vpop.permute.xlu0 %329  ;;  %v399_v25 = vrot.slane %v391_v19, %v398_v18 }
  0x9a   : > { %v363_v20 = vsel %vm355_vm3, %v354_v17, %v332_v16  ;;  %v361_v23 = vsel %vm355_vm3, %v352_v22, %v330_v21 }
  0x9b   : > { %v392_v24 = vcombine.low %v361_v23, %v363_v20 }
  0x9d   : > { %v406_v26 = vrot.slane %v392_v24, %v398_v18 }
  0x9f   : > { %v407_v27 = vcombine.low %v399_v25, %v406_v26 }
  0xa1   : > { %667 = vmatmul.mubr.bf16.vlgmr.msra.gmra.mrb[0].mxu0 %v407_v27 }
 0x174   : > { %v491_v29 = vpop.f32.mrb[0].mxu0 }
 0x175   : > { %v492_v30 = vadd.f32 %v629_v28, %v491_v29  ;;  %v668_v31 = vpop.f32.mrb[1].mxu0 }
 0x176   : > { %v494_v32 = vpop.f32.mrb[2].mxu0 }
 0x177   : > { %v498_v33 = vmax.f32 %v492_v30, 0.0  ;;  %v495_v34 = vadd.f32 %v629_v28, %v494_v32  ;;  %v669_v35 = vpop.f32.mrb[3].mxu0 }
 0x179   : > { %v502_v36 = vcombine.high %v498_v33, %v498_v33  ;;  %v506_v37 = vpack.c.bf16 %v498_v33, %v498_v33  ;;  %v499_v38 = vmax.f32 %v495_v34, 0.0 }
 0x17b   : > { %v507_v39 = vpack.c.bf16 %v502_v36, %v502_v36  ;;  %510 = vst [vmem:[%s192_s21] sm:$0x3] %v506_v37  ;;  %v503_v40 = vcombine.high %v499_v38, %v499_v38  ;;  %v508_v41 = vpack.c.bf16 %v499_v38, %v499_v38 }
 0x17d   : > { %511 = vst [vmem:[%s192_s21 + $0x2] sm:$0x3] %v507_v39  ;;  %v509_v42 = vpack.c.bf16 %v503_v40, %v503_v40  ;;  %512 = vst [vmem:[%s192_s21 + $0x4] sm:$0x3] %v508_v41 }
 0x17f   : > { %513 = vst [vmem:[%s192_s21 + $0x6] sm:$0x3] %v509_v42 }
 0x180 PF: > { %s13_s14 = sadd.s32 1, %s743_s14   ;;  %s878_s12 = smov %s739_s13 }
 0x181   : > { %p10_p5 = scmp.ge.s32.totalorder %s13_s14, 4   ;;  %s879_s13 = smov %s881_s15 }
 0x183   :  { %12 = sbr.rel (!%p10_p5) target bundleno = 2 (0x2), region = 64 }

// kernel: initial_layer_forward.7
= control target key start
LH: loop header
LB: loop body
LE: loop exit
PB: predicated region body
PF: predicated region fallthrough
CT: control target
= control target key end

     0   :  { %s766_s12 = smov 0   ;;  %s768_s13 = smov 0   ;;  %s867_s0 = inlined_call_operand.vmem [shape: bf16[2,3,3,64], index: 0, kind: input, shape index: {}]   ;;  %s868_s1 = inlined_call_operand.vmem [shape: bf16[256,128], index: 1, kind: input, shape index: {}]   ;;  %s869_s2 = inlined_call_operand.vmem [shape: f32[1,128], index: 2, kind: input, shape index: {}]   ;;  %s870_s3 = inlined_call_operand.vmem [shape: bf16[2,2,2,128], index: 3, kind: output, shape index: {}]  }
   0x1   :  { %s770_s14 = smov 0  }
   0x2 LB: > { %s25_s15 = sadd.s32 1, %s737_s13  ;;  %p623_p0 = scmp.ge.s32.totalorder %s741_s14, 1  ;;  %s741_s14 = sphi %s770_s14, %s13_s14   ;;  %s737_s13 = sphi %s768_s13, %s872_s13   ;;  %s733_s12 = sphi %s766_s12, %s871_s12  }
   0x3   : > { %p27_p1 = scmp.ge.s32.totalorder %s25_s15, 2  ;;  %p151_p2 = scmp.lt.s32.totalorder %s741_s14, 3 }
   0x5   : > { %s874_s15 = smov (%p27_p1, %s25_s15), 0  ;;  %p152_p3 = pnand %p623_p0, %p151_p2 }
   0x6   : > { %p178_p4 = scmp.lt.s32.totalorder (!%p152_p3), %s733_s12, 1  ;;  %v703_v0 = vld [vmem:[%s868_s1 + $0x40] sm:$0xff] (!%p152_p3)   ;;  %v705_v2 = vld [vmem:[%s868_s1 + $0x48] sm:$0xff] (!%p152_p3)   ;;  %v707_v4 = vld [vmem:[%s868_s1 + $0x50] sm:$0xff] (!%p152_p3)   ;;  %s743_s11 = smov (!%p152_p3), 64   ;;  %v296_v33 = vlaneseq (!%p152_p3)  ;;  %vm275_vm0 = vcmask (!%p152_p3), 523264  }
   0x7   : > { %155 = sbr.rel (%p152_p3) target bundleno = 387 (0x183), region = 32  ;;  %v704_v1 = vld [vmem:[%s868_s1] sm:$0xff] (!%p152_p3)   ;;  %653 = vmatprep.subr.bf16.mxu0 (!%p152_p3), %v703_v0  ;;  %v706_v3 = vld [vmem:[%s868_s1 + $0x8] sm:$0xff] (!%p152_p3)   ;;  %v708_v6 = vld [vmem:[%s868_s1 + $0x10] sm:$0xff] (!%p152_p3)   ;;  %v744_v31 = vmov (!%p152_p3), 1966171168  }
   0x8   : > { %654 = vmatpush3.bf16.msra.mxu0 (!%p152_p3), %v704_v1  ;;  %v709_v7 = vld [vmem:[%s868_s1 + $0x58] sm:$0xff] (!%p152_p3)   ;;  %v711_v22 = vld [vmem:[%s868_s1 + $0x60] sm:$0xff] (!%p152_p3)   ;;  %v713_v25 = vld [vmem:[%s868_s1 + $0x68] sm:$0xff] (!%p152_p3)   ;;  %v294_v32 = vunpack.c.l.s4 (!%p152_p3), %v744_v31  ;;  %v297_v36 = vshrl.u32 (!%p152_p3), %v296_v33, 7  ;;  %v745_v60 = vmov (!%p152_p3), 1983009808  }
   0x9   : > { %655 = vmatprep.subr.bf16.mxu0 (!%p152_p3), %v705_v2  ;;  %v710_v20 = vld [vmem:[%s868_s1 + $0x18] sm:$0xff] (!%p152_p3)   ;;  %v712_v24 = vld [vmem:[%s868_s1 + $0x20] sm:$0xff] (!%p152_p3)   ;;  %v714_v26 = vld [vmem:[%s868_s1 + $0x28] sm:$0xff] (!%p152_p3)   ;;  %v525_v61 = vunpack.c.l.s4 (!%p152_p3), %v745_v60 }
   0xa   : > { %v715_v27 = vld [vmem:[%s868_s1 + $0x70] sm:$0xff] (!%p152_p3)   ;;  %v717_v29 = vld [vmem:[%s868_s1 + $0x78] sm:$0xff] (!%p152_p3)   ;;  %v295_v35 = vunpack.c.0.s8 (!%p152_p3), %v294_v32  ;;  %v634_v0 = vld [vmem:[%s869_s2] ss:$0 sm:$0xff] (!%p152_p3) }
   0xb   : > { %v716_v28 = vld [vmem:[%s868_s1 + $0x30] sm:$0xff] (!%p152_p3)   ;;  %v718_v30 = vld [vmem:[%s868_s1 + $0x38] sm:$0xff] (!%p152_p3)   ;;  %v526_v63 = vunpack.c.0.s8 (!%p152_p3), %v525_v61 }
   0xc   : > { %656 = vmatpush3.bf16.msra.mxu0 (!%p152_p3), %v706_v3  ;;  %v298_v43 = vsub.s32 (!%p152_p3), %v295_v35, %v297_v36 }
   0xd   : > { %657 = vmatprep.subr.bf16.mxu0 (!%p152_p3), %v707_v4 }
   0xe   : > { %s876_s12 = smov (!%p178_p4, %s733_s12), 1 }
   0xf   : > { %s675_s22 = smul.u32 6, %s876_s12  ;;  %s625_s5 = sshll.u32 %s876_s12, 1 }
  0x10   : > { %658 = vmatpush3.bf16.msra.mxu0 %v708_v6  ;;  %v529_v6 = vsub.s32 %v526_v63, %v297_v36  ;;  %s190_s8 = scalar_lea.vmem %s870_s3, %s625_s5 }
  0x11   : > { %s805_s29 = scalar_lea.vmem %s867_s0, %s675_s22  ;;  %659 = vmatprep.subr.bf16.mxu0 %v709_v7 }
  0x12   : > { %v632_v5 = vld.sshfl [vmem:[%s805_s29 + $0x2] sm:$0x3 pattern:$0x76325410]  ;;  %v196_v37 = vld [vmem:[%s805_s29] sm:$0x1] }
  0x13   : > { %v258_v8 = vshrl.u32 %v632_v5, 16  ;;  %v260_v9 = vshll.u32 %v632_v5, 16  ;;  %v630_v10 = vld.sshfl [vmem:[%s805_s29] sm:$0x3 pattern:$0x76325410] }
  0x14   : > { %v224_v11 = vshrl.u32 %v630_v10, 16  ;;  %v226_v12 = vshll.u32 %v630_v10, 16  ;;  %v633_v13 = vld.sshfl [vmem:[%s805_s29 + $0x4] sm:$0x3 pattern:$0x76325410]  ;;  %660 = vmatpush3.bf16.msra.mxu0 %v710_v20 }
  0x15   : > { %v262_v14 = vrot.slane %v260_v9, 1  ;;  %v265_v15 = vshrl.u32 %v633_v13, 16  ;;  %v267_v16 = vshll.u32 %v633_v13, 16  ;;  %661 = vmatprep.subr.bf16.mxu0 %v711_v22  ;;  %v626_v34 = vld [vmem:[%s805_s29 + $0x2] sm:$0x1] }
  0x16   : > { %v228_v17 = vrot.slane %v226_v12, 1  ;;  %v627_v42 = vld [vmem:[%s805_s29 + $0x4] sm:$0x1]  ;;  %v197_v45 = vld [vmem:[%s805_s29 + $0x2] sm:$0x1] }
  0x17   : > { %v263_v18 = vor.u32 %v262_v14, %v258_v8  ;;  %v269_v19 = vrot.slane %v267_v16, 1 }
  0x18   : > { %v229_v21 = vor.u32 %v228_v17, %v224_v11  ;;  %662 = vmatpush3.bf16.msra.mxu0 %v712_v24 }
  0x19   : > { %271 = vrot.lane.b32.xlu1 %v263_v18, %s743_s11  ;;  %v270_v23 = vor.u32 %v269_v19, %v265_v15  ;;  %663 = vmatprep.subr.bf16.mxu0 %v713_v25 }
  0x1a   : > { %237 = vrot.lane.b32.xlu0 %v229_v21, %s743_s11 }
  0x1c   : > { %664 = vmatpush3.bf16.msra.mxu0 %v714_v26 }
  0x1d   : > { %273 = vrot.lane.b32.xlu1 %v270_v23, %s743_s11  ;;  %665 = vmatprep.subr.bf16.mxu0 %v715_v27 }
  0x1e   : > { %239 = vrot.lane.b32.xlu0 %v263_v18, %s743_s11 }
  0x20   : > { %666 = vmatpush3.bf16.msra.mxu0 %v716_v28 }
  0x21   : > { %667 = vmatprep.subr.bf16.mxu0 %v717_v29 }
  0x24   : > { %668 = vmatpush3.bf16.msra.mxu0 %v718_v30 }
  0x8b   : > { %v272_v38 = vpop.permute.xlu1 %271 }
  0x8c   : > { %v284_v39 = vsel %vm275_vm0, %v626_v34, %v272_v38  ;;  %v238_v40 = vpop.permute.xlu0 %237 }
  0x8d   : > { %v278_v41 = vsel %vm275_vm0, %v196_v37, %v238_v40 }
  0x8e   : > { %v292_v44 = vcombine.low %v278_v41, %v284_v39 }
  0x8f   : > { %v274_v46 = vpop.permute.xlu1 %273 }
  0x90   : > { %v287_v47 = vsel %vm275_vm0, %v627_v42, %v274_v46  ;;  %v240_v48 = vpop.permute.xlu0 %239  ;;  %v299_v50 = vrot.slane %v292_v44, %v298_v43 }
  0x91   : > { %v281_v49 = vsel %vm275_vm0, %v197_v45, %v240_v48 }
  0x92   : > { %v307_v51 = vcombine.low %v281_v49, %v287_v47  ;;  %v306_v53 = vrot.slane %v299_v50, %v298_v43 }
  0x94   : > { %v314_v52 = vrot.slane %v307_v51, %v298_v43 }
  0x96   : > { %v321_v54 = vrot.slane %v314_v52, %v298_v43 }
  0x98   : > { %v361_v55 = vcombine.low %v306_v53, %v321_v54 }
  0x9a   : > { %v368_v56 = vrot.slane %v361_v55, %v298_v43 }
  0x9c   : > { %v369_v57 = vcombine.high %v368_v56, %v368_v56  ;;  %v376_v59 = vrot.slane %v368_v56, %v298_v43 }
  0x9e   : > { %v383_v58 = vrot.slane %v369_v57, %v298_v43 }
  0xa0   : > { %514 = vmatprep.mubr.bf16.mxu0 %v383_v58 }
  0xa1   : > { %515 = vmatmul.mubr.bf16.vlgmr.msra.gmra.mrb[0].mxu0 %v376_v59 }
 0x174   : > { %v669_v62 = vpop.f32.mrb[0].mxu0 }
 0x175   : > { %v670_v1 = vpop.f32.mrb[1].mxu0 }
 0x176   : > { %v671_v2 = vadd.f32 %v670_v1, %v669_v62  ;;  %v672_v3 = vpop.f32.mrb[2].mxu0 }
 0x177   : > { %v673_v4 = vpop.f32.mrb[3].mxu0 }
 0x178   : > { %v517_v5 = vadd.f32 %v671_v2, %v634_v0 }
 0x17a   : > { %v522_v7 = vmax.f32 %v517_v5, 0.0 }
 0x17c   : > { %v530_v8 = vrot.slane %v522_v7, %v529_v6 }
 0x17e   : > { %v531_v9 = vcombine.high %v530_v8, %v530_v8  ;;  %v534_v10 = vpack.c.bf16 %v530_v8, %v530_v8 }
 0x180   : > { %v535_v11 = vpack.c.bf16 %v531_v9, %v531_v9  ;;  %536 = vst [vmem:[%s190_s8] sm:$0x1] %v534_v10 }
 0x182   : > { %537 = vst [vmem:[%s190_s8 + $0x1] sm:$0x1] %v535_v11 }
 0x183 PF: > { %s13_s14 = sadd.s32 1, %s741_s14   ;;  %s871_s12 = smov %s737_s13 }
 0x184   : > { %p10_p5 = scmp.ge.s32.totalorder %s13_s14, 4   ;;  %s872_s13 = smov %s874_s15 }
 0x186   :  { %12 = sbr.rel (!%p10_p5) target bundleno = 2 (0x2), region = 64 }

// kernel: initial_layer_forward.4
= control target key start
LH: loop header
LB: loop body
LE: loop exit
PB: predicated region body
PF: predicated region fallthrough
CT: control target
= control target key end

     0   :  { %s6307_s12 = smov 0   ;;  %s6309_s13 = smov 0   ;;  %s8943_s0 = inlined_call_operand.vmem [shape: bf16[2,19,19,12], index: 0, kind: input, shape index: {}]   ;;  %s8944_s1 = inlined_call_operand.vmem [shape: bf16[256,128], index: 1, kind: input, shape index: {}]   ;;  %s8945_s2 = inlined_call_operand.vmem [shape: f32[1,128], index: 2, kind: input, shape index: {}]   ;;  %s8946_s3 = inlined_call_operand.vmem [shape: bf16[2,16,16,128], index: 3, kind: output, shape index: {}]  }
   0x1   :  { %s6311_s14 = smov 0  }
   0x2 LB: > { %s25_s15 = sadd.s32 1, %s6266_s13  ;;  %p5098_p0 = scmp.ge.s32.totalorder %s6270_s14, 1  ;;  %s6270_s14 = sphi %s6311_s14, %s13_s14   ;;  %s6266_s13 = sphi %s6309_s13, %s9096_s13   ;;  %s6262_s12 = sphi %s6307_s12, %s9095_s12  }
   0x3   : > { %p27_p1 = scmp.ge.s32.totalorder %s25_s15, 2  ;;  %p151_p2 = scmp.lt.s32.totalorder %s6270_s14, 3 }
   0x5   : > { %s9098_s15 = smov (%p27_p1, %s25_s15), 0  ;;  %p152_p3 = pnand %p5098_p0, %p151_p2 }
   0x7   : > { %155 = sbr.rel (%p152_p3) target bundleno = 852 (0x354), region = 32 }
   0xe   : > { %p180_p4 = scmp.lt.s32.totalorder %s6262_s12, 1  ;;  %vm661_vm0 = vsmask.f32 7424  ;;  %s6272_s20 = smov 12   ;;  %vm934_vm1 = vcmask 1046528   ;;  %vm3960_vm3 = vcmask 97280  }
   0xf   : > { %s6273_s21 = smov 24   ;;  %vm1063_vm2 = vsmask.f32 6400  ;;  %s6274_s22 = smov 36   ;;  %vm8971_vm4 = vcmask 195584   ;;  %vm8970_vm5 = vcmask 293888  }
  0x10   : > { %s9100_s12 = smov (!%p180_p4, %s6262_s12), 1  ;;  %s6275_s23 = smov 48   ;;  %vm8969_vm6 = vcmask 392192   ;;  %vm4092_vm7 = vcmask 490496   ;;  %vm4125_vm8 = vcmask 588800   ;;  %vm4306_vm9 = vcmask 31744  }
  0x11   : > { %s5921_s16 = smul.u32 228, %s9100_s12  ;;  %s6276_s24 = smov 60   ;;  %vm4158_vm10 = vcmask 687104   ;;  %vm4339_vm11 = vcmask 130048   ;;  %vm4191_vm12 = vcmask 785408   ;;  %vm4372_vm13 = vcmask 228352  }
  0x12   : > { %s6277_s29 = smov 120   ;;  %s6278_s5 = smov 4   ;;  %vm4224_vm14 = vcmask 883712   ;;  %vm4405_vm15 = vcmask 326656  }
  0x13   : > { %s6331_s19 = scalar_lea.vmem %s8943_s0, %s5921_s16  ;;  %s6279_s10 = smov 72  }
  0x14   : > { %v205_v0 = vld [vmem:[%s6331_s19 + $0x18] sm:$0xf]  ;;  %v6335_v1 = vld [vmem:[%s6331_s19 + $0x1c] sm:$0xf]  ;;  %v201_v4 = vld [vmem:[%s6331_s19] sm:$0xf] }
  0x15   : > { %v6338_v2 = vcombine.low %v205_v0, %v6335_v1  ;;  %v6341_v3 = vld [vmem:[%s6331_s19 + $0x20] ss:$0 sps:$4 sm:$0x11]   ;;  %v6345_v5 = vld [vmem:[%s6331_s19 + $0x4] sm:$0xf]  ;;  %s6282_s27 = smov 28  }
  0x16   : > { %v207_v6 = vld [vmem:[%s6331_s19 + $0x24] sm:$0xf]  ;;  %v694_v9 = vshll.u32 %v6341_v3, 16  ;;  %v6352_v10 = vcombine.low %v201_v4, %v6345_v5  ;;  %v6355_v11 = vld [vmem:[%s6331_s19 + $0x8] ss:$0 sps:$4 sm:$0x11]  }
  0x17   : > { %v687_v7 = vshrl.u32 %v6338_v2, 16  ;;  %v689_v8 = vshll.u32 %v6338_v2, 16  ;;  %v6358_v12 = vld [vmem:[%s6331_s19 + $0x28] sm:$0xf]  ;;  %v203_v13 = vld [vmem:[%s6331_s19 + $0xc] sm:$0xf] }
  0x18   : > { %8975 = vst [vmem:[#allocation2_spill] sm:$0xff] %v6352_v10  ;;  %v696_v15 = vrot.slane %v694_v9, 1  ;;  %v663_v16 = vshrl.u32 %v6352_v10, 16  ;;  %v665_v17 = vshll.u32 %v6352_v10, 16  ;;  %v6364_v18 = vld [vmem:[%s6331_s19 + $0x10] sm:$0xf]  ;;  %v6368_v20 = vcombine.low %v207_v6, %v6358_v12 }
  0x19   : > { %v691_v14 = vrot.slane %v689_v8, 1  ;;  %v670_v19 = vshll.u32 %v6355_v11, 16  ;;  %v6371_v21 = vld [vmem:[%s6331_s19 + $0x2c] ss:$0 sps:$4 sm:$0x11]   ;;  %v6374_v22 = vcombine.low %v203_v13, %v6364_v18  ;;  %s6283_s7 = smov 96  }
  0x1a   : > { %v667_v24 = vrot.slane %v665_v17, 1  ;;  %v6377_v25 = vld [vmem:[%s6331_s19 + $0x14] ss:$0 sps:$4 sm:$0x11]   ;;  %v211_v26 = vld [vmem:[%s6331_s19 + $0x3c] sm:$0xf] }
  0x1b   : > { %8976 = vst [vmem:[#allocation3_spill] sm:$0xff] %v6374_v22  ;;  %v692_v23 = vor.u32 %v691_v14, %v687_v7  ;;  %v672_v27 = vrot.slane %v670_v19, 1  ;;  %v699_v28 = vshrl.u32 %v6368_v20, 16  ;;  %v701_v29 = vshll.u32 %v6368_v20, 16  ;;  %v6384_v31 = vld [vmem:[%s6331_s19 + $0x40] sm:$0xf] }
  0x1c   : > { %v706_v30 = vshll.u32 %v6371_v21, 16  ;;  %v668_v33 = vor.u32 %v667_v24, %v663_v16  ;;  %v675_v34 = vshrl.u32 %v6374_v22, 16  ;;  %v677_v35 = vshll.u32 %v6374_v22, 16  ;;  %v209_v36 = vld [vmem:[%s6331_s19 + $0x30] sm:$0xf]  ;;  %s6284_s17 = smov 40  }
  0x1d   : > { %v697_v32 = vsel %vm661_vm0, %v692_v23, %v696_v15  ;;  %v703_v37 = vrot.slane %v701_v29, 1  ;;  %v682_v39 = vshll.u32 %v6377_v25, 16  ;;  %v6393_v40 = vcombine.low %v211_v26, %v6384_v31  ;;  %v6396_v41 = vld [vmem:[%s6331_s19 + $0x44] ss:$0 sps:$4 sm:$0x11]   ;;  %s6285_s26 = smov 108  }
  0x1e   : > { %858 = vrot.lane.b32.xlu1 %v697_v32, %s6272_s20  ;;  %v708_v38 = vrot.slane %v706_v30, 1  ;;  %v673_v42 = vsel %vm661_vm0, %v668_v33, %v672_v27  ;;  %v679_v43 = vrot.slane %v677_v35, 1  ;;  %v6400_v44 = vld [vmem:[%s6331_s19 + $0x34] sm:$0xf]  ;;  %v730_v51 = vshll.u32 %v6396_v41, 16  ;;  %s6286_s28 = smov 52  }
  0x1f   : > { %854 = vrot.lane.b32.xlu0 %v673_v42, %s6272_s20  ;;  %v704_v45 = vor.u32 %v703_v37, %v699_v28  ;;  %v684_v46 = vrot.slane %v682_v39, 1  ;;  %v723_v47 = vshrl.u32 %v6393_v40, 16  ;;  %v725_v48 = vshll.u32 %v6393_v40, 16  ;;  %v6406_v49 = vld [vmem:[%s6331_s19 + $0x38] ss:$0 sps:$4 sm:$0x11]  }
  0x20   : > { %v680_v50 = vor.u32 %v679_v43, %v675_v34  ;;  %v6410_v52 = vcombine.low %v209_v36, %v6400_v44  ;;  %v215_v53 = vld [vmem:[%s6331_s19 + $0x54] sm:$0xf]  ;;  %v6414_v54 = vld [vmem:[%s6331_s19 + $0x58] sm:$0xf]  ;;  %v718_v57 = vshll.u32 %v6406_v49, 16  ;;  %v732_v61 = vrot.slane %v730_v51, 1 }
  0x21   : > { %v709_v55 = vsel %vm661_vm0, %v704_v45, %v708_v38  ;;  %v727_v56 = vrot.slane %v725_v48, 1  ;;  %v6419_v58 = vcombine.low %v215_v53, %v6414_v54  ;;  %v213_v59 = vld [vmem:[%s6331_s19 + $0x48] sm:$0xf]  ;;  %v6427_v0 = vld [vmem:[%s6331_s19 + $0x5c] ss:$0 sps:$4 sm:$0x11]  }
  0x22   : > { %860 = vrot.lane.b32.xlu1 %v709_v55, %s6272_s20  ;;  %v685_v60 = vsel %vm661_vm0, %v680_v50, %v684_v46  ;;  %v711_v62 = vshrl.u32 %v6410_v52, 16  ;;  %v713_v63 = vshll.u32 %v6410_v52, 16  ;;  %v720_v6 = vrot.slane %v718_v57, 1  ;;  %v6433_v9 = vld [vmem:[%s6331_s19 + $0x4c] sm:$0xf] }
  0x23   : > { %856 = vrot.lane.b32.xlu0 %v685_v60, %s6272_s20  ;;  %v728_v4 = vor.u32 %v727_v56, %v723_v47  ;;  %v747_v7 = vshrl.u32 %v6419_v58, 16  ;;  %v749_v8 = vshll.u32 %v6419_v58, 16  ;;  %v754_v14 = vshll.u32 %v6427_v0, 16  ;;  %v219_v16 = vld [vmem:[%s6331_s19 + $0x6c] sm:$0xf] }
  0x24   : > { %v715_v13 = vrot.slane %v713_v63, 1  ;;  %v6437_v15 = vcombine.low %v213_v59, %v6433_v9  ;;  %v6442_v23 = vld [vmem:[%s6331_s19 + $0x50] ss:$0 sps:$4 sm:$0x11]   ;;  %v217_v35 = vld [vmem:[%s6331_s19 + $0x60] sm:$0xf] }
  0x25   : > { %v733_v17 = vsel %vm661_vm0, %v728_v4, %v732_v61  ;;  %v751_v19 = vrot.slane %v749_v8, 1  ;;  %v6445_v24 = vld [vmem:[%s6331_s19 + $0x70] sm:$0xf]  ;;  %v756_v27 = vrot.slane %v754_v14, 1  ;;  %v742_v32 = vshll.u32 %v6442_v23, 16 }
  0x26   : > { %864 = vrot.lane.b32.xlu1 %v733_v17, %s6272_s20  ;;  %v716_v26 = vor.u32 %v715_v13, %v711_v62  ;;  %v735_v28 = vshrl.u32 %v6437_v15, 16  ;;  %v737_v29 = vshll.u32 %v6437_v15, 16  ;;  %v6452_v33 = vcombine.low %v219_v16, %v6445_v24  ;;  %v6455_v34 = vld [vmem:[%s6331_s19 + $0x74] ss:$0 sps:$4 sm:$0x11]  }
  0x27   : > { %v752_v30 = vor.u32 %v751_v19, %v747_v7  ;;  %v6460_v38 = vld [vmem:[%s6331_s19 + $0x64] sm:$0xf]  ;;  %v744_v42 = vrot.slane %v742_v32, 1  ;;  %v6467_v46 = vld [vmem:[%s6331_s19 + $0x68] ss:$0 sps:$4 sm:$0x11]  }
  0x28   : > { %8977 = vst [vmem:[#allocation4_spill] sm:$0xff] %v6452_v33  ;;  %v721_v36 = vsel %vm661_vm0, %v716_v26, %v720_v6  ;;  %v739_v37 = vrot.slane %v737_v29, 1  ;;  %v771_v43 = vshrl.u32 %v6452_v33, 16  ;;  %v773_v45 = vshll.u32 %v6452_v33, 16  ;;  %v223_v51 = vld [vmem:[%s6331_s19 + $0x84] sm:$0xf] }
  0x29   : > { %862 = vrot.lane.b32.xlu0 %v721_v36, %s6272_s20  ;;  %v757_v39 = vsel %vm661_vm0, %v752_v30, %v756_v27  ;;  %v778_v48 = vshll.u32 %v6455_v34, 16  ;;  %v6472_v50 = vcombine.low %v217_v35, %v6460_v38  ;;  %v6476_v53 = vld [vmem:[%s6331_s19 + $0x88] sm:$0xf]  ;;  %v766_v57 = vshll.u32 %v6467_v46, 16  ;;  %v221_v60 = vld [vmem:[%s6331_s19 + $0x78] sm:$0xf] }
  0x2a   : > { %868 = vrot.lane.b32.xlu1 %v757_v39, %s6272_s20  ;;  %v740_v47 = vor.u32 %v739_v37, %v735_v28  ;;  %v775_v56 = vrot.slane %v773_v45, 1  ;;  %v6481_v59 = vcombine.low %v223_v51, %v6476_v53  ;;  %v6488_v6 = vld [vmem:[%s6331_s19 + $0x8c] ss:$0 sps:$4 sm:$0x11]   ;;  %v6494_v16 = vld [vmem:[%s6331_s19 + $0x7c] sm:$0xf] }
  0x2b   : > { %8978 = vst [vmem:[#allocation5_spill] sm:$0xff] %v6472_v50  ;;  %v780_v62 = vrot.slane %v778_v48, 1  ;;  %v759_v63 = vshrl.u32 %v6472_v50, 16  ;;  %v761_v4 = vshll.u32 %v6472_v50, 16  ;;  %v768_v8 = vrot.slane %v766_v57, 1 }
  0x2c   : > { %v745_v61 = vsel %vm661_vm0, %v740_v47, %v744_v42  ;;  %v776_v7 = vor.u32 %v775_v56, %v771_v43  ;;  %v795_v13 = vshrl.u32 %v6481_v59, 16  ;;  %v797_v14 = vshll.u32 %v6481_v59, 16  ;;  %v227_v27 = vld [vmem:[%s6331_s19 + $0x9c] sm:$0xf]  ;;  %v6506_v32 = vld [vmem:[%s6331_s19 + $0xa0] sm:$0xf] }
  0x2d   : > { %866 = vrot.lane.b32.xlu0 %v745_v61, %s6272_s20  ;;  %v763_v17 = vrot.slane %v761_v4, 1  ;;  %v802_v19 = vshll.u32 %v6488_v6, 16  ;;  %v6498_v26 = vcombine.low %v221_v60, %v6494_v16  ;;  %v6503_v30 = vld [vmem:[%s6331_s19 + $0x80] ss:$0 sps:$4 sm:$0x11]   ;;  %v6513_v45 = vcombine.low %v227_v27, %v6506_v32 }
  0x2e   : > { %v781_v28 = vsel %vm661_vm0, %v776_v7, %v780_v62  ;;  %v799_v29 = vrot.slane %v797_v14, 1  ;;  %v790_v43 = vshll.u32 %v6503_v30, 16  ;;  %v6516_v47 = vld [vmem:[%s6331_s19 + $0xa4] ss:$0 sps:$4 sm:$0x11]  }
  0x2f   : > { %872 = vrot.lane.b32.xlu1 %v781_v28, %s6272_s20  ;;  %v764_v35 = vor.u32 %v763_v17, %v759_v63  ;;  %v804_v36 = vrot.slane %v802_v19, 1  ;;  %v783_v37 = vshrl.u32 %v6498_v26, 16  ;;  %v785_v39 = vshll.u32 %v6498_v26, 16  ;;  %v225_v48 = vld [vmem:[%s6331_s19 + $0x90] sm:$0xf] }
  0x30   : > { %v800_v42 = vor.u32 %v799_v29, %v795_v13  ;;  %v6521_v57 = vld [vmem:[%s6331_s19 + $0x94] sm:$0xf]  ;;  %v792_v62 = vrot.slane %v790_v43, 1  ;;  %v819_v63 = vshrl.u32 %v6513_v45, 16  ;;  %v821_v4 = vshll.u32 %v6513_v45, 16 }
  0x31   : > { %v769_v51 = vsel %vm661_vm0, %v764_v35, %v768_v8  ;;  %v787_v56 = vrot.slane %v785_v39, 1  ;;  %v6529_v7 = vld [vmem:[%s6331_s19 + $0x98] ss:$0 sps:$4 sm:$0x11]   ;;  %v826_v13 = vshll.u32 %v6516_v47, 16  ;;  %v6534_v14 = vcombine.low %v225_v48, %v6521_v57 }
  0x32   : > { %870 = vrot.lane.b32.xlu0 %v769_v51, %s6272_s20  ;;  %v805_v61 = vsel %vm661_vm0, %v800_v42, %v804_v36  ;;  %v231_v17 = vld [vmem:[%s6331_s19 + $0xb4] sm:$0xf]  ;;  %v6538_v19 = vld [vmem:[%s6331_s19 + $0xb8] sm:$0xf]  ;;  %v823_v28 = vrot.slane %v821_v4, 1  ;;  %v814_v29 = vshll.u32 %v6529_v7, 16 }
  0x33   : > { %876 = vrot.lane.b32.xlu1 %v805_v61, %s6272_s20  ;;  %v788_v8 = vor.u32 %v787_v56, %v783_v37  ;;  %v6543_v35 = vcombine.low %v231_v17, %v6538_v19  ;;  %v229_v36 = vld [vmem:[%s6331_s19 + $0xa8] sm:$0xf]  ;;  %v828_v39 = vrot.slane %v826_v13, 1  ;;  %v807_v42 = vshrl.u32 %v6534_v14, 16  ;;  %v6556_v17 = vld [vmem:[%s6331_s19 + $0xac] sm:$0xf] }
  0x34   : > { %v809_v43 = vshll.u32 %v6534_v14, 16  ;;  %v6550_v48 = vld [vmem:[%s6331_s19 + $0xbc] ss:$0 sps:$4 sm:$0x11]   ;;  %v824_v51 = vor.u32 %v823_v28, %v819_v63  ;;  %v816_v56 = vrot.slane %v814_v29, 1  ;;  %v6560_v13 = vcombine.low %v229_v36, %v6556_v17 }
  0x35   : > { %v793_v37 = vsel %vm661_vm0, %v788_v8, %v792_v62  ;;  %v843_v61 = vshrl.u32 %v6543_v35, 16  ;;  %v845_v4 = vshll.u32 %v6543_v35, 16  ;;  %v850_v8 = vshll.u32 %v6550_v48, 16  ;;  %v250_v27 = vld [vmem:[%s6331_s19 + $0xc] sm:$0xe] }
  0x36   : > { %874 = vrot.lane.b32.xlu0 %v793_v37, %s6272_s20  ;;  %v811_v62 = vrot.slane %v809_v43, 1  ;;  %v829_v60 = vsel %vm661_vm0, %v824_v51, %v828_v39  ;;  %v6565_v28 = vld [vmem:[%s6331_s19 + $0xb0] ss:$0 sps:$4 sm:$0x11]   ;;  %v6568_v29 = vcombine.low %v250_v27, %v6364_v18  ;;  %v249_v37 = vld [vmem:[%s6331_s19] sm:$0xe] }
  0x37   : > { %v847_v63 = vrot.slane %v845_v4, 1  ;;  %880 = vrot.lane.b32.xlu1 %v829_v60, %s6272_s20  ;;  %v852_v55 = vrot.slane %v850_v8, 1  ;;  %v831_v36 = vshrl.u32 %v6560_v13, 16  ;;  %v833_v33 = vshll.u32 %v6560_v13, 16  ;;  %v252_v22 = vld [vmem:[%s6331_s19 + $0x24] sm:$0xe] }
  0x38   : > { %v812_v43 = vor.u32 %v811_v62, %v807_v42  ;;  %v838_v51 = vshll.u32 %v6565_v28, 16  ;;  %v938_v4 = vrot.slane %v6568_v29, 1  ;;  %v6578_v18 = vcombine.low %v249_v37, %v6345_v5  ;;  %v251_v27 = vld [vmem:[%s6331_s19 + $0x18] sm:$0xe]  ;;  %v254_v50 = vld [vmem:[%s6331_s19 + $0x3c] sm:$0xe] }
  0x39   : > { %v848_v39 = vor.u32 %v847_v63, %v843_v61  ;;  %v835_v42 = vrot.slane %v833_v33, 1  ;;  %v6584_v62 = vcombine.low %v252_v22, %v6358_v12  ;;  %v6587_v8 = vcombine.low %v251_v27, %v6335_v1  ;;  %v253_v61 = vld [vmem:[%s6331_s19 + $0x30] sm:$0xe]  ;;  %v256_v63 = vld [vmem:[%s6331_s19 + $0x54] sm:$0xe] }
  0x3a   : > { %v817_v60 = vsel %vm661_vm0, %v812_v43, %v816_v56  ;;  %v840_v37 = vrot.slane %v838_v51, 1  ;;  %v935_v10 = vrot.slane %v6578_v18, 1  ;;  %v942_v56 = vrot.slane %v6341_v3, 1  ;;  %v255_v43 = vld [vmem:[%s6331_s19 + $0x48] sm:$0xe] }
  0x3b   : > { %878 = vrot.lane.b32.xlu0 %v817_v60, %s6272_s20  ;;  %v853_v5 = vsel %vm661_vm0, %v848_v39, %v852_v55  ;;  %v836_v12 = vor.u32 %v835_v42, %v831_v36  ;;  %v944_v1 = vrot.slane %v6584_v62, 1  ;;  %v6598_v22 = vcombine.low %v254_v50, %v6384_v31  ;;  %v258_v51 = vld [vmem:[%s6331_s19 + $0x6c] sm:$0xe]  ;;  %v257_v31 = vld [vmem:[%s6331_s19 + $0x60] sm:$0xe] }
  0x3c   : > { %884 = vrot.lane.b32.xlu1 %v853_v5, %s6272_s20  ;;  %v951_v33 = vrot.slane %v6396_v41, 1  ;;  %v8979_v27 = vrot.slane %v6377_v25, 1  ;;  %v941_v3 = vrot.slane %v6587_v8, 1  ;;  %v6607_v39 = vcombine.low %v253_v61, %v6400_v44  ;;  %v260_v60 = vld [vmem:[%s6331_s19 + $0x84] sm:$0xe] }
  0x3d   : > { %v6610_v36 = vcombine.low %v256_v63, %v6414_v54  ;;  %v841_v50 = vsel %vm661_vm0, %v836_v12, %v840_v37  ;;  %v950_v41 = vrot.slane %v6598_v22, 1  ;;  %v948_v25 = vrot.slane %v6406_v49, 1  ;;  %v259_v5 = vld [vmem:[%s6331_s19 + $0x78] sm:$0xe]  ;;  %v262_v37 = vld [vmem:[%s6331_s19 + $0x9c] sm:$0xe] }
  0x3e   : > { %v940_v55 = vsel %vm934_vm1, %v938_v4, %v8979_v27  ;;  %v8980_v4 = vrot.slane %v6355_v11, 1  ;;  %v8981_v42 = vrot.slane %v6371_v21, 1  ;;  %v957_v61 = vrot.slane %v6427_v0, 1  ;;  %v261_v0 = vld [vmem:[%s6331_s19 + $0x90] sm:$0xe] }
  0x3f   : > { %882 = vrot.lane.b32.xlu0 %v841_v50, %s6272_s20  ;;  %v6627_v63 = vcombine.low %v255_v43, %v6433_v9  ;;  %v947_v49 = vrot.slane %v6607_v39, 1  ;;  %v956_v11 = vrot.slane %v6610_v36, 1  ;;  %v6638_v21 = vcombine.low %v257_v31, %v6460_v38  ;;  %s6280_s20 = smov 16  }
  0x40   : > { %v937_v44 = vsel %vm934_vm1, %v935_v10, %v8980_v4  ;;  %v946_v54 = vsel %vm934_vm1, %v944_v1, %v8981_v42  ;;  %985 = vrot.lane.b32.xlu1 %v940_v55, %s6273_s21  ;;  %v6635_v10 = vcombine.low %v258_v51, %v6445_v24  ;;  %v943_v9 = vsel %vm934_vm1, %v941_v3, %v942_v56  ;;  %v264_v51 = vld [vmem:[%s6331_s19 + $0xb4] sm:$0xe]  ;;  %v6010_v42 = vld [vmem:[%s6331_s19 + $0x8] ss:$0 sps:$4 sm:$0x33]  }
  0x41   : > { %v952_v12 = vsel %vm934_vm1, %v950_v41, %v951_v33  ;;  %v953_v1 = vrot.slane %v6627_v63, 1  ;;  %v954_v43 = vrot.slane %v6442_v23, 1  ;;  %v963_v55 = vrot.slane %v6455_v34, 1  ;;  %v263_v34 = vld [vmem:[%s6331_s19 + $0xa8] sm:$0xe] }
  0x42   : > { %v962_v27 = vrot.slane %v6635_v10, 1  ;;  %v960_v24 = vrot.slane %v6467_v46, 1  ;;  %v6649_v38 = vcombine.low %v260_v60, %v6476_v53  ;;  %v959_v56 = vrot.slane %v6638_v21, 1 }
  0x43   : > { %983 = vrot.lane.b32.xlu0 %v937_v44, %s6273_s21  ;;  %v969_v33 = vrot.slane %v6488_v6, 1  ;;  %v6656_v3 = vcombine.low %v259_v5, %v6494_v16  ;;  %v6659_v23 = vcombine.low %v262_v37, %v6506_v32  ;;  %v949_v46 = vsel %vm934_vm1, %v947_v49, %v948_v25  ;;  %v6009_v6 = vld [vmem:[%s6331_s19 + $0x14] ss:$0 sps:$4 sm:$0x33]  }
  0x44   : > { %989 = vrot.lane.b32.xlu1 %v946_v54, %s6273_s21  ;;  %v958_v53 = vsel %vm934_vm1, %v956_v11, %v957_v61  ;;  %v968_v31 = vrot.slane %v6649_v38, 1  ;;  %v966_v50 = vrot.slane %v6503_v30, 1  ;;  %v955_v16 = vsel %vm934_vm1, %v953_v1, %v954_v43  ;;  %v6011_v5 = vld [vmem:[%s6331_s19 + $0x2c] ss:$0 sps:$4 sm:$0x33]  }
  0x45   : > { %v965_v41 = vrot.slane %v6656_v3, 1  ;;  %v975_v32 = vrot.slane %v6516_v47, 1  ;;  %v6672_v60 = vcombine.low %v261_v0, %v6521_v57  ;;  %v974_v4 = vrot.slane %v6659_v23, 1 }
  0x46   : > { %v972_v25 = vrot.slane %v6529_v7, 1  ;;  %v6677_v44 = vcombine.low %v264_v51, %v6538_v19  ;;  %v6680_v30 = vcombine.low %v263_v34, %v6556_v17  ;;  %v964_v54 = vsel %vm934_vm1, %v962_v27, %v963_v55 }
  0x47   : > { %987 = vrot.lane.b32.xlu0 %v943_v9, %s6273_s21  ;;  %v961_v47 = vsel %vm934_vm1, %v959_v56, %v960_v24  ;;  %v970_v57 = vsel %vm934_vm1, %v968_v31, %v969_v33  ;;  %v971_v61 = vrot.slane %v6672_v60, 1  ;;  %v6691_v7 = vsel %vm934_vm1, %v965_v41, %v966_v50  ;;  %v6012_v24 = vld [vmem:[%s6331_s19 + $0x20] ss:$0 sps:$4 sm:$0x33]  }
  0x48   : > { %993 = vrot.lane.b32.xlu1 %v952_v12, %s6273_s21  ;;  %v981_v19 = vrot.slane %v6550_v48, 1  ;;  %v1082_v17 = vshrl.u32 %v6568_v29, 16  ;;  %v1085_v37 = vshll.u32 %v6568_v29, 16  ;;  %v978_v49 = vrot.slane %v6565_v28, 1 }
  0x49   : > { %v1090_v11 = vshrl.u32 %v6009_v6, 16  ;;  %v1093_v0 = vshll.u32 %v6009_v6, 16  ;;  %v1065_v9 = vshrl.u32 %v6578_v18, 16  ;;  %v6699_v1 = vsel %vm934_vm1, %v974_v4, %v975_v32 }
  0x4a   : > { %v6702_v12 = vsel %vm934_vm1, %v971_v61, %v972_v25  ;;  %v980_v48 = vrot.slane %v6677_v44, 1  ;;  %v977_v43 = vrot.slane %v6680_v30, 1  ;;  %v1084_v29 = vrot.slane %v1082_v17, 1 }
  0x4b   : > { %991 = vrot.lane.b32.xlu0 %v949_v46, %s6273_s21  ;;  %v1087_v27 = vrot.slane %v1085_v37, 2  ;;  %v1092_v28 = vrot.slane %v1090_v11, 1  ;;  %v1068_v55 = vshll.u32 %v6578_v18, 16  ;;  %v1095_v51 = vrot.slane %v1093_v0, 2 }
  0x4c   : > { %997 = vrot.lane.b32.xlu1 %v958_v53, %s6273_s21  ;;  %v1073_v56 = vshrl.u32 %v6010_v42, 16  ;;  %v1076_v33 = vshll.u32 %v6010_v42, 16  ;;  %v1116_v34 = vshrl.u32 %v6584_v62, 16  ;;  %v1067_v31 = vrot.slane %v1065_v9, 1 }
  0x4d   : > { %v1070_v50 = vrot.slane %v1068_v55, 2  ;;  %v1119_v6 = vshll.u32 %v6584_v62, 16  ;;  %v1124_v41 = vshrl.u32 %v6011_v5, 16  ;;  %v1127_v25 = vshll.u32 %v6011_v5, 16 }
  0x4e   : > { %v1075_v46 = vrot.slane %v1073_v56, 1  ;;  %v1078_v32 = vrot.slane %v1076_v33, 2  ;;  %v1118_v4 = vrot.slane %v1116_v34, 1  ;;  %v982_v18 = vsel %vm934_vm1, %v980_v48, %v981_v19  ;;  %v6013_v0 = vld [vmem:[%s6331_s19 + $0x44] ss:$0 sps:$4 sm:$0x33]  }
  0x4f   : > { %995 = vrot.lane.b32.xlu0 %v955_v16, %s6273_s21  ;;  %v1088_v53 = vor.u32 %v1087_v27, %v1084_v29  ;;  %v1121_v61 = vrot.slane %v1119_v6, 2  ;;  %v1126_v42 = vrot.slane %v1124_v41, 1  ;;  %v1096_v17 = vor.u32 %v1095_v51, %v1092_v28  ;;  %v6014_v56 = vld [vmem:[%s6331_s19 + $0x38] ss:$0 sps:$4 sm:$0x33]  }
  0x50   : > { %1001 = vrot.lane.b32.xlu1 %v964_v54, %s6273_s21  ;;  %v1129_v37 = vrot.slane %v1127_v25, 2  ;;  %v1099_v62 = vshrl.u32 %v6587_v8, 16  ;;  %v1102_v11 = vshll.u32 %v6587_v8, 16  ;;  %v1071_v9 = vor.u32 %v1070_v50, %v1067_v31  ;;  %v6015_v50 = vld [vmem:[%s6331_s19 + $0x5c] ss:$0 sps:$4 sm:$0x33]  }
  0x51   : > { %v1107_v55 = vshrl.u32 %v6012_v24, 16  ;;  %v1110_v5 = vshll.u32 %v6012_v24, 16  ;;  %v1150_v16 = vshrl.u32 %v6598_v22, 16  ;;  %v1079_v19 = vor.u32 %v1078_v32, %v1075_v46 }
  0x52   : > { %v1122_v48 = vor.u32 %v1121_v61, %v1118_v4  ;;  %v1130_v29 = vor.u32 %v1129_v37, %v1126_v42  ;;  %v1101_v27 = vrot.slane %v1099_v62, 1  ;;  %v1104_v54 = vrot.slane %v1102_v11, 2  ;;  %v6016_v61 = vld [vmem:[%s6331_s19 + $0x50] ss:$0 sps:$4 sm:$0x33]  }
  0x53   : > { %999 = vrot.lane.b32.xlu0 %v961_v47, %s6273_s21  ;;  %v1109_v28 = vrot.slane %v1107_v55, 1  ;;  %v1112_v51 = vrot.slane %v1110_v5, 2  ;;  %v1153_v33 = vshll.u32 %v6598_v22, 16  ;;  %v979_v8 = vsel %vm934_vm1, %v977_v43, %v978_v49 }
  0x54   : > { %1005 = vrot.lane.b32.xlu1 %v970_v57, %s6273_s21  ;;  %v1097_v24 = vsel %vm1063_vm2, %v1088_v53, %v1096_v17  ;;  %v1158_v34 = vshrl.u32 %v6013_v0, 16  ;;  %v1161_v31 = vshll.u32 %v6013_v0, 16  ;;  %v1152_v6 = vrot.slane %v1150_v16, 1 }
  0x55   : > { %v1155_v41 = vrot.slane %v1153_v33, 2  ;;  %v1133_v46 = vshrl.u32 %v6607_v39, 16  ;;  %v1136_v47 = vshll.u32 %v6607_v39, 16  ;;  %v1141_v25 = vshrl.u32 %v6014_v56, 16 }
  0x56   : > { %v1160_v32 = vrot.slane %v1158_v34, 1  ;;  %v1163_v4 = vrot.slane %v1161_v31, 2  ;;  %v1144_v22 = vshll.u32 %v6014_v56, 16  ;;  %v1080_v57 = vsel %vm1063_vm2, %v1071_v9, %v1079_v19  ;;  %v6017_v19 = vld [vmem:[%s6331_s19 + $0x74] ss:$0 sps:$4 sm:$0x33]  }
  0x57   : > { %1003 = vrot.lane.b32.xlu0 %v6691_v7, %s6273_s21  ;;  %v1131_v49 = vsel %vm1063_vm2, %v1122_v48, %v1130_v29  ;;  %v1105_v43 = vor.u32 %v1104_v54, %v1101_v27  ;;  %v1113_v53 = vor.u32 %v1112_v51, %v1109_v28  ;;  %v1135_v42 = vrot.slane %v1133_v46, 1 }
  0x58   : > { %1009 = vrot.lane.b32.xlu1 %v6699_v1, %s6273_s21  ;;  %v1138_v39 = vrot.slane %v1136_v47, 2  ;;  %v1143_v17 = vrot.slane %v1141_v25, 1  ;;  %v1184_v37 = vshrl.u32 %v6610_v36, 16  ;;  %v1146_v62 = vrot.slane %v1144_v22, 2 }
  0x59   : > { %v1187_v11 = vshll.u32 %v6610_v36, 16  ;;  %v1192_v7 = vshrl.u32 %v6015_v50, 16  ;;  %v1195_v0 = vshll.u32 %v6015_v50, 16  ;;  %v1156_v9 = vor.u32 %v1155_v41, %v1152_v6  ;;  %v6018_v50 = vld [vmem:[%s6331_s19 + $0x68] ss:$0 sps:$4 sm:$0x33]  }
  0x5a   : > { %v1164_v55 = vor.u32 %v1163_v4, %v1160_v32  ;;  %v1186_v5 = vrot.slane %v1184_v37, 1  ;;  %v1167_v16 = vshrl.u32 %v6627_v63, 16  ;;  %v1170_v27 = vshll.u32 %v6627_v63, 16  ;;  %v6019_v4 = vld [vmem:[%s6331_s19 + $0x8c] ss:$0 sps:$4 sm:$0x33]  }
  0x5b   : > { %1007 = vrot.lane.b32.xlu0 %v6702_v12, %s6273_s21  ;;  %v1189_v1 = vrot.slane %v1187_v11, 2  ;;  %v1194_v48 = vrot.slane %v1192_v7, 1  ;;  %v1197_v29 = vrot.slane %v1195_v0, 2  ;;  %v1114_v36 = vsel %vm1063_vm2, %v1105_v43, %v1113_v53  ;;  %v6020_v11 = vld [vmem:[%s6331_s19 + $0x80] ss:$0 sps:$4 sm:$0x33]  }
  0x5c   : > { %1013 = vrot.lane.b32.xlu1 %v982_v18, %s6273_s21  ;;  %v1139_v56 = vor.u32 %v1138_v39, %v1135_v42  ;;  %v1175_v54 = vshrl.u32 %v6016_v61, 16  ;;  %v1178_v28 = vshll.u32 %v6016_v61, 16  ;;  %v1147_v51 = vor.u32 %v1146_v62, %v1143_v17 }
  0x5d   : > { %v1169_v33 = vrot.slane %v1167_v16, 1  ;;  %v1172_v34 = vrot.slane %v1170_v27, 2  ;;  %v1218_v31 = vshrl.u32 %v6635_v10, 16  ;;  %v1221_v41 = vshll.u32 %v6635_v10, 16 }
  0x5e   : > { %v1177_v12 = vrot.slane %v1175_v54, 1  ;;  %v1180_v6 = vrot.slane %v1178_v28, 2  ;;  %v1226_v46 = vshrl.u32 %v6017_v19, 16  ;;  %v1165_v63 = vsel %vm1063_vm2, %v1156_v9, %v1164_v55  ;;  %v6021_v27 = vld [vmem:[%s6331_s19 + $0xa4] ss:$0 sps:$4 sm:$0x33]  }
  0x5f   : > { %1011 = vrot.lane.b32.xlu0 %v979_v8, %s6273_s21  ;;  %v1190_v18 = vor.u32 %v1189_v1, %v1186_v5  ;;  %v1198_v47 = vor.u32 %v1197_v29, %v1194_v48  ;;  %v1229_v32 = vshll.u32 %v6017_v19, 16  ;;  %v1220_v25 = vrot.slane %v1218_v31, 1  ;;  %s6281_s21 = smov 84  }
  0x60   : > { %1338 = vrot.lane.b32.xlu1 %v1097_v24, %s6274_s22  ;;  %v1223_v22 = vrot.slane %v1221_v41, 2  ;;  %v1228_v43 = vrot.slane %v1226_v46, 1  ;;  %v1201_v53 = vshrl.u32 %v6638_v21, 16  ;;  %v1204_v10 = vshll.u32 %v6638_v21, 16 }
  0x61   : > { %v1231_v61 = vrot.slane %v1229_v32, 2  ;;  %v1209_v42 = vshrl.u32 %v6018_v50, 16  ;;  %v1212_v8 = vshll.u32 %v6018_v50, 16  ;;  %v1148_v39 = vsel %vm1063_vm2, %v1139_v56, %v1147_v51 }
  0x62   : > { %v1173_v17 = vor.u32 %v1172_v34, %v1169_v33  ;;  %v1181_v37 = vor.u32 %v1180_v6, %v1177_v12  ;;  %v1252_v62 = vshrl.u32 %v6649_v38, 16  ;;  %v1203_v24 = vrot.slane %v1201_v53, 1  ;;  %v6022_v6 = vld [vmem:[%s6331_s19 + $0x98] ss:$0 sps:$4 sm:$0x33]  }
  0x63   : > { %1336 = vrot.lane.b32.xlu0 %v1080_v57, %s6274_s22  ;;  %v1206_v7 = vrot.slane %v1204_v10, 2  ;;  %v1211_v0 = vrot.slane %v1209_v42, 1  ;;  %v1214_v9 = vrot.slane %v1212_v8, 2  ;;  %v1255_v21 = vshll.u32 %v6649_v38, 16 }
  0x64   : > { %1342 = vrot.lane.b32.xlu1 %v1131_v49, %s6274_s22  ;;  %v1254_v55 = vrot.slane %v1252_v62, 1  ;;  %v1260_v5 = vshrl.u32 %v6019_v4, 16  ;;  %v1263_v16 = vshll.u32 %v6019_v4, 16  ;;  %v1199_v19 = vsel %vm1063_vm2, %v1190_v18, %v1198_v47 }
  0x65   : > { %v1224_v1 = vor.u32 %v1223_v22, %v1220_v25  ;;  %v1232_v48 = vor.u32 %v1231_v61, %v1228_v43  ;;  %v1235_v29 = vshrl.u32 %v6656_v3, 16  ;;  %v1257_v57 = vrot.slane %v1255_v21, 2  ;;  %v6023_v25 = vld [vmem:[%s6331_s19 + $0xbc] ss:$0 sps:$4 sm:$0x33]  }
  0x66   : > { %v1262_v56 = vrot.slane %v1260_v5, 1  ;;  %v1265_v54 = vrot.slane %v1263_v16, 2  ;;  %v1238_v28 = vshll.u32 %v6656_v3, 16  ;;  %v1182_v49 = vsel %vm1063_vm2, %v1173_v17, %v1181_v37 }
  0x67   : > { %1340 = vrot.lane.b32.xlu0 %v1114_v36, %s6274_s22  ;;  %v1207_v38 = vor.u32 %v1206_v7, %v1203_v24  ;;  %v1243_v51 = vshrl.u32 %v6020_v11, 16  ;;  %v1246_v33 = vshll.u32 %v6020_v11, 16  ;;  %v1215_v34 = vor.u32 %v1214_v9, %v1211_v0  ;;  %v6024_v0 = vld [vmem:[%s6331_s19 + $0xb0] ss:$0 sps:$4 sm:$0x33]  }
  0x68   : > { %1346 = vrot.lane.b32.xlu1 %v1165_v63, %s6274_s22  ;;  %v1258_v31 = vor.u32 %v1257_v57, %v1254_v55  ;;  %v1237_v50 = vrot.slane %v1235_v29, 1  ;;  %v1286_v12 = vshrl.u32 %v6659_v23, 16  ;;  %v1266_v41 = vor.u32 %v1265_v54, %v1262_v56 }
  0x69   : > { %v1240_v46 = vrot.slane %v1238_v28, 2  ;;  %v1289_v3 = vshll.u32 %v6659_v23, 16  ;;  %v1294_v18 = vshrl.u32 %v6021_v27, 16  ;;  %v1233_v36 = vsel %vm1063_vm2, %v1224_v1, %v1232_v48 }
  0x6a   : > { %v1245_v47 = vrot.slane %v1243_v51, 1  ;;  %v1248_v32 = vrot.slane %v1246_v33, 2  ;;  %v1297_v4 = vshll.u32 %v6021_v27, 16  ;;  %v1288_v63 = vrot.slane %v1286_v12, 1 }
  0x6b   : > { %1344 = vrot.lane.b32.xlu0 %v1148_v39, %s6274_s22  ;;  %v1291_v22 = vrot.slane %v1289_v3, 2  ;;  %v1296_v43 = vrot.slane %v1294_v18, 1  ;;  %v1269_v53 = vshrl.u32 %v6672_v60, 16  ;;  %v1272_v23 = vshll.u32 %v6672_v60, 16  ;;  %v5104_v3 = vld [vmem:[%s6331_s19 + $0x18] sm:$0xf] }
  0x6c   : > { %1350 = vrot.lane.b32.xlu1 %v1199_v19, %s6274_s22  ;;  %v1299_v61 = vrot.slane %v1297_v4, 2  ;;  %v1277_v10 = vshrl.u32 %v6022_v6, 16  ;;  %v1280_v42 = vshll.u32 %v6022_v6, 16  ;;  %v1216_v8 = vsel %vm1063_vm2, %v1207_v38, %v1215_v34  ;;  %v6794_v18 = vld [vmem:[%s6331_s19 + $0x1c] sm:$0xf] }
  0x6d   : > { %v1267_v17 = vsel %vm1063_vm2, %v1258_v31, %v1266_v41  ;;  %v1241_v37 = vor.u32 %v1240_v46, %v1237_v50  ;;  %v1320_v39 = vshrl.u32 %v6677_v44, 16  ;;  %v1249_v62 = vor.u32 %v1248_v32, %v1245_v47  ;;  %v5102_v32 = vld [vmem:[%s6331_s19 + $0xc] sm:$0xf]  ;;  %v6804_v4 = vld [vmem:[%s6331_s19 + $0x10] sm:$0xf] }
  0x6e   : > { %v1271_v11 = vrot.slane %v1269_v53, 1  ;;  %v1274_v24 = vrot.slane %v1272_v23, 2  ;;  %v1279_v7 = vrot.slane %v1277_v10, 1  ;;  %v1282_v9 = vrot.slane %v1280_v42, 2  ;;  %v5112_v23 = vld [vmem:[%s6331_s19 + $0x48] sm:$0xf] }
  0x6f   : > { %1348 = vrot.lane.b32.xlu0 %v1182_v49, %s6274_s22  ;;  %v1323_v55 = vshll.u32 %v6677_v44, 16  ;;  %v1328_v60 = vshrl.u32 %v6023_v25, 16  ;;  %v1331_v21 = vshll.u32 %v6023_v25, 16  ;;  %v1292_v5 = vor.u32 %v1291_v22, %v1288_v63  ;;  %v5108_v25 = vld [vmem:[%s6331_s19 + $0x30] sm:$0xf] }
  0x70   : > { %1354 = vrot.lane.b32.xlu1 %v1233_v36, %s6274_s22  ;;  %v1300_v16 = vor.u32 %v1299_v61, %v1296_v43  ;;  %v1322_v19 = vrot.slane %v1320_v39, 1  ;;  %v1303_v1 = vshrl.u32 %v6680_v30, 16  ;;  %v1306_v57 = vshll.u32 %v6680_v30, 16  ;;  %v5109_v63 = vld [vmem:[%s6331_s19 + $0x34] sm:$0xf] }
  0x71   : > { %v1325_v48 = vrot.slane %v1323_v55, 2  ;;  %v1330_v29 = vrot.slane %v1328_v60, 1  ;;  %v1333_v27 = vrot.slane %v1331_v21, 2  ;;  %v1311_v56 = vshrl.u32 %v6024_v0, 16  ;;  %v5106_v43 = vld [vmem:[%s6331_s19 + $0x24] sm:$0xf] }
  0x72   : > { %v1314_v54 = vshll.u32 %v6024_v0, 16  ;;  %v1250_v44 = vsel %vm1063_vm2, %v1241_v37, %v1249_v62  ;;  %v1275_v28 = vor.u32 %v1274_v24, %v1271_v11  ;;  %v1283_v49 = vor.u32 %v1282_v9, %v1279_v7  ;;  %v5107_v61 = vld [vmem:[%s6331_s19 + $0x28] sm:$0xf]  ;;  %v5113_v10 = vld [vmem:[%s6331_s19 + $0x4c] sm:$0xf] }
  0x73   : > { %1352 = vrot.lane.b32.xlu0 %v1216_v8, %s6274_s22  ;;  %v1305_v38 = vrot.slane %v1303_v1, 1  ;;  %v1308_v51 = vrot.slane %v1306_v57, 2  ;;  %v1313_v33 = vrot.slane %v1311_v56, 1  ;;  %v1301_v31 = vsel %vm1063_vm2, %v1292_v5, %v1300_v16  ;;  %v5111_v37 = vld [vmem:[%s6331_s19 + $0x40] sm:$0xf] }
  0x74   : > { %1358 = vrot.lane.b32.xlu1 %v1267_v17, %s6274_s22  ;;  %v1316_v34 = vrot.slane %v1314_v54, 2  ;;  %v1326_v30 = vor.u32 %v1325_v48, %v1322_v19  ;;  %v1334_v50 = vor.u32 %v1333_v27, %v1330_v29  ;;  %v1284_v12 = vsel %vm1063_vm2, %v1275_v28, %v1283_v49  ;;  %v5110_v17 = vld [vmem:[%s6331_s19 + $0x3c] sm:$0xf]  ;;  %v5116_v39 = vld [vmem:[%s6331_s19 + $0x60] sm:$0xf] }
  0x75   : > { %v1309_v6 = vor.u32 %v1308_v51, %v1305_v38  ;;  %v6800_v47 = vcombine.low %v5104_v3, %v6794_v18  ;;  %v6810_v22 = vcombine.low %v5102_v32, %v6804_v4  ;;  %v6815_v53 = vcombine.low %v5108_v25, %v5109_v63  ;;  %v5117_v62 = vld [vmem:[%s6331_s19 + $0x64] sm:$0xf]  ;;  %v5114_v7 = vld [vmem:[%s6331_s19 + $0x54] sm:$0xf]  ;;  %v5115_v0 = vld [vmem:[%s6331_s19 + $0x58] sm:$0xf] }
  0x76   : > { %v1317_v41 = vor.u32 %v1316_v34, %v1313_v33  ;;  %v1335_v46 = vsel %vm1063_vm2, %v1326_v30, %v1334_v50  ;;  %v6822_v42 = vcombine.low %v5106_v43, %v5107_v61  ;;  %v6826_v8 = vcombine.low %v5112_v23, %v5113_v10  ;;  %v5120_v9 = vld [vmem:[%s6331_s19 + $0x78] sm:$0xf]  ;;  %v6844_v55 = vld [vmem:[%s6331_s19 + $0x7c] sm:$0xf]  ;;  %v5118_v5 = vld [vmem:[%s6331_s19 + $0x6c] sm:$0xf] }
  0x77   : > { %1356 = vrot.lane.b32.xlu0 %v1250_v44, %s6274_s22  ;;  %v6834_v11 = vcombine.low %v5110_v17, %v5111_v37  ;;  %v6838_v24 = vcombine.low %v5116_v39, %v5117_v62  ;;  %v6848_v60 = vcombine.low %v5114_v7, %v5115_v0  ;;  %v6853_v21 = vcombine.low %v5120_v9, %v6844_v55  ;;  %v6857_v16 = vld [vmem:[%s6331_s19 + $0x70] sm:$0xf]  ;;  %v5125_v48 = vld [vmem:[%s6331_s19 + $0x94] sm:$0xf]  ;;  %v5122_v56 = vld [vmem:[%s6331_s19 + $0x84] sm:$0xf] }
  0x78   : > { %1362 = vrot.lane.b32.xlu1 %v1301_v31, %s6274_s22  ;;  %v1318_v36 = vsel %vm1063_vm2, %v1309_v6, %v1317_v41  ;;  %8982 = vst [vmem:[#allocation6_spill] sm:$0xff] %v6826_v8  ;;  %v5124_v1 = vld [vmem:[%s6331_s19 + $0x90] sm:$0xf]  ;;  %v6866_v29 = vcombine.low %v5118_v5, %v6857_v16  ;;  %v5123_v54 = vld [vmem:[%s6331_s19 + $0x88] sm:$0xf]  ;;  %v1543_v28 = vshll.u32 %v6800_v47, 16 }
  0x79   : > { %8983 = vst [vmem:[#allocation7_spill] sm:$0xff] %v6838_v24  ;;  %8984 = vst [vmem:[#allocation8_spill] sm:$0xff] %v6848_v60  ;;  %v6872_v57 = vcombine.low %v5124_v1, %v5125_v48  ;;  %v5128_v44 = vld [vmem:[%s6331_s19 + $0xa8] sm:$0xf]  ;;  %v5129_v49 = vld [vmem:[%s6331_s19 + $0xac] sm:$0xf]  ;;  %v6891_v30 = vcombine.low %v5122_v56, %v5123_v54 }
  0x7a   : > { %v6880_v38 = vld [vmem:[%s6331_s19 + $0x20] ss:$0 sps:$4 sm:$0x11]   ;;  %v5126_v33 = vld [vmem:[%s6331_s19 + $0x9c] sm:$0xf]  ;;  %v1531_v6 = vshll.u32 %v6810_v22, 16 }
  0x7b   : > { %1360 = vrot.lane.b32.xlu0 %v1284_v12, %s6274_s22  ;;  %8986 = vst [vmem:[#allocation10_spill] sm:$0xff] %v6872_v57  ;;  %v6886_v34 = vld [vmem:[%s6331_s19 + $0x14] ss:$0 sps:$4 sm:$0x11]   ;;  %8987 = vst [vmem:[#allocation11_spill] sm:$0xff] %v6891_v30  ;;  %v1567_v41 = vshll.u32 %v6815_v53, 16 }
  0x7c   : > { %1366 = vrot.lane.b32.xlu1 %v1335_v46, %s6274_s22  ;;  %v6059_v31 = vld [vmem:[%s6331_s19 + $0x38] ss:$0 sps:$4 sm:$0x11]   ;;  %v5127_v12 = vld [vmem:[%s6331_s19 + $0xa0] sm:$0xf]  ;;  %v6900_v46 = vcombine.low %v5128_v44, %v5129_v49  ;;  %v1555_v32 = vshll.u32 %v6822_v42, 16 }
  0x7d   : > { %v5132_v3 = vld [vmem:[%s6331_s19 + $0xc0] sm:$0xf]  ;;  %v1541_v25 = vshrl.u32 %v6800_v47, 16  ;;  %v1545_v63 = vrot.slane %v1543_v28, 1  ;;  %v1548_v43 = vshll.u32 %v6880_v38, 16  ;;  %v1536_v17 = vshll.u32 %v6886_v34, 16 }
  0x7e   : > { %8989 = vst [vmem:[#allocation13_spill] sm:$0xff] %v6900_v46  ;;  %v5130_v23 = vld [vmem:[%s6331_s19 + $0xb4] sm:$0xf]  ;;  %v5131_v10 = vld [vmem:[%s6331_s19 + $0xb8] sm:$0xf]  ;;  %v1627_v39 = vshll.u32 %v6866_v29, 16  ;;  %v6916_v62 = vcombine.low %v5126_v33, %v5127_v12 }
  0x7f   : > { %1364 = vrot.lane.b32.xlu0 %v1318_v36, %s6274_s22  ;;  %v5133_v36 = vld [vmem:[%s6331_s19 + $0xc4] sm:$0xf]  ;;  %v6060_v37 = vld [vmem:[%s6331_s19 + $0x2c] ss:$0 sps:$4 sm:$0x11]   ;;  %v1572_v7 = vshll.u32 %v6059_v31, 16  ;;  %v1546_v44 = vor.u32 %v1545_v63, %v1541_v25 }
  0x80   : > { %1450 = vrot.lane.b32.xlu1 %v6800_v47, %s6275_s23  ;;  %8990 = vst [vmem:[#allocation14_spill] sm:$0xff] %v6916_v62  ;;  %v6918_v47 = vcombine.low %v5132_v3, %v5133_v36  ;;  %v6921_v0 = vld [vmem:[%s6331_s19 + $0x74] ss:$0 sps:$4 sm:$0x11]   ;;  %v1529_v9 = vshrl.u32 %v6810_v22, 16  ;;  %v1533_v5 = vrot.slane %v1531_v6, 1 }
  0x81   : > { %v1565_v1 = vshrl.u32 %v6815_v53, 16  ;;  %v1569_v48 = vrot.slane %v1567_v41, 1  ;;  %v1579_v56 = vshll.u32 %v6834_v11, 16  ;;  %v1550_v28 = vrot.slane %v1548_v43, 1  ;;  %v6932_v33 = vld [vmem:[%s6331_s19 + $0x7c] sm:$0xf] }
  0x82   : > { %8991 = vst [vmem:[#allocation15_spill] sm:$0xff] %v6918_v47  ;;  %v6062_v49 = vld [vmem:[%s6331_s19 + $0x44] ss:$0 sps:$4 sm:$0x11]   ;;  %v1538_v12 = vrot.slane %v1536_v17, 1  ;;  %v1557_v6 = vrot.slane %v1555_v32, 1  ;;  %v6940_v41 = vcombine.low %v5130_v23, %v5131_v10  ;;  %v1534_v43 = vor.u32 %v1533_v5, %v1529_v9 }
  0x83   : > { %1448 = vrot.lane.b32.xlu0 %v6810_v22, %s6275_s23  ;;  %v1553_v22 = vshrl.u32 %v6822_v42, 16  ;;  %v1560_v3 = vshll.u32 %v6060_v37, 16  ;;  %v1574_v36 = vrot.slane %v1572_v7, 1  ;;  %v1625_v25 = vshrl.u32 %v6866_v29, 16  ;;  %v6944_v63 = vld [vmem:[%s6331_s19 + $0x1c] sm:$0xf] }
  0x84   : > { %1454 = vrot.lane.b32.xlu1 %v6815_v53, %s6275_s23  ;;  %v5238_v53 = vld [vmem:[%s6331_s19 + $0x78] sm:$0xe]  ;;  %8992 = vst [vmem:[#allocation16_spill] sm:$0xff] %v6940_v41  ;;  %v1629_v32 = vrot.slane %v1627_v39, 1  ;;  %v1632_v17 = vshll.u32 %v6921_v0, 16  ;;  %v1551_v23 = vsel %vm661_vm0, %v1546_v44, %v1550_v28  ;;  %v1584_v39 = vshll.u32 %v6062_v49, 16 }
  0x85   : > { %v5230_v37 = vld [vmem:[%s6331_s19 + $0x18] sm:$0xe]  ;;  %v5510_v10 = vcombine.low %v5238_v53, %v6932_v33  ;;  %v6067_v7 = vld [vmem:[%s6331_s19 + $0x80] ss:$0 sps:$4 sm:$0x33]  }
  0x86   : > { %v6959_v9 = vld [vmem:[%s6331_s19 + $0x80] ss:$0 sps:$4 sm:$0x11]   ;;  %v5502_v5 = vcombine.low %v5230_v37, %v6944_v63  ;;  %v1634_v44 = vrot.slane %v1632_v17, 1  ;;  %v2937_v49 = vshrl.u32 %v6067_v7, 16 }
  0x87   : > { %1452 = vrot.lane.b32.xlu0 %v6822_v42, %s6275_s23  ;;  %v1570_v42 = vor.u32 %v1569_v48, %v1565_v1  ;;  %v1539_v1 = vsel %vm661_vm0, %v1534_v43, %v1538_v12  ;;  %v6068_v28 = vld [vmem:[%s6331_s19 + $0x20] ss:$0 sps:$4 sm:$0x33]   ;;  %v5158_v53 = vld [vmem:[%s6331_s19 + $0x6c] sm:$0xe]  ;;  %v1586_v43 = vrot.slane %v1584_v39, 1 }
  0x88   : > { %1458 = vrot.lane.b32.xlu1 %v6826_v8, %s6275_s23  ;;  %v5150_v39 = vld [vmem:[%s6331_s19 + $0xc] sm:$0xe]  ;;  %v2664_v8 = vrot.slane %v5502_v5, 1 }
  0x8b   : > { %1456 = vrot.lane.b32.xlu0 %v6834_v11, %s6275_s23 }
  0x8c   : > { %1462 = vrot.lane.b32.xlu1 %v6838_v24, %s6275_s23 }
  0x8f   : > { %1460 = vrot.lane.b32.xlu0 %v6848_v60, %s6275_s23  ;;  %v1562_v60 = vrot.slane %v1560_v3, 1  ;;  %v2940_v3 = vshll.u32 %v6067_v7, 16 }
  0x90   : > { %v6859_v19 = vpop.permute.xlu1 %858  ;;  %1466 = vrot.lane.b32.xlu1 %v6853_v21, %s6275_s23 }
  0x91   : > { %v6868_v27 = vpop.permute.xlu0 %854 }
  0x92   : > { %8985 = vst [vmem:[#allocation9_spill] sm:$0xff] %v6868_v27 }
  0x93   : > { %1464 = vrot.lane.b32.xlu0 %v6866_v29, %s6275_s23  ;;  %v1558_v29 = vor.u32 %v1557_v6, %v1553_v22  ;;  %v2929_v22 = vshrl.u32 %v5510_v10, 16  ;;  %v2932_v6 = vshll.u32 %v5510_v10, 16 }
  0x94   : > { %v6882_v51 = vpop.permute.xlu1 %860  ;;  %1470 = vrot.lane.b32.xlu1 %v6872_v57, %s6275_s23 }
  0x95   : > { %v6893_v50 = vpop.permute.xlu0 %856  ;;  %v1563_v37 = vsel %vm661_vm0, %v1558_v29, %v1562_v60  ;;  %v2688_v60 = vrot.slane %v5510_v10, 1  ;;  %v2934_v7 = vrot.slane %v2932_v6, 2  ;;  %v2939_v29 = vrot.slane %v2937_v49, 1  ;;  %v6993_v49 = vld [vmem:[%s6331_s19 + $0x88] sm:$0xf] }
  0x96   : > { %8988 = vst [vmem:[#allocation12_spill] sm:$0xff] %v6893_v50  ;;  %v1577_v50 = vshrl.u32 %v6834_v11, 16  ;;  %v1575_v11 = vsel %vm661_vm0, %v1570_v42, %v1574_v36  ;;  %v2689_v36 = vrot.slane %v6959_v9, 1  ;;  %v2796_v42 = vshll.u32 %v5502_v5, 16 }
  0x97   : > { %1468 = vrot.lane.b32.xlu0 %v6891_v30, %s6275_s23 }
  0x98   : > { %v6907_v61 = vpop.permute.xlu1 %864  ;;  %1474 = vrot.lane.b32.xlu1 %v6900_v46, %s6275_s23  ;;  %v6971_v46 = vld [vmem:[%s6331_s19 + $0x20] ss:$0 sps:$4 sm:$0x11]  }
  0x9b   : > { %v6928_v54 = vpop.permute.xlu0 %862  ;;  %1472 = vrot.lane.b32.xlu0 %v6916_v62, %s6275_s23 }
  0x9c   : > { %v6934_v31 = vpop.permute.xlu1 %868  ;;  %1478 = vrot.lane.b32.xlu1 %v6918_v47, %s6275_s23  ;;  %v1581_v47 = vrot.slane %v1579_v56, 1  ;;  %v1630_v56 = vor.u32 %v1629_v32, %v1625_v25  ;;  %v2793_v25 = vshrl.u32 %v5502_v5, 16  ;;  %v6999_v5 = vcombine.low %v5150_v39, %v6804_v4 }
  0x9e   : > { %v1635_v17 = vsel %vm661_vm0, %v1630_v56, %v1634_v44  ;;  %v2665_v56 = vrot.slane %v6971_v46, 1  ;;  %v2795_v10 = vrot.slane %v2793_v25, 1  ;;  %v2798_v44 = vrot.slane %v2796_v42, 2  ;;  %v6073_v42 = vld [vmem:[%s6331_s19 + $0x74] ss:$0 sps:$4 sm:$0x33]  }
  0x9f   : > { %v6950_v24 = vpop.permute.xlu0 %866  ;;  %1476 = vrot.lane.b32.xlu0 %v6940_v41, %s6275_s23  ;;  %v1582_v41 = vor.u32 %v1581_v47, %v1577_v50  ;;  %v2801_v50 = vshrl.u32 %v6068_v28, 16  ;;  %v2804_v47 = vshll.u32 %v6068_v28, 16  ;;  %v5278_v28 = vld [vmem:[%s6331_s19 + $0x84] sm:$0xf] }
  0xa0   : > { %1722 = vrot.lane.b32.xlu1 %v1551_v23, %s6276_s24  ;;  %v2931_v23 = vrot.slane %v2929_v22, 1  ;;  %v2666_v4 = vsel %vm934_vm1, %v2664_v8, %v2665_v56 }
  0xa1   : > { %v6964_v48 = vpop.permute.xlu1 %872  ;;  %v1587_v22 = vsel %vm661_vm0, %v1582_v41, %v1586_v43  ;;  %v2803_v6 = vrot.slane %v2801_v50, 1  ;;  %v6120_v41 = vld [vmem:[%s8944_s1] sm:$0xff]   ;;  %v7010_v50 = vld [vmem:[%s6331_s19 + $0x28] sm:$0xf] }
  0xa2   : > { %8993 = vst [vmem:[#allocation17_spill] sm:$0xff] %v6964_v48  ;;  %v6983_v48 = vcombine.low %v5158_v53, %v6857_v16  ;;  %v2806_v16 = vrot.slane %v2804_v47, 2  ;;  %v2690_v53 = vsel %vm934_vm1, %v2688_v60, %v2689_v36  ;;  %v2799_v47 = vor.u32 %v2798_v44, %v2795_v10 }
  0xa3   : > { %1720 = vrot.lane.b32.xlu0 %v1539_v1, %s6276_s24  ;;  %v2942_v1 = vrot.slane %v2940_v3, 2  ;;  %v6119_v3 = vld [vmem:[%s8944_s1 + $0x40] sm:$0xff]   ;;  %v1825_v60 = vrot.slane %v6921_v0, 1  ;;  %v1800_v0 = vrot.slane %v6999_v5, 1  ;;  %v2073_v10 = vshrl.u32 %v6073_v42, 16 }
  0xa4   : > { %v6974_v12 = vpop.permute.xlu0 %870  ;;  %1726 = vrot.lane.b32.xlu1 %v1575_v11, %s6276_s24  ;;  %5793 = vmatprep.subr.bf16.mxu0 %v6119_v3  ;;  %v1824_v36 = vrot.slane %v6983_v48, 1  ;;  %v2068_v39 = vshll.u32 %v6983_v48, 16  ;;  %v2076_v44 = vshll.u32 %v6073_v42, 16 }
  0xa5   : > { %8994 = vst [vmem:[#allocation18_spill] sm:$0xff] %v6974_v12  ;;  %v6978_v32 = vpop.permute.xlu1 %876  ;;  %v2943_v25 = vor.u32 %v2942_v1, %v2939_v29  ;;  %5905 = vmatprep.subr.bf16.mxu1 %v6119_v3  ;;  %5794 = vmatpush3.bf16.msra.mxu0 %v6120_v41  ;;  %v7019_v29 = vcombine.low %v5278_v28, %v6993_v49  ;;  %v2065_v1 = vshrl.u32 %v6983_v48, 16  ;;  %v1801_v28 = vrot.slane %v6886_v34, 1 }
  0xa6   : > { %5913 = vmatpush3.bf16.msra.mxu1 %v6120_v41  ;;  %v1929_v3 = vshrl.u32 %v6999_v5, 16  ;;  %v2078_v62 = vrot.slane %v2076_v44, 2 }
  0xa7   : > { %1724 = vrot.lane.b32.xlu0 %v1563_v37, %s6276_s24  ;;  %v2935_v37 = vor.u32 %v2934_v7, %v2931_v23  ;;  %v6074_v23 = vld [vmem:[%s6331_s19 + $0x14] ss:$0 sps:$4 sm:$0x33]   ;;  %v2807_v7 = vor.u32 %v2806_v16, %v2803_v6  ;;  %v7037_v16 = vld [vmem:[%s6331_s19 + $0x8c] ss:$0 sps:$4 sm:$0x11]  }
  0xa8   : > { %v6986_v11 = vpop.permute.xlu0 %874  ;;  %1736 = vrot.lane.b32.xlu1 %v1635_v17, %s6276_s24  ;;  %v5262_v17 = vld [vmem:[%s6331_s19 + $0x24] sm:$0xf]  ;;  %v3355_v42 = vshll.u32 %v7019_v29, 16  ;;  %v2067_v41 = vrot.slane %v2065_v1, 1  ;;  %v3360_v30 = vshll.u32 %v7037_v16, 16 }
  0xa9   : > { %v7006_v43 = vpop.permute.xlu1 %880  ;;  %v2944_v56 = vsel %vm1063_vm2, %v2935_v37, %v2943_v25  ;;  %v7034_v48 = vcombine.low %v5262_v17, %v7010_v50  ;;  %v1937_v37 = vshrl.u32 %v6074_v23, 16  ;;  %v1940_v25 = vshll.u32 %v6074_v23, 16  ;;  %v7057_v1 = vld [vmem:[%s6331_s19 + $0x2c] ss:$0 sps:$4 sm:$0x11]  }
  0xaa   : > { %v2808_v34 = vsel %vm1063_vm2, %v2799_v47, %v2807_v7  ;;  %v2070_v17 = vrot.slane %v2068_v39, 2  ;;  %v2075_v23 = vrot.slane %v2073_v10, 1  ;;  %v1802_v47 = vsel %vm934_vm1, %v1800_v0, %v1801_v28  ;;  %v5198_v39 = vld [vmem:[%s6331_s19 + $0x78] sm:$0xf] }
  0xab   : > { %1728 = vrot.lane.b32.xlu0 %v1587_v22, %s6276_s24  ;;  %v6124_v22 = vld [vmem:[%s8944_s1 + $0x48] sm:$0xff]   ;;  %v3259_v7 = vshll.u32 %v7034_v48, 16  ;;  %v1939_v44 = vrot.slane %v1937_v37, 1  ;;  %v1942_v57 = vrot.slane %v1940_v25, 2  ;;  %v3353_v28 = vshrl.u32 %v7019_v29, 16 }
  0xac   : > { %2728 = vrot.lane.b32.xlu1 %v2690_v53, %s6277_s29  ;;  %v1932_v53 = vshll.u32 %v6999_v5, 16  ;;  %5795 = vmatprep.subr.bf16.mxu0 %v6124_v22  ;;  %v1826_v5 = vsel %vm934_vm1, %v1824_v36, %v1825_v60  ;;  %v6129_v36 = vld [vmem:[%s8944_s1 + $0x50] sm:$0xff]   ;;  %v1931_v60 = vrot.slane %v1929_v3, 1  ;;  %v2071_v0 = vor.u32 %v2070_v17, %v2067_v41 }
  0xad   : > { %v7023_v8 = vpop.permute.xlu0 %878  ;;  %5906 = vmatprep.subr.bf16.mxu1 %v6124_v22  ;;  %v5182_v22 = vld [vmem:[%s6331_s19 + $0x18] sm:$0xf]  ;;  %v6130_v3 = vld [vmem:[%s8944_s1 + $0x10] sm:$0xff]   ;;  %v2079_v37 = vor.u32 %v2078_v62, %v2075_v23  ;;  %v7074_v25 = vcombine.low %v5198_v39, %v6932_v33  ;;  %v3968_v41 = vsel %vm3960_vm3, %v6368_v20, %v6882_v51  ;;  %v5318_v33 = vld [vmem:[%s6331_s19 + $0x84] sm:$0xe]  ;;  %v1943_v23 = vor.u32 %v1942_v57, %v1939_v44 }
  0xae   : > { %v7030_v6 = vpop.permute.xlu1 %884  ;;  %v1934_v10 = vrot.slane %v1932_v53, 2  ;;  %v3362_v51 = vrot.slane %v3360_v30, 1  ;;  %v3966_v57 = vsel %vm3960_vm3, %v6338_v2, %v6859_v19 }
  0xaf   : > { %2712 = vrot.lane.b32.xlu0 %v2666_v4, %s6277_s29  ;;  %v5151_v4 = vld [vmem:[%s6331_s19 + $0x18] sm:$0xe] }
  0xb0   : > { %3080 = vrot.lane.b32.xlu1 %v2944_v56, %s6278_s5  ;;  %v6125_v56 = vld [vmem:[%s8944_s1 + $0x8] sm:$0xff]  }
  0xb1   : > { %v7046_v12 = vpop.permute.xlu0 %882  ;;  %5796 = vmatpush3.bf16.msra.mxu0 %v6125_v56  ;;  %5914 = vmatpush3.bf16.msra.mxu1 %v6125_v56  ;;  %v3257_v56 = vshrl.u32 %v7034_v48, 16 }
  0xb2   : > { %v7052_v27 = vpop.permute.xlu1 %985  ;;  %5797 = vmatprep.subr.bf16.mxu0 %v6129_v36  ;;  %5907 = vmatprep.subr.bf16.mxu1 %v6129_v36  ;;  %v2491_v36 = vshll.u32 %v7074_v25, 16 }
  0xb3   : > { %8995 = vst [vmem:[#allocation19_spill] sm:$0xff] %v7052_v27  ;;  %3064 = vrot.lane.b32.xlu0 %v2808_v34, %s6278_s5  ;;  %v3357_v27 = vrot.slane %v3355_v42, 1  ;;  %v7077_v34 = vcombine.low %v5182_v22, %v6944_v63  ;;  %v7080_v42 = vcombine.low %v5151_v4, %v6794_v18  ;;  %v1935_v63 = vor.u32 %v1934_v10, %v1931_v60  ;;  %v6132_v18 = vld [vmem:[%s8944_s1 + $0x58] sm:$0xff]  }
  0xb4   : > { %1864 = vrot.lane.b32.xlu1 %v1826_v5, %s6279_s10  ;;  %v5310_v5 = vld [vmem:[%s6331_s19 + $0x24] sm:$0xe]  ;;  %v3261_v4 = vrot.slane %v3259_v7, 1  ;;  %v2080_v22 = vsel %vm1063_vm2, %v2071_v0, %v2079_v37  ;;  %v3970_v7 = vsel %vm3960_vm3, %v6410_v52, %v6928_v54  ;;  %v3976_v10 = vsel %vm3960_vm3, %v6419_v58, %v6934_v31  ;;  %v6133_v58 = vld [vmem:[%s8944_s1 + $0x18] sm:$0xff]  }
  0xb5   : > { %v7071_v53 = vpop.permute.xlu0 %983  ;;  %5798 = vmatpush3.bf16.msra.mxu0 %v6130_v3  ;;  %v3358_v20 = vor.u32 %v3357_v27, %v3353_v28  ;;  %5915 = vmatpush3.bf16.msra.mxu1 %v6130_v3  ;;  %v2395_v60 = vshll.u32 %v7077_v34, 16  ;;  %v3972_v27 = vsel %vm3960_vm3, %v6393_v40, %v6907_v61  ;;  %v7114_v2 = vcombine.low %v5310_v5, %v7010_v50 }
  0xb6   : > { %v990_v17 = vpop.permute.xlu1 %989  ;;  %5799 = vmatprep.subr.bf16.mxu0 %v6132_v18  ;;  %5908 = vmatprep.subr.bf16.mxu1 %v6132_v18  ;;  %v1944_v61 = vsel %vm1063_vm2, %v1935_v63, %v1943_v23  ;;  %v3262_v44 = vor.u32 %v3261_v4, %v3257_v56  ;;  %v2489_v54 = vshrl.u32 %v7074_v25, 16  ;;  %v2496_v0 = vshll.u32 %v6959_v9, 16  ;;  %v6136_v9 = vld [vmem:[%s8944_s1 + $0x60] sm:$0xff]   ;;  %v7154_v18 = vld [vmem:[%s6331_s19 + $0x2c] ss:$0 sps:$4 sm:$0x33]  }
  0xb7   : > { %1848 = vrot.lane.b32.xlu0 %v1802_v47, %s6279_s10  ;;  %v7087_v62 = vsel %vm8971_vm4, %v3968_v41, %v990_v17  ;;  %v3264_v47 = vshll.u32 %v7057_v1, 16  ;;  %v3363_v50 = vsel %vm661_vm0, %v3358_v20, %v3362_v51  ;;  %v2393_v28 = vshrl.u32 %v7077_v34, 16 }
  0xb8   : > { %3192 = vrot.lane.b32.xlu1 %v7019_v29, %s6280_s20  ;;  %v7111_v29 = vcombine.low %v5318_v33, %v6993_v49  ;;  %v6079_v49 = vld [vmem:[%s6331_s19 + $0x8c] ss:$0 sps:$4 sm:$0x33]   ;;  %v2397_v3 = vrot.slane %v2395_v60, 1  ;;  %v2400_v17 = vshll.u32 %v6971_v46, 16  ;;  %v3974_v63 = vsel %vm3960_vm3, %v6437_v15, %v6950_v24  ;;  %v6137_v24 = vld [vmem:[%s8944_s1 + $0x20] sm:$0xff]  }
  0xb9   : > { %v988_v39 = vpop.permute.xlu0 %987  ;;  %v3266_v52 = vrot.slane %v3264_v47, 1  ;;  %5800 = vmatpush3.bf16.msra.mxu0 %v6133_v58  ;;  %5916 = vmatpush3.bf16.msra.mxu1 %v6133_v58  ;;  %v3801_v46 = vshrl.u32 %v6079_v49, 16  ;;  %v3804_v56 = vshll.u32 %v6079_v49, 16  ;;  %v3553_v4 = vrot.slane %v7037_v16, 1  ;;  %v7166_v60 = vld [vmem:[%s6331_s19 + $0x28] sm:$0xf] }
  0xba   : > { %v7108_v30 = vsel %vm8971_vm4, %v3966_v57, %v988_v39  ;;  %v994_v19 = vpop.permute.xlu1 %993  ;;  %v3793_v33 = vshrl.u32 %v7111_v29, 16  ;;  %v3796_v5 = vshll.u32 %v7111_v29, 16  ;;  %v3552_v51 = vrot.slane %v7111_v29, 1  ;;  %5801 = vmatprep.subr.bf16.mxu0 %v6136_v9  ;;  %5909 = vmatprep.subr.bf16.mxu1 %v6136_v9  ;;  %v6142_v58 = vld [vmem:[%s8944_s1 + $0x28] sm:$0xff]  }
  0xbb   : > { %3176 = vrot.lane.b32.xlu0 %v7034_v48, %s6280_s20  ;;  %v7125_v40 = vsel %vm8971_vm4, %v3972_v27, %v994_v19  ;;  %v2493_v48 = vrot.slane %v2491_v36, 1  ;;  %v3267_v20 = vsel %vm661_vm0, %v3262_v44, %v3266_v52  ;;  %v3528_v15 = vrot.slane %v7114_v2, 1  ;;  %v6141_v44 = vld [vmem:[%s8944_s1 + $0x68] sm:$0xff]  }
  0xbc   : > { %2216 = vrot.lane.b32.xlu1 %v2080_v22, %s6281_s21  ;;  %v3529_v57 = vrot.slane %v7057_v1, 1  ;;  %v2498_v22 = vrot.slane %v2496_v0, 1  ;;  %v2398_v36 = vor.u32 %v2397_v3, %v2393_v28  ;;  %v2402_v29 = vrot.slane %v2400_v17, 1 }
  0xbd   : > { %v992_v31 = vpop.permute.xlu0 %991  ;;  %v2494_v39 = vor.u32 %v2493_v48, %v2489_v54  ;;  %v7173_v19 = vrot.slane %v3793_v33, 1  ;;  %5802 = vmatpush3.bf16.msra.mxu0 %v6137_v24  ;;  %5917 = vmatpush3.bf16.msra.mxu1 %v6137_v24  ;;  %v3984_v1 = vsel %vm3960_vm3, %v6481_v59, %v6978_v32  ;;  %v3806_v49 = vrot.slane %v3804_v56, 2  ;;  %v6145_v48 = vld [vmem:[%s8944_s1 + $0x70] sm:$0xff]   ;;  %v7215_v33 = vld [vmem:[%s6331_s19 + $0x2c] ss:$0 sps:$4 sm:$0x11]  }
  0xbe   : > { %v7138_v37 = vsel %vm8971_vm4, %v3970_v7, %v992_v31  ;;  %v998_v41 = vpop.permute.xlu1 %997  ;;  %v7175_v7 = vrot.slane %v3796_v5, 2  ;;  %v3982_v52 = vsel %vm3960_vm3, %v6498_v26, %v6986_v11  ;;  %v3660_v59 = vshll.u32 %v7114_v2, 16  ;;  %5803 = vmatprep.subr.bf16.mxu0 %v6141_v44  ;;  %5910 = vmatprep.subr.bf16.mxu1 %v6141_v44  ;;  %v7218_v5 = vld [vmem:[%s6331_s19 + $0x80] ss:$0 sps:$4 sm:$0x11]  }
  0xbf   : > { %2200 = vrot.lane.b32.xlu0 %v1944_v61, %s6281_s21  ;;  %v7151_v23 = vsel %vm8971_vm4, %v3976_v10, %v998_v41  ;;  %v5231_v10 = vld [vmem:[%s6331_s19 + $0x24] sm:$0xe]  ;;  %v3803_v61 = vrot.slane %v3801_v46, 1  ;;  %v3665_v32 = vshrl.u32 %v7154_v18, 16  ;;  %v3668_v54 = vshll.u32 %v7154_v18, 16 }
  0xc0   : > { %3464 = vrot.lane.b32.xlu1 %v3363_v50, %s6282_s27  ;;  %v3657_v50 = vshrl.u32 %v7114_v2, 16  ;;  %v3554_v26 = vsel %vm934_vm1, %v3552_v51, %v3553_v4  ;;  %v3530_v11 = vsel %vm934_vm1, %v3528_v15, %v3529_v57  ;;  %v6084_v2 = vld [vmem:[%s6331_s19 + $0x2c] ss:$0 sps:$4 sm:$0x33]   ;;  %v1639_v0 = vshll.u32 %v6853_v21, 16 }
  0xc1   : > { %v996_v47 = vpop.permute.xlu0 %995  ;;  %v3988_v28 = vsel %vm3960_vm3, %v6513_v45, %v7006_v43  ;;  %v2499_v41 = vsel %vm661_vm0, %v2494_v39, %v2498_v22  ;;  %v2403_v17 = vsel %vm661_vm0, %v2398_v36, %v2402_v29  ;;  %5804 = vmatpush3.bf16.msra.mxu0 %v6142_v58  ;;  %5918 = vmatpush3.bf16.msra.mxu1 %v6142_v58  ;;  %v7228_v46 = vld [vmem:[%s6331_s19 + $0x88] sm:$0xf]  ;;  %v5239_v56 = vld [vmem:[%s6331_s19 + $0x84] sm:$0xe]  ;;  %v3662_v18 = vrot.slane %v3660_v59, 2 }
  0xc2   : > { %v7169_v27 = vsel %vm8971_vm4, %v3974_v63, %v996_v47  ;;  %v7171_v16 = vpop.permute.xlu1 %1001  ;;  %v3799_v45 = vor.u32 %v7175_v7, %v7173_v19  ;;  %v3807_v43 = vor.u32 %v3806_v49, %v3803_v61  ;;  %v3659_v63 = vrot.slane %v3657_v50, 1  ;;  %5805 = vmatprep.subr.bf16.mxu0 %v6145_v48  ;;  %5911 = vmatprep.subr.bf16.mxu1 %v6145_v48  ;;  %v6087_v49 = vld [vmem:[%s6331_s19 + $0x8c] ss:$0 sps:$4 sm:$0x33]   ;;  %v6149_v50 = vld [vmem:[%s8944_s1 + $0x78] sm:$0xff]  }
  0xc3   : > { %3448 = vrot.lane.b32.xlu0 %v3267_v20, %s6282_s27  ;;  %v3667_v20 = vrot.slane %v3665_v32, 1  ;;  %v3670_v51 = vrot.slane %v3668_v54, 2  ;;  %v2818_v47 = vshrl.u32 %v6084_v2, 16  ;;  %v2821_v57 = vshll.u32 %v6084_v2, 16 }
  0xc4   : > { %2328 = vrot.lane.b32.xlu1 %v7074_v25, %s6283_s7  ;;  %v7202_v25 = vcombine.low %v5231_v10, %v7166_v60  ;;  %v1641_v36 = vrot.slane %v1639_v0, 1  ;;  %v1644_v29 = vshll.u32 %v7218_v5, 16  ;;  %v7240_v19 = vcombine.low %v5239_v56, %v7228_v46 }
  0xc5   : > { %v7197_v31 = vpop.permute.xlu0 %999  ;;  %v3986_v7 = vsel %vm3960_vm3, %v6534_v14, %v7023_v8  ;;  %v3992_v10 = vsel %vm3960_vm3, %v6543_v35, %v7030_v6  ;;  %v3808_v61 = vsel %vm1063_vm2, %v3799_v45, %v3807_v43  ;;  %v3663_v14 = vor.u32 %v3662_v18, %v3659_v63  ;;  %v7264_v6 = vld [vmem:[%s6331_s19 + $0x8c] ss:$0 sps:$4 sm:$0x11]   ;;  %v5264_v43 = vld [vmem:[%s6331_s19 + $0x30] sm:$0xf]  ;;  %v6150_v63 = vld [vmem:[%s8944_s1 + $0x38] sm:$0xff]  }
  0xc6   : > { %v1006_v3 = vpop.permute.xlu1 %1005  ;;  %v2810_v15 = vshrl.u32 %v7202_v25, 16  ;;  %v2813_v24 = vshll.u32 %v7202_v25, 16  ;;  %v3671_v8 = vor.u32 %v3670_v51, %v3667_v20  ;;  %v2667_v44 = vrot.slane %v7202_v25, 1 }
  0xc7   : > { %2312 = vrot.lane.b32.xlu0 %v7077_v34, %s6283_s7  ;;  %v7223_v9 = vsel %vm8971_vm4, %v3984_v1, %v1006_v3  ;;  %v1637_v34 = vshrl.u32 %v6853_v21, 16  ;;  %v6146_v21 = vld [vmem:[%s8944_s1 + $0x30] sm:$0xff]   ;;  %v2668_v35 = vrot.slane %v7215_v33, 1  ;;  %v2820_v54 = vrot.slane %v2818_v47, 1 }
  0xc8   : > { %3592 = vrot.lane.b32.xlu1 %v3554_v26, %s6284_s17  ;;  %5806 = vmatpush3.bf16.msra.mxu0 %v6146_v21  ;;  %v2812_v59 = vrot.slane %v2810_v15, 1  ;;  %v2815_v32 = vrot.slane %v2813_v24, 2  ;;  %v2823_v58 = vrot.slane %v2821_v57, 2  ;;  %v1646_v48 = vrot.slane %v1644_v29, 1 }
  0xc9   : > { %v1004_v4 = vpop.permute.xlu0 %1003  ;;  %5919 = vmatpush3.bf16.msra.mxu1 %v6146_v21  ;;  %5807 = vmatprep.subr.bf16.mxu0 %v6149_v50  ;;  %v1642_v2 = vor.u32 %v1641_v36, %v1637_v34  ;;  %v2946_v25 = vshrl.u32 %v7240_v19, 16  ;;  %v2954_v3 = vshrl.u32 %v6087_v49, 16  ;;  %v3672_v45 = vsel %vm1063_vm2, %v3663_v14, %v3671_v8  ;;  %v7286_v34 = vld [vmem:[%s6331_s19 + $0x34] sm:$0xf] }
  0xca   : > { %v7236_v39 = vsel %vm8971_vm4, %v3982_v52, %v1004_v4  ;;  %v1010_v22 = vpop.permute.xlu1 %1009  ;;  %5912 = vmatprep.subr.bf16.mxu1 %v6149_v50  ;;  %v2669_v18 = vsel %vm934_vm1, %v2667_v44, %v2668_v35  ;;  %v2816_v20 = vor.u32 %v2815_v32, %v2812_v59  ;;  %v2824_v51 = vor.u32 %v2823_v58, %v2820_v54  ;;  %v6090_v4 = vld [vmem:[%s6331_s19 + $0x20] ss:$0 sps:$4 sm:$0x33]   ;;  %v5280_v54 = vld [vmem:[%s6331_s19 + $0x90] sm:$0xf] }
  0xcb   : > { %3576 = vrot.lane.b32.xlu0 %v3530_v11, %s6284_s17  ;;  %v7253_v1 = vsel %vm8971_vm4, %v3988_v28, %v1010_v22  ;;  %v2949_v28 = vshll.u32 %v7240_v19, 16  ;;  %v1647_v47 = vsel %vm661_vm0, %v1642_v2, %v1646_v48  ;;  %v2692_v57 = vrot.slane %v7264_v6, 1  ;;  %v7318_v58 = vld [vmem:[%s6331_s19 + $0x94] sm:$0xf] }
  0xcc   : > { %2600 = vrot.lane.b32.xlu1 %v2499_v41, %s6285_s26  ;;  %v2957_v41 = vshll.u32 %v6087_v49, 16  ;;  %v1803_v22 = vrot.slane %v7080_v42, 1  ;;  %5808 = vmatpush3.bf16.msra.mxu0 %v6150_v63  ;;  %v2956_v29 = vrot.slane %v2954_v3, 1  ;;  %v1949_v49 = vshll.u32 %v7080_v42, 16 }
  0xcd   : > { %v1008_v52 = vpop.permute.xlu0 %1007  ;;  %5920 = vmatpush3.bf16.msra.mxu1 %v6150_v63  ;;  %v2951_v36 = vrot.slane %v2949_v28, 2  ;;  %v2825_v14 = vsel %vm1063_vm2, %v2816_v20, %v2824_v51  ;;  %v1804_v8 = vrot.slane %v6880_v38, 1  ;;  %v1954_v44 = vshrl.u32 %v6090_v4, 16  ;;  %v6094_v38 = vld [vmem:[%s6331_s19 + $0x80] ss:$0 sps:$4 sm:$0x33]  }
  0xce   : > { %v7267_v26 = vsel %vm8971_vm4, %v3986_v7, %v1008_v52  ;;  %v1014_v11 = vpop.permute.xlu1 %1013  ;;  %v2959_v21 = vrot.slane %v2957_v41, 2  ;;  %v2691_v7 = vrot.slane %v7240_v19, 1  ;;  %v1957_v35 = vshll.u32 %v6090_v4, 16 }
  0xcf   : > { %2584 = vrot.lane.b32.xlu0 %v2403_v17, %s6285_s26  ;;  %v7272_v0 = vsel %vm8971_vm4, %v3992_v10, %v1014_v11  ;;  %v3990_v17 = vsel %vm3960_vm3, %v6560_v13, %v7046_v12  ;;  %v5159_v13 = vld [vmem:[%s6331_s19 + $0x78] sm:$0xe]  ;;  %v2948_v12 = vrot.slane %v2946_v25, 1  ;;  %v7302_v10 = vcombine.low %v5264_v43, %v7286_v34  ;;  %v7321_v11 = vld [vmem:[%s6331_s19 + $0x38] ss:$0 sps:$4 sm:$0x11]  }
  0xd0   : > { %3944 = vrot.lane.b32.xlu1 %v3808_v61, %s6286_s28  ;;  %v1946_v61 = vshrl.u32 %v7080_v42, 16  ;;  %v5447_v19 = vcombine.low %v5159_v13, %v6844_v55  ;;  %v2960_v32 = vor.u32 %v2959_v21, %v2956_v29  ;;  %v2693_v55 = vsel %vm934_vm1, %v2691_v7, %v2692_v57  ;;  %v5311_v13 = vld [vmem:[%s6331_s19 + $0x30] sm:$0xe]  ;;  %v5184_v21 = vld [vmem:[%s6331_s19 + $0x24] sm:$0xf] }
  0xd1   : > { %v1012_v56 = vpop.permute.xlu0 %1011  ;;  %v2952_v42 = vor.u32 %v2951_v36, %v2948_v12  ;;  %v3271_v2 = vshll.u32 %v7302_v10, 16  ;;  %v1951_v25 = vrot.slane %v1949_v49, 2  ;;  %v1956_v3 = vrot.slane %v1954_v44, 1 }
  0xd2   : > { %v7290_v15 = vsel %vm8971_vm4, %v3990_v17, %v1012_v56  ;;  %v7292_v24 = vpop.permute.xlu1 %1338  ;;  %v1948_v48 = vrot.slane %v1946_v61, 1  ;;  %v1959_v41 = vrot.slane %v1957_v35, 2  ;;  %v3269_v63 = vshrl.u32 %v7302_v10, 16  ;;  %v7350_v61 = vld [vmem:[%s6331_s19 + $0x98] ss:$0 sps:$4 sm:$0x11]  }
  0xd3   : > { %3928 = vrot.lane.b32.xlu0 %v3672_v45, %s6286_s28  ;;  %v1827_v17 = vrot.slane %v5447_v19, 1  ;;  %v1828_v20 = vrot.slane %v7218_v5, 1  ;;  %v2082_v51 = vshrl.u32 %v5447_v19, 16  ;;  %v2085_v4 = vshll.u32 %v5447_v19, 16 }
  0xd4   : > { %2714 = vrot.lane.b32.xlu1 %v2669_v18, %s6277_s29  ;;  %v2961_v18 = vsel %vm1063_vm2, %v2952_v42, %v2960_v32  ;;  %v2093_v57 = vshll.u32 %v6094_v38, 16  ;;  %v3273_v12 = vrot.slane %v3271_v2, 1  ;;  %v1952_v36 = vor.u32 %v1951_v25, %v1948_v48  ;;  %v6098_v48 = vld [vmem:[%s6331_s19 + $0x38] ss:$0 sps:$4 sm:$0x33]  }
  0xd5   : > { %v7306_v50 = vpop.permute.xlu0 %1336  ;;  %v1960_v29 = vor.u32 %v1959_v41, %v1956_v3  ;;  %v2087_v44 = vrot.slane %v2085_v4, 2  ;;  %v5200_v3 = vld [vmem:[%s6331_s19 + $0x84] sm:$0xf]  ;;  %v8996_v41 = vld [vmem:[#allocation11_spill] sm:$0xff]  ;;  %v3532_v4 = vrot.slane %v7321_v11, 1 }
  0xd6   : > { %v1343_v52 = vpop.permute.xlu1 %1342  ;;  %v3274_v32 = vor.u32 %v3273_v12, %v3269_v63  ;;  %v3682_v12 = vshrl.u32 %v6098_v48, 16 }
  0xd7   : > { %1738 = vrot.lane.b32.xlu0 %v1647_v47, %s6276_s24  ;;  %v7314_v59 = vsel %vm8970_vm5, %v7087_v62, %v1343_v52  ;;  %v1805_v62 = vsel %vm934_vm1, %v1803_v22, %v1804_v8  ;;  %v2090_v47 = vshrl.u32 %v6094_v38, 16  ;;  %v2084_v8 = vrot.slane %v2082_v51, 1 }
  0xd8   : > { %3066 = vrot.lane.b32.xlu1 %v2825_v14, %s6278_s5  ;;  %v1829_v14 = vsel %vm934_vm1, %v1827_v17, %v1828_v20  ;;  %v1961_v42 = vsel %vm1063_vm2, %v1952_v36, %v1960_v29  ;;  %v3685_v36 = vshll.u32 %v6098_v48, 16 }
  0xd9   : > { %v1341_v28 = vpop.permute.xlu0 %1340  ;;  %v2092_v35 = vrot.slane %v2090_v47, 1  ;;  %v2088_v25 = vor.u32 %v2087_v44, %v2084_v8 }
  0xda   : > { %v7330_v45 = vsel %vm8970_vm5, %v7108_v30, %v1341_v28  ;;  %v1347_v43 = vpop.permute.xlu1 %1346  ;;  %v5543_v30 = vcombine.low %v5280_v54, %v7318_v58 }
  0xdb   : > { %2730 = vrot.lane.b32.xlu0 %v2693_v55, %s6277_s29  ;;  %v7336_v56 = vsel %vm8970_vm5, %v7125_v40, %v1347_v43  ;;  %v3276_v40 = vshll.u32 %v7321_v11, 16  ;;  %v5567_v55 = vcombine.low %v5311_v13, %v7286_v34  ;;  %v1651_v43 = vshll.u32 %v8996_v41, 16 }
  0xdc   : > { %1850 = vrot.lane.b32.xlu1 %v1805_v62, %s6279_s10  ;;  %v3367_v19 = vshll.u32 %v5543_v30, 16  ;;  %v3365_v2 = vshrl.u32 %v5543_v30, 16  ;;  %v7387_v13 = vcombine.low %v5200_v3, %v7228_v46  ;;  %v2412_v46 = vshll.u32 %v7215_v33, 16 }
  0xdd   : > { %v1345_v22 = vpop.permute.xlu0 %1344  ;;  %v3278_v54 = vrot.slane %v3276_v40, 1  ;;  %v3531_v51 = vrot.slane %v5567_v55, 1  ;;  %v3674_v47 = vshrl.u32 %v5567_v55, 16  ;;  %v1653_v8 = vrot.slane %v1651_v43, 1 }
  0xde   : > { %v7347_v5 = vsel %vm8970_vm5, %v7138_v37, %v1345_v22  ;;  %v1351_v7 = vpop.permute.xlu1 %1350  ;;  %v2095_v37 = vrot.slane %v2093_v57, 2  ;;  %v3369_v62 = vrot.slane %v3367_v19, 1  ;;  %v3677_v57 = vshll.u32 %v5567_v55, 16  ;;  %v7411_v55 = vld [vmem:[%s6331_s19 + $0x94] sm:$0xf] }
  0xdf   : > { %3082 = vrot.lane.b32.xlu0 %v2961_v18, %s6278_s5  ;;  %v7355_v49 = vsel %vm8970_vm5, %v7151_v23, %v1351_v7  ;;  %v5471_v23 = vcombine.low %v5184_v21, %v7166_v60  ;;  %v3372_v60 = vshll.u32 %v7350_v61, 16  ;;  %v3279_v63 = vsel %vm661_vm0, %v3274_v32, %v3278_v54  ;;  %v5319_v18 = vld [vmem:[%s6331_s19 + $0x90] sm:$0xe]  ;;  %v7392_v7 = vld [vmem:[%s6331_s19 + $0x8c] ss:$0 sps:$4 sm:$0x11]  }
  0xe0   : > { %3178 = vrot.lane.b32.xlu1 %v7302_v10, %s6280_s20  ;;  %v2096_v28 = vor.u32 %v2095_v37, %v2092_v35  ;;  %v3370_v40 = vor.u32 %v3369_v62, %v3365_v2  ;;  %v3676_v37 = vrot.slane %v3674_v47, 1  ;;  %v3679_v19 = vrot.slane %v3677_v57, 2  ;;  %v6100_v54 = vld [vmem:[%s6331_s19 + $0x98] ss:$0 sps:$4 sm:$0x33]  }
  0xe1   : > { %v1349_v52 = vpop.permute.xlu0 %1348  ;;  %v2407_v17 = vshll.u32 %v5471_v23, 16  ;;  %v3374_v21 = vrot.slane %v3372_v60, 1  ;;  %v2405_v11 = vshrl.u32 %v5471_v23, 16  ;;  %v3533_v32 = vsel %vm934_vm1, %v3531_v51, %v3532_v4  ;;  %v5240_v2 = vld [vmem:[%s6331_s19 + $0x90] sm:$0xe] }
  0xe2   : > { %v7364_v38 = vsel %vm8970_vm5, %v7169_v27, %v1349_v52  ;;  %v7367_v10 = vpop.permute.xlu1 %1354  ;;  %v1649_v27 = vshrl.u32 %v8996_v41, 16  ;;  %v2097_v29 = vsel %vm1063_vm2, %v2088_v25, %v2096_v28  ;;  %v3684_v52 = vrot.slane %v3682_v12, 1  ;;  %v7416_v60 = vld [vmem:[%s6331_s19 + $0x34] sm:$0xf] }
  0xe3   : > { %1866 = vrot.lane.b32.xlu0 %v1829_v14, %s6279_s10  ;;  %v3375_v33 = vsel %vm661_vm0, %v3370_v40, %v3374_v21  ;;  %v2414_v28 = vrot.slane %v2412_v46, 1  ;;  %v3556_v62 = vrot.slane %v7350_v61, 1  ;;  %v3680_v43 = vor.u32 %v3679_v19, %v3676_v37  ;;  %v6106_v19 = vld [vmem:[%s6331_s19 + $0x38] ss:$0 sps:$4 sm:$0x33]  }
  0xe4   : > { %2202 = vrot.lane.b32.xlu1 %v1961_v42, %s6281_s21  ;;  %v3687_v42 = vrot.slane %v3685_v36, 2  ;;  %v3818_v57 = vshrl.u32 %v6100_v54, 16  ;;  %v3821_v12 = vshll.u32 %v6100_v54, 16  ;;  %v7434_v40 = vcombine.low %v5240_v2, %v7411_v55 }
  0xe5   : > { %v7376_v34 = vpop.permute.xlu0 %1352 }
  0xe6   : > { %v1359_v20 = vpop.permute.xlu1 %1358  ;;  %v3688_v61 = vor.u32 %v3687_v42, %v3684_v52  ;;  %v3823_v52 = vrot.slane %v3821_v12, 2  ;;  %v7458_v42 = vld [vmem:[%s6331_s19 + $0x38] ss:$0 sps:$4 sm:$0x11]  }
  0xe7   : > { %3194 = vrot.lane.b32.xlu0 %v5543_v30, %s6280_s20  ;;  %v7384_v22 = vsel %vm8970_vm5, %v7223_v9, %v1359_v20  ;;  %v5575_v30 = vcombine.low %v5319_v18, %v7318_v58  ;;  %v2409_v9 = vrot.slane %v2407_v17, 1  ;;  %v1656_v17 = vshll.u32 %v7392_v7, 16 }
  0xe8   : > { %3450 = vrot.lane.b32.xlu1 %v3279_v63, %s6282_s27  ;;  %v2501_v63 = vshrl.u32 %v7387_v13, 16  ;;  %v2508_v20 = vshll.u32 %v7264_v6, 16 }
  0xe9   : > { %v1357_v14 = vpop.permute.xlu0 %1356  ;;  %v2410_v25 = vor.u32 %v2409_v9, %v2405_v11  ;;  %v3810_v51 = vshrl.u32 %v5575_v30, 16  ;;  %v3813_v47 = vshll.u32 %v5575_v30, 16  ;;  %v1654_v11 = vor.u32 %v1653_v8, %v1649_v27 }
  0xea   : > { %v7398_v44 = vsel %vm8970_vm5, %v7236_v39, %v1357_v14  ;;  %v1363_v35 = vpop.permute.xlu1 %1362  ;;  %v2503_v39 = vshll.u32 %v7387_v13, 16  ;;  %v7446_v14 = vld [vmem:[%s6331_s19 + $0x98] ss:$0 sps:$4 sm:$0x11]   ;;  %v3820_v8 = vrot.slane %v3818_v57, 1 }
  0xeb   : > { %2218 = vrot.lane.b32.xlu0 %v2097_v29, %s6281_s21  ;;  %v7403_v58 = vsel %vm8970_vm5, %v7253_v1, %v1363_v35  ;;  %v3555_v1 = vrot.slane %v5575_v30, 1  ;;  %v2415_v29 = vsel %vm661_vm0, %v2410_v25, %v2414_v28  ;;  %v1658_v30 = vrot.slane %v1656_v17, 1 }
  0xec   : > { %2314 = vrot.lane.b32.xlu1 %v5471_v23, %s6283_s7  ;;  %v2505_v4 = vrot.slane %v2503_v39, 1  ;;  %v2510_v35 = vrot.slane %v2508_v20, 1  ;;  %v3812_v37 = vrot.slane %v3810_v51, 1  ;;  %v3815_v27 = vrot.slane %v3813_v47, 2 }
  0xed   : > { %v1361_v48 = vpop.permute.xlu0 %1360  ;;  %v3557_v46 = vsel %vm934_vm1, %v3555_v1, %v3556_v62  ;;  %v2695_v25 = vrot.slane %v7446_v14, 1  ;;  %v3824_v20 = vor.u32 %v3823_v52, %v3820_v8  ;;  %v2694_v51 = vrot.slane %v7434_v40, 1  ;;  %v6234_v52 = vld [vmem:[%s6331_s19 + $0x28] sm:$0xf] }
  0xee   : > { %v7420_v23 = vsel %vm8970_vm5, %v7267_v26, %v1361_v48  ;;  %v1367_v3 = vpop.permute.xlu1 %1366  ;;  %v5232_v26 = vld [vmem:[%s6331_s19 + $0x30] sm:$0xe]  ;;  %v2506_v41 = vor.u32 %v2505_v4, %v2501_v63  ;;  %v1659_v48 = vsel %vm661_vm0, %v1654_v11, %v1658_v30  ;;  %v5160_v63 = vld [vmem:[%s6331_s19 + $0x84] sm:$0xe] }
  0xef   : > { %3466 = vrot.lane.b32.xlu0 %v3375_v33, %s6282_s27  ;;  %v7427_v18 = vsel %vm8970_vm5, %v7272_v0, %v1367_v3  ;;  %v6105_v0 = vld [vmem:[%s6331_s19 + $0x98] ss:$0 sps:$4 sm:$0x33]   ;;  %v7449_v9 = vcombine.low %v5232_v26, %v7416_v60  ;;  %v2835_v3 = vshrl.u32 %v6106_v19, 16  ;;  %v5152_v30 = vld [vmem:[%s6331_s19 + $0x24] sm:$0xe] }
  0xf0   : > { %3578 = vrot.lane.b32.xlu1 %v3533_v32, %s6284_s17  ;;  %v2966_v32 = vshll.u32 %v7434_v40, 16  ;;  %v2971_v39 = vshrl.u32 %v6105_v0, 16  ;;  %v2974_v54 = vshll.u32 %v6105_v0, 16  ;;  %v2511_v17 = vsel %vm661_vm0, %v2506_v41, %v2510_v35  ;;  %v6233_v35 = vld [vmem:[%s6331_s19 + $0x88] sm:$0xf] }
  0xf1   : > { %v1365_v36 = vpop.permute.xlu0 %1364  ;;  %v2827_v28 = vshrl.u32 %v7449_v9, 16  ;;  %v2830_v62 = vshll.u32 %v7449_v9, 16  ;;  %v2671_v0 = vrot.slane %v7458_v42, 1  ;;  %v2696_v41 = vsel %vm934_vm1, %v2694_v51, %v2695_v25 }
  0xf2   : > { %v7439_v6 = vsel %vm8970_vm5, %v7290_v15, %v1365_v36  ;;  %v7441_v21 = vpop.permute.xlu1 %1450  ;;  %v3689_v15 = vsel %vm1063_vm2, %v3680_v43, %v3688_v61  ;;  %v2838_v43 = vshll.u32 %v6106_v19, 16  ;;  %v3816_v61 = vor.u32 %v3815_v27, %v3812_v37 }
  0xf3   : > { %2330 = vrot.lane.b32.xlu0 %v7387_v13, %s6283_s7  ;;  %v2963_v13 = vshrl.u32 %v7434_v40, 16  ;;  %v2968_v47 = vrot.slane %v2966_v32, 2  ;;  %v2976_v57 = vrot.slane %v2974_v54, 2  ;;  %v2829_v11 = vrot.slane %v2827_v28, 1  ;;  %v5282_v54 = vld [vmem:[%s6331_s19 + $0x9c] sm:$0xf] }
  0xf4   : > { %2586 = vrot.lane.b32.xlu1 %v2415_v29, %s6285_s26  ;;  %v2670_v29 = vrot.slane %v7449_v9, 1  ;;  %v5448_v37 = vcombine.low %v5160_v63, %v6233_v35  ;;  %v3825_v9 = vsel %vm1063_vm2, %v3816_v61, %v3824_v20  ;;  %v1831_v63 = vrot.slane %v7392_v7, 1  ;;  %v6235_v7 = vld [vmem:[%s6331_s19 + $0x2c] ss:$0 sps:$4 sm:$0x11]  }
  0xf5   : > { %v7460_v33 = vpop.permute.xlu0 %1448  ;;  %v2965_v4 = vrot.slane %v2963_v13, 1  ;;  %v5440_v13 = vcombine.low %v5152_v30, %v6234_v52 }
  0xf6   : > { %v1455_v2 = vpop.permute.xlu1 %1454  ;;  %v2672_v25 = vsel %vm934_vm1, %v2670_v29, %v2671_v0  ;;  %v2099_v61 = vshrl.u32 %v5448_v37, 16  ;;  %v2102_v20 = vshll.u32 %v5448_v37, 16  ;;  %v1807_v29 = vrot.slane %v6235_v7, 1 }
  0xf7   : > { %3594 = vrot.lane.b32.xlu0 %v3557_v46, %s6284_s17  ;;  %v7470_v1 = vsel %vm8969_vm6, %v7314_v59, %v1455_v2  ;;  %v2973_v59 = vrot.slane %v2971_v39, 1  ;;  %v2832_v46 = vrot.slane %v2830_v62, 2  ;;  %v2969_v27 = vor.u32 %v2968_v47, %v2965_v4  ;;  %v7501_v2 = vld [vmem:[%s6331_s19 + $0xa0] sm:$0xf] }
  0xf8   : > { %8997 = vst [vmem:[#allocation11_spill] sm:$0xff] %v7470_v1  ;;  %3930 = vrot.lane.b32.xlu1 %v3689_v15, %s6286_s28  ;;  %v2837_v15 = vrot.slane %v2835_v3, 1  ;;  %v5266_v3 = vld [vmem:[%s6331_s19 + $0x3c] sm:$0xf]  ;;  %v1963_v30 = vshrl.u32 %v5440_v13, 16 }
  0xf9   : > { %v1453_v26 = vpop.permute.xlu0 %1452  ;;  %v2977_v8 = vor.u32 %v2976_v57, %v2973_v59  ;;  %v2833_v28 = vor.u32 %v2832_v46, %v2829_v11  ;;  %v1966_v46 = vshll.u32 %v5440_v13, 16 }
  0xfa   : > { %v7479_v12 = vsel %vm8969_vm6, %v7330_v45, %v1453_v26  ;;  %v1459_v36 = vpop.permute.xlu1 %1458  ;;  %v2840_v45 = vrot.slane %v2838_v43, 2  ;;  %v6112_v43 = vld [vmem:[%s6331_s19 + $0x2c] ss:$0 sps:$4 sm:$0x33]   ;;  %v5544_v26 = vcombine.low %v5282_v54, %v7501_v2 }
  0xfb   : > { %8998 = vst [vmem:[#allocation20_spill] sm:$0xff] %v7479_v12  ;;  %2602 = vrot.lane.b32.xlu0 %v2511_v17, %s6285_s26  ;;  %v7487_v40 = vsel %vm8969_vm6, %v7336_v56, %v1459_v36  ;;  %v6111_v56 = vld [vmem:[%s6331_s19 + $0x8c] ss:$0 sps:$4 sm:$0x33]   ;;  %v7514_v17 = vld [vmem:[%s6331_s19 + $0x40] sm:$0xf] }
  0xfc   : > { %8999 = vst [vmem:[#allocation21_spill] sm:$0xff] %v7487_v40  ;;  %1740 = vrot.lane.b32.xlu1 %v1659_v48, %s6276_s24  ;;  %v2841_v62 = vor.u32 %v2840_v45, %v2837_v15  ;;  %v2107_v4 = vshrl.u32 %v6111_v56, 16  ;;  %v2110_v47 = vshll.u32 %v6111_v56, 16  ;;  %v1806_v36 = vrot.slane %v5440_v13, 1 }
  0xfd   : > { %v1457_v19 = vpop.permute.xlu0 %1456  ;;  %v5536_v11 = vcombine.low %v5266_v3, %v7514_v17  ;;  %v7529_v15 = vld [vmem:[%s6331_s19 + $0xa4] ss:$0 sps:$4 sm:$0x11]   ;;  %v2104_v45 = vrot.slane %v2102_v20, 2  ;;  %v1971_v35 = vshrl.u32 %v6112_v43, 16  ;;  %v1968_v54 = vrot.slane %v1966_v46, 2 }
  0xfe   : > { %v7497_v32 = vsel %vm8969_vm6, %v7347_v5, %v1457_v19  ;;  %v1463_v39 = vpop.permute.xlu1 %1462  ;;  %v1830_v5 = vrot.slane %v5448_v37, 1  ;;  %v2842_v0 = vsel %vm1063_vm2, %v2833_v28, %v2841_v62  ;;  %v1974_v37 = vshll.u32 %v6112_v43, 16  ;;  %v7544_v43 = vld [vmem:[%s6331_s19 + $0x44] ss:$0 sps:$4 sm:$0x11]  }
  0xff   : > { %9000 = vst [vmem:[#allocation22_spill] sm:$0xff] %v7497_v32  ;;  %3946 = vrot.lane.b32.xlu0 %v3825_v9, %s6286_s28  ;;  %v7506_v48 = vsel %vm8969_vm6, %v7355_v49, %v1463_v39  ;;  %v2978_v49 = vsel %vm1063_vm2, %v2969_v27, %v2977_v8  ;;  %v2112_v27 = vrot.slane %v2110_v47, 2  ;;  %v3379_v8 = vshll.u32 %v5544_v26, 16  ;;  %v7655_v40 = vld [vmem:[%s6331_s19 + $0xa4] ss:$0 sps:$4 sm:$0x11]  }
 0x100   : > { %9001 = vst [vmem:[#allocation23_spill] sm:$0xff] %v7506_v48  ;;  %2732 = vrot.lane.b32.xlu1 %v2696_v41, %s6277_s29  ;;  %v1832_v19 = vsel %vm934_vm1, %v1830_v5, %v1831_v63  ;;  %v2109_v41 = vrot.slane %v2107_v4, 1  ;;  %v1808_v13 = vsel %vm934_vm1, %v1806_v36, %v1807_v29  ;;  %v1965_v39 = vrot.slane %v1963_v30, 1  ;;  %v5186_v29 = vld [vmem:[%s6331_s19 + $0x30] sm:$0xf] }
 0x101   : > { %v1461_v51 = vpop.permute.xlu0 %1460  ;;  %v1973_v62 = vrot.slane %v1971_v35, 1  ;;  %v1976_v3 = vrot.slane %v1974_v37, 2  ;;  %v3283_v5 = vshll.u32 %v5536_v11, 16  ;;  %v3377_v20 = vshrl.u32 %v5544_v26, 16 }
 0x102   : > { %v7520_v59 = vsel %vm8969_vm6, %v7364_v38, %v1461_v51  ;;  %v7522_v57 = vpop.permute.xlu1 %1466  ;;  %v2101_v38 = vrot.slane %v2099_v61, 1  ;;  %v2113_v61 = vor.u32 %v2112_v27, %v2109_v41  ;;  %v3384_v51 = vshll.u32 %v7529_v15, 16 }
 0x103   : > { %9002 = vst [vmem:[#allocation24_spill] sm:$0xff] %v7520_v59  ;;  %2716 = vrot.lane.b32.xlu0 %v2672_v25, %s6277_s29  ;;  %v5202_v25 = vld [vmem:[%s6331_s19 + $0x90] sm:$0xf]  ;;  %v1969_v36 = vor.u32 %v1968_v54, %v1965_v39  ;;  %v3281_v30 = vshrl.u32 %v5536_v11, 16  ;;  %v3285_v46 = vrot.slane %v3283_v5, 1 }
 0x104   : > { %3084 = vrot.lane.b32.xlu1 %v2978_v49, %s6278_s5  ;;  %v2105_v28 = vor.u32 %v2104_v45, %v2101_v38  ;;  %v5480_v7 = vcombine.low %v5202_v25, %v7411_v55  ;;  %v5320_v45 = vld [vmem:[%s6331_s19 + $0x9c] sm:$0xe] }
 0x105   : > { %v7532_v9 = vpop.permute.xlu0 %1464  ;;  %v5312_v55 = vld [vmem:[%s6331_s19 + $0x3c] sm:$0xe] }
 0x106   : > { %v1471_v56 = vpop.permute.xlu1 %1470  ;;  %v2114_v35 = vsel %vm1063_vm2, %v2105_v28, %v2113_v61  ;;  %v5568_v25 = vcombine.low %v5312_v55, %v7514_v17  ;;  %v2520_v28 = vshll.u32 %v7446_v14, 16 }
 0x107   : > { %3068 = vrot.lane.b32.xlu0 %v2842_v0, %s6278_s5  ;;  %v7538_v52 = vsel %vm8969_vm6, %v7384_v22, %v1471_v56  ;;  %v3381_v22 = vrot.slane %v3379_v8, 1  ;;  %v1977_v0 = vor.u32 %v1976_v3, %v1973_v62  ;;  %v2515_v8 = vshll.u32 %v5480_v7, 16  ;;  %v6117_v56 = vld [vmem:[%s6331_s19 + $0xa4] ss:$0 sps:$4 sm:$0x33]  }
 0x108   : > { %9003 = vst [vmem:[#allocation25_spill] sm:$0xff] %v7538_v52  ;;  %1868 = vrot.lane.b32.xlu1 %v1832_v19, %s6279_s10  ;;  %v3386_v19 = vrot.slane %v3384_v51, 1  ;;  %v3835_v17 = vshrl.u32 %v6117_v56, 16  ;;  %v3838_v51 = vshll.u32 %v6117_v56, 16 }
 0x109   : > { %v1469_v63 = vpop.permute.xlu0 %1468  ;;  %v3382_v37 = vor.u32 %v3381_v22, %v3377_v20  ;;  %v1978_v39 = vsel %vm1063_vm2, %v1969_v36, %v1977_v0  ;;  %v2517_v61 = vrot.slane %v2515_v8, 1  ;;  %v6118_v20 = vld [vmem:[%s6331_s19 + $0x44] ss:$0 sps:$4 sm:$0x33]   ;;  %v3534_v36 = vrot.slane %v5568_v25, 1 }
 0x10a   : > { %v7549_v49 = vsel %vm8969_vm6, %v7398_v44, %v1469_v63  ;;  %v1475_v4 = vpop.permute.xlu1 %1474  ;;  %v3288_v44 = vshll.u32 %v7544_v43, 16  ;;  %v2513_v63 = vshrl.u32 %v5480_v7, 16  ;;  %v3837_v55 = vrot.slane %v3835_v17, 1  ;;  %v7620_v17 = vld [vmem:[%s6331_s19 + $0x44] ss:$0 sps:$4 sm:$0x11]  }
 0x10b   : > { %9004 = vst [vmem:[#allocation26_spill] sm:$0xff] %v7549_v49  ;;  %1852 = vrot.lane.b32.xlu0 %v1808_v13, %s6279_s10  ;;  %v7554_v47 = vsel %vm8969_vm6, %v7403_v58, %v1475_v4  ;;  %v5576_v13 = vcombine.low %v5320_v45, %v7501_v2  ;;  %v3699_v8 = vshrl.u32 %v6118_v20, 16  ;;  %v3702_v56 = vshll.u32 %v6118_v20, 16  ;;  %v7623_v20 = vld [vmem:[%s6331_s19 + $0xa0] sm:$0xf] }
 0x10c   : > { %9005 = vst [vmem:[#allocation27_spill] sm:$0xff] %v7554_v47  ;;  %3196 = vrot.lane.b32.xlu1 %v5544_v26, %s6280_s20  ;;  %v5472_v26 = vcombine.low %v5186_v29, %v7416_v60  ;;  %v3290_v54 = vrot.slane %v3288_v44, 1  ;;  %v3535_v29 = vrot.slane %v7544_v43, 1  ;;  %v3840_v43 = vrot.slane %v3838_v51, 2 }
 0x10d   : > { %v1473_v38 = vpop.permute.xlu0 %1472  ;;  %v3827_v3 = vshrl.u32 %v5576_v13, 16  ;;  %v3830_v5 = vshll.u32 %v5576_v13, 16  ;;  %v3558_v22 = vrot.slane %v5576_v13, 1  ;;  %v3704_v51 = vrot.slane %v3702_v56, 2 }
 0x10e   : > { %v7564_v58 = vsel %vm8969_vm6, %v7420_v23, %v1473_v38  ;;  %v1479_v41 = vpop.permute.xlu1 %1478  ;;  %v3286_v23 = vor.u32 %v3285_v46, %v3281_v30  ;;  %v2419_v2 = vshll.u32 %v5472_v26, 16  ;;  %v2417_v0 = vshrl.u32 %v5472_v26, 16  ;;  %v7596_v46 = vld [vmem:[%s6331_s19 + $0x40] sm:$0xf] }
 0x10f   : > { %9006 = vst [vmem:[#allocation28_spill] sm:$0xff] %v7564_v58  ;;  %3180 = vrot.lane.b32.xlu0 %v5536_v11, %s6280_s20  ;;  %v7571_v27 = vsel %vm8969_vm6, %v7427_v18, %v1479_v41  ;;  %v3387_v11 = vsel %vm661_vm0, %v3382_v37, %v3386_v19  ;;  %v2424_v30 = vshll.u32 %v7458_v42, 16  ;;  %v2522_v38 = vrot.slane %v2520_v28, 1  ;;  %v5233_v19 = vld [vmem:[%s6331_s19 + $0x3c] sm:$0xe] }
 0x110   : > { %9007 = vst [vmem:[#allocation29_spill] sm:$0xff] %v7571_v27  ;;  %2220 = vrot.lane.b32.xlu1 %v2114_v35, %s6281_s21  ;;  %v3291_v14 = vsel %vm661_vm0, %v3286_v23, %v3290_v54  ;;  %v2421_v45 = vrot.slane %v2419_v2, 1  ;;  %v3829_v35 = vrot.slane %v3827_v3, 1  ;;  %v3832_v37 = vrot.slane %v3830_v5, 2  ;;  %v6236_v27 = vld [vmem:[%s6331_s19 + $0x34] sm:$0xf] }
 0x111   : > { %v1477_v60 = vpop.permute.xlu0 %1476  ;;  %v3691_v41 = vshrl.u32 %v5568_v25, 16  ;;  %v3694_v42 = vshll.u32 %v5568_v25, 16  ;;  %v7607_v23 = vcombine.low %v5233_v19, %v7596_v46  ;;  %v6126_v54 = vld [vmem:[%s6331_s19 + $0x44] ss:$0 sps:$4 sm:$0x33]   ;;  %v2426_v25 = vrot.slane %v2424_v30, 1 }
 0x112   : > { %v7582_v18 = vsel %vm8969_vm6, %v7439_v6, %v1477_v60  ;;  %v7584_v62 = vpop.permute.xlu1 %1722  ;;  %v3559_v6 = vrot.slane %v7529_v15, 1  ;;  %v2518_v15 = vor.u32 %v2517_v61, %v2513_v63  ;;  %v9011_v60 = vld [vmem:[#allocation10_spill] sm:$0xff]  ;;  %v7615_v2 = vld [vmem:[%s6331_s19 + $0x98] ss:$0 sps:$4 sm:$0x11]   ;;  %v2422_v5 = vor.u32 %v2421_v45, %v2417_v0 }
 0x113   : > { %9008 = vst [vmem:[#allocation30_spill] sm:$0xff] %v7582_v18  ;;  %2204 = vrot.lane.b32.xlu0 %v1978_v39, %s6281_s21  ;;  %v3833_v63 = vor.u32 %v3832_v37, %v3829_v35  ;;  %v3693_v61 = vrot.slane %v3691_v41, 1  ;;  %v2844_v0 = vshrl.u32 %v7607_v23, 16  ;;  %v2847_v30 = vshll.u32 %v7607_v23, 16  ;;  %v7686_v58 = vld [vmem:[%s6331_s19 + $0xac] sm:$0xf] }
 0x114   : > { %3468 = vrot.lane.b32.xlu1 %v3387_v11, %s6282_s27  ;;  %v3560_v39 = vsel %vm934_vm1, %v3558_v22, %v3559_v6  ;;  %v1663_v11 = vshll.u32 %v9011_v60, 16  ;;  %v2523_v3 = vsel %vm661_vm0, %v2518_v15, %v2522_v38  ;;  %v3696_v22 = vrot.slane %v3694_v42, 2 }
 0x115   : > { %v7591_v4 = vpop.permute.xlu0 %1720  ;;  %v3701_v6 = vrot.slane %v3699_v8, 1  ;;  %v2852_v38 = vshrl.u32 %v6126_v54, 16  ;;  %v2855_v45 = vshll.u32 %v6126_v54, 16  ;;  %v1661_v35 = vshrl.u32 %v9011_v60, 16 }
 0x116   : > { %v7598_v44 = vpop.permute.xlu1 %1726  ;;  %v1665_v37 = vrot.slane %v1663_v11, 1  ;;  %v1668_v15 = vshll.u32 %v7615_v2, 16  ;;  %v2427_v41 = vsel %vm661_vm0, %v2422_v5, %v2426_v25  ;;  %v6131_v8 = vld [vmem:[%s6331_s19 + $0xa4] ss:$0 sps:$4 sm:$0x33]   ;;  %v2673_v60 = vrot.slane %v7607_v23, 1 }
 0x117   : > { %9009 = vst [vmem:[#allocation31_spill] sm:$0xff] %v7598_v44  ;;  %3452 = vrot.lane.b32.xlu0 %v3291_v14, %s6282_s27  ;;  %v3841_v14 = vor.u32 %v3840_v43, %v3837_v55  ;;  %v5161_v55 = vld [vmem:[%s6331_s19 + $0x90] sm:$0xe]  ;;  %v2674_v43 = vrot.slane %v7620_v17, 1  ;;  %v3705_v54 = vor.u32 %v3704_v51, %v3701_v6  ;;  %v2849_v25 = vrot.slane %v2847_v30, 2  ;;  %v9014_v6 = vld [vmem:[#allocation2_spill] sm:$0xff] }
 0x118   : > { %2332 = vrot.lane.b32.xlu1 %v5480_v7, %s6283_s7  ;;  %v3536_v7 = vsel %vm934_vm1, %v3534_v36, %v3535_v29  ;;  %v5241_v36 = vld [vmem:[%s6331_s19 + $0x9c] sm:$0xe]  ;;  %v5153_v29 = vld [vmem:[%s6331_s19 + $0x30] sm:$0xe]  ;;  %v2854_v5 = vrot.slane %v2852_v38, 1  ;;  %v2857_v48 = vrot.slane %v2855_v45, 2 }
 0x119   : > { %v7603_v13 = vpop.permute.xlu0 %1724  ;;  %v7641_v42 = vcombine.low %v5241_v36, %v7623_v20  ;;  %v3842_v56 = vsel %vm1063_vm2, %v3833_v63, %v3841_v14  ;;  %v7650_v36 = vcombine.low %v5153_v29, %v6236_v27  ;;  %v1670_v18 = vrot.slane %v1668_v15, 1  ;;  %v6237_v63 = vld [vmem:[%s6331_s19 + $0x94] sm:$0xf]  ;;  %v9015_v29 = vld [vmem:[#allocation14_spill] sm:$0xff]  ;;  %v5268_v45 = vld [vmem:[%s6331_s19 + $0x48] sm:$0xf] }
 0x11a   : > { %9010 = vst [vmem:[#allocation32_spill] sm:$0xff] %v7603_v13  ;;  %v7611_v28 = vpop.permute.xlu1 %1736  ;;  %v2988_v27 = vshrl.u32 %v6131_v8, 16  ;;  %v2991_v38 = vshll.u32 %v6131_v8, 16 }
 0x11b   : > { %2316 = vrot.lane.b32.xlu0 %v5472_v26, %s6283_s7  ;;  %v2980_v23 = vshrl.u32 %v7641_v42, 16  ;;  %v2983_v14 = vshll.u32 %v7641_v42, 16  ;;  %v2697_v8 = vrot.slane %v7641_v42, 1  ;;  %v1983_v32 = vshll.u32 %v7650_v36, 16 }
 0x11c   : > { %3596 = vrot.lane.b32.xlu1 %v3560_v39, %s6284_s17  ;;  %v3697_v39 = vor.u32 %v3696_v22, %v3693_v61  ;;  %v7658_v61 = vcombine.low %v5161_v55, %v6237_v63  ;;  %v9013_v22 = vld [vmem:[#allocation9_spill] sm:$0xff] }
 0x11d   : > { %v7628_v26 = vpop.permute.xlu0 %1728  ;;  %v3962_v51 = vsel %vm3960_vm3, %v9014_v6, %v9013_v22  ;;  %v2858_v22 = vor.u32 %v2857_v48, %v2854_v5  ;;  %v5269_v6 = vld [vmem:[%s6331_s19 + $0x4c] sm:$0xf]  ;;  %v6238_v48 = vld [vmem:[%s6331_s19 + $0x38] ss:$0 sps:$4 sm:$0x11]  }
 0x11e   : > { %9012 = vst [vmem:[#allocation10_spill] sm:$0xff] %v7628_v26  ;;  %v7633_v19 = vpop.permute.xlu1 %2728  ;;  %v3706_v30 = vsel %vm1063_vm2, %v3697_v39, %v3705_v54  ;;  %v2698_v54 = vrot.slane %v7655_v40, 1  ;;  %v7691_v5 = vld [vmem:[%s6331_s19 + $0x50] ss:$0 sps:$4 sm:$0x11]   ;;  %v7694_v42 = vcombine.low %v5268_v45, %v5269_v6 }
 0x11f   : > { %3580 = vrot.lane.b32.xlu0 %v3536_v7, %s6284_s17  ;;  %v2846_v7 = vrot.slane %v2844_v0, 1  ;;  %v1675_v0 = vshll.u32 %v9015_v29, 16  ;;  %v6144_v26 = vld [vmem:[%s6331_s19 + $0x98] ss:$0 sps:$4 sm:$0x33]  }
 0x120   : > { %2604 = vrot.lane.b32.xlu1 %v2523_v3, %s6285_s26  ;;  %v1666_v3 = vor.u32 %v1665_v37, %v1661_v35  ;;  %v9016_v35 = vld [vmem:[#allocation18_spill] sm:$0xff]  ;;  %v9017_v37 = vld [vmem:[#allocation5_spill] sm:$0xff] }
 0x121   : > { %v7647_v11 = vpop.permute.xlu0 %2712  ;;  %v3978_v15 = vsel %vm3960_vm3, %v9017_v37, %v9016_v35  ;;  %v2850_v63 = vor.u32 %v2849_v25, %v2846_v7  ;;  %v1809_v35 = vrot.slane %v7650_v36, 1  ;;  %v5284_v37 = vld [vmem:[%s6331_s19 + $0xa8] sm:$0xf]  ;;  %v2985_v7 = vrot.slane %v2983_v14, 2 }
 0x122   : > { %v7652_v59 = vpop.permute.xlu1 %3080  ;;  %v1671_v39 = vsel %vm661_vm0, %v1666_v3, %v1670_v18  ;;  %v2990_v25 = vrot.slane %v2988_v27, 1  ;;  %v2993_v18 = vrot.slane %v2991_v38, 2  ;;  %v1980_v3 = vshrl.u32 %v7650_v36, 16 }
 0x123   : > { %2588 = vrot.lane.b32.xlu0 %v2427_v41, %s6285_s26  ;;  %v2675_v41 = vsel %vm934_vm1, %v2673_v60, %v2674_v43  ;;  %v1810_v43 = vrot.slane %v6238_v48, 1  ;;  %v2982_v60 = vrot.slane %v2980_v23, 1  ;;  %v2859_v23 = vsel %vm1063_vm2, %v2850_v63, %v2858_v22 }
 0x124   : > { %3948 = vrot.lane.b32.xlu1 %v3842_v56, %s6286_s28  ;;  %v6138_v56 = vld [vmem:[%s6331_s19 + $0x38] ss:$0 sps:$4 sm:$0x33]   ;;  %v7705_v38 = vrot.slane %v1675_v0, 1  ;;  %v4011_v45 = vsel %vm8971_vm4, %v3978_v15, %v7197_v31  ;;  %v2994_v0 = vor.u32 %v2993_v18, %v2990_v25  ;;  %v5313_v31 = vld [vmem:[%s6331_s19 + $0x48] sm:$0xe] }
 0x125   : > { %v7673_v55 = vpop.permute.xlu0 %3064  ;;  %v1988_v14 = vshrl.u32 %v6138_v56, 16  ;;  %v1991_v27 = vshll.u32 %v6138_v56, 16  ;;  %v1811_v63 = vsel %vm934_vm1, %v1809_v35, %v1810_v43  ;;  %v2986_v22 = vor.u32 %v2985_v7, %v2982_v60 }
 0x126   : > { %v7678_v47 = vpop.permute.xlu1 %1864  ;;  %v7718_v56 = vcombine.low %v5284_v37, %v7686_v58  ;;  %v1982_v15 = vrot.slane %v1980_v3, 1  ;;  %v2116_v37 = vshrl.u32 %v7658_v61, 16  ;;  %v2119_v43 = vshll.u32 %v7658_v61, 16 }
 0x127   : > { %3932 = vrot.lane.b32.xlu0 %v3706_v30, %s6286_s28  ;;  %v3995_v30 = vsel %vm8971_vm4, %v3962_v51, %v7071_v53  ;;  %v5188_v53 = vld [vmem:[%s6331_s19 + $0x3c] sm:$0xf]  ;;  %v2699_v51 = vsel %vm934_vm1, %v2697_v8, %v2698_v54  ;;  %v1993_v1 = vrot.slane %v1991_v27, 2  ;;  %v3300_v8 = vshll.u32 %v7691_v5, 16 }
 0x128   : > { %2718 = vrot.lane.b32.xlu1 %v2675_v41, %s6277_s29  ;;  %v4028_v36 = vsel %vm8970_vm5, %v3995_v30, %v7306_v50  ;;  %v1985_v41 = vrot.slane %v1983_v32, 2  ;;  %v3295_v50 = vshll.u32 %v7694_v42, 16  ;;  %v7727_v54 = vcombine.low %v5188_v53, %v7596_v46  ;;  %v7740_v46 = vld [vmem:[%s6331_s19 + $0xb0] ss:$0 sps:$4 sm:$0x11]  }
 0x129   : > { %v7701_v48 = vpop.permute.xlu0 %1848  ;;  %v2124_v60 = vshrl.u32 %v6144_v26, 16  ;;  %v2127_v32 = vshll.u32 %v6144_v26, 16  ;;  %v4044_v7 = vsel %vm8970_vm5, %v4011_v45, %v7376_v34  ;;  %v7736_v25 = vcombine.low %v5313_v31, %v5269_v6  ;;  %v5321_v31 = vld [vmem:[%s6331_s19 + $0xa8] sm:$0xe] }
 0x12a   : > { %v7711_v52 = vpop.permute.xlu1 %3192  ;;  %v1833_v18 = vrot.slane %v7658_v61, 1  ;;  %v3391_v3 = vshll.u32 %v7718_v56, 16  ;;  %v1834_v26 = vrot.slane %v7615_v2, 1  ;;  %v3297_v34 = vrot.slane %v3295_v50, 1 }
 0x12b   : > { %1742 = vrot.lane.b32.xlu0 %v1671_v39, %s6276_s24  ;;  %v1990_v39 = vrot.slane %v1988_v14, 1  ;;  %v3293_v14 = vshrl.u32 %v7694_v42, 16  ;;  %v1986_v6 = vor.u32 %v1985_v41, %v1982_v15  ;;  %v3302_v61 = vrot.slane %v3300_v8, 1  ;;  %v5204_v41 = vld [vmem:[%s6331_s19 + $0x9c] sm:$0xf] }
 0x12c   : > { %3070 = vrot.lane.b32.xlu1 %v2859_v23, %s6278_s5  ;;  %v2995_v23 = vsel %vm1063_vm2, %v2986_v22, %v2994_v0  ;;  %v2431_v53 = vshll.u32 %v7727_v54, 16  ;;  %v2121_v44 = vrot.slane %v2119_v43, 2  ;;  %v2126_v22 = vrot.slane %v2124_v60, 1 }
 0x12d   : > { %v7723_v30 = vpop.permute.xlu0 %3176  ;;  %v1994_v45 = vor.u32 %v1993_v1, %v1990_v39  ;;  %v2129_v0 = vrot.slane %v2127_v32, 2  ;;  %v3389_v2 = vshrl.u32 %v7718_v56, 16  ;;  %v3393_v50 = vrot.slane %v3391_v3, 1 }
 0x12e   : > { %v7729_v35 = vpop.permute.xlu1 %2216  ;;  %v3396_v49 = vshll.u32 %v7740_v46, 16  ;;  %v2429_v1 = vshrl.u32 %v7727_v54, 16  ;;  %v1835_v15 = vsel %vm934_vm1, %v1833_v18, %v1834_v26  ;;  %v3298_v39 = vor.u32 %v3297_v34, %v3293_v14 }
 0x12f   : > { %2734 = vrot.lane.b32.xlu0 %v2699_v51, %s6277_s29  ;;  %v2436_v8 = vshll.u32 %v7620_v17, 16  ;;  %v4061_v43 = vsel %vm8969_vm6, %v4028_v36, %v7460_v33  ;;  %v1995_v32 = vsel %vm1063_vm2, %v1986_v6, %v1994_v45  ;;  %v2433_v3 = vrot.slane %v2431_v53, 1  ;;  %v6152_v36 = vld [vmem:[%s6331_s19 + $0x50] ss:$0 sps:$4 sm:$0x33]  }
 0x130   : > { %1854 = vrot.lane.b32.xlu1 %v1811_v63, %s6279_s10  ;;  %v2118_v63 = vrot.slane %v2116_v37, 1  ;;  %v3708_v37 = vshrl.u32 %v7736_v25, 16  ;;  %v4077_v18 = vsel %vm8969_vm6, %v4044_v7, %v7532_v9  ;;  %v7772_v17 = vcombine.low %v5321_v31, %v7686_v58 }
 0x131   : > { %v7747_v27 = vpop.permute.xlu0 %2200  ;;  %v7775_v33 = vcombine.low %v5204_v41, %v7623_v20  ;;  %v2130_v14 = vor.u32 %v2129_v0, %v2126_v22  ;;  %v3537_v34 = vrot.slane %v7736_v25, 1  ;;  %v3538_v6 = vrot.slane %v7691_v5, 1 }
 0x132   : > { %v7750_v51 = vpop.permute.xlu1 %3464  ;;  %v2122_v26 = vor.u32 %v2121_v44, %v2118_v63  ;;  %v3303_v9 = vsel %vm661_vm0, %v3298_v39, %v3302_v61  ;;  %v3394_v58 = vor.u32 %v3393_v50, %v3389_v2  ;;  %v3398_v7 = vrot.slane %v3396_v49, 1 }
 0x133   : > { %3086 = vrot.lane.b32.xlu0 %v2995_v23, %s6278_s5  ;;  %vm8974_vm6 = vcmask 424960   ;;  %v2434_v20 = vor.u32 %v2433_v3, %v2429_v1  ;;  %v2438_v53 = vrot.slane %v2436_v8, 1  ;;  %v7783_v31 = vrot.slane %v3708_v37, 1  ;;  %v6154_v1 = vld [vmem:[%s6331_s19 + $0xb0] ss:$0 sps:$4 sm:$0x33]  }
 0x134   : > { %3182 = vrot.lane.b32.xlu1 %v7694_v42, %s6280_s20  ;;  %v3711_v42 = vshll.u32 %v7736_v25, 16  ;;  %vm8973_vm5 = vcmask 523264   ;;  %v3716_v25 = vshrl.u32 %v6152_v36, 16  ;;  %v3719_v63 = vshll.u32 %v6152_v36, 16 }
 0x135   : > { %v7765_v60 = vpop.permute.xlu0 %3448  ;;  %v2527_v5 = vshll.u32 %v7775_v33, 16  ;;  %v2131_v49 = vsel %vm1063_vm2, %v2122_v26, %v2130_v14  ;;  %v3539_v61 = vsel %vm934_vm1, %v3537_v34, %v3538_v6  ;;  %vm8972_vm4 = vcmask 982016   ;;  %v7813_v36 = vld [vmem:[%s6331_s19 + $0xa4] ss:$0 sps:$4 sm:$0x11]  }
 0x136   : > { %v2329_v23 = vpop.permute.xlu1 %2328  ;;  %v7785_v41 = vrot.slane %v3711_v42, 2  ;;  %v2532_v22 = vshll.u32 %v7655_v40, 16  ;;  %v4094_v0 = vsel %vm4092_vm7, %v4061_v43, %v7591_v4  ;;  %v3399_v2 = vsel %vm661_vm0, %v3394_v58, %v3398_v7  ;;  %v5242_v34 = vld [vmem:[%s6331_s19 + $0xa8] sm:$0xe] }
 0x137   : > { %1870 = vrot.lane.b32.xlu0 %v1835_v15, %s6279_s10  ;;  %v3561_v50 = vrot.slane %v7772_v17, 1  ;;  %v4110_v15 = vsel %vm4092_vm7, %v4077_v18, %v7611_v28  ;;  %v2439_v40 = vsel %vm661_vm0, %v2434_v20, %v2438_v53  ;;  %v2525_v8 = vshrl.u32 %v7775_v33, 16  ;;  %v7816_v28 = vld [vmem:[%s6331_s19 + $0xac] sm:$0xf] }
 0x138   : > { %2206 = vrot.lane.b32.xlu1 %v1995_v32, %s6281_s21  ;;  %v3714_v4 = vor.u32 %v7785_v41, %v7783_v31  ;;  %v4143_v37 = vsel %vm4125_vm8, %v4110_v15, %v7678_v47  ;;  %v7808_v32 = vrot.slane %v3716_v25, 1  ;;  %v7810_v3 = vrot.slane %v3719_v63, 2  ;;  %v6159_v63 = vld [vmem:[%s6331_s19 + $0xb0] ss:$0 sps:$4 sm:$0x33]  }
 0x139   : > { %v2313_v45 = vpop.permute.xlu0 %2312  ;;  %v2529_v42 = vrot.slane %v2527_v5, 1  ;;  %v4324_v18 = vsel %vm4306_vm9, %v7633_v19, %v7652_v59  ;;  %v4176_v26 = vsel %vm4158_vm10, %v4143_v37, %v7729_v35  ;;  %v2534_v47 = vrot.slane %v2532_v22, 1 }
 0x13a   : > { %v3593_v44 = vpop.permute.xlu1 %3592  ;;  %v3844_v14 = vshrl.u32 %v7772_v17, 16  ;;  %v4357_v6 = vsel %vm4339_vm11, %v4324_v18, %v7711_v52  ;;  %v3847_v59 = vshll.u32 %v7772_v17, 16  ;;  %v3852_v58 = vshrl.u32 %v6154_v1, 16 }
 0x13b   : > { %3198 = vrot.lane.b32.xlu0 %v7718_v56, %s6280_s20  ;;  %v3562_v56 = vrot.slane %v7740_v46, 1  ;;  %v4127_v35 = vsel %vm4125_vm8, %v4094_v0, %v7701_v48  ;;  %v4390_v7 = vsel %vm4372_vm13, %v4357_v6, %v7750_v51  ;;  %v3855_v25 = vshll.u32 %v6154_v1, 16  ;;  %v7863_v0 = vld [vmem:[%s6331_s19 + $0x4c] sm:$0xf] }
 0x13c   : > { %3454 = vrot.lane.b32.xlu1 %v3303_v9, %s6282_s27  ;;  %v4209_v9 = vsel %vm4191_vm12, %v4176_v26, %v2329_v23  ;;  %v4308_v52 = vsel %vm4306_vm9, %v7647_v11, %v7673_v55  ;;  %v4423_v23 = vsel %vm4405_vm15, %v4390_v7, %v3593_v44  ;;  %v7845_v5 = vcombine.low %v5242_v34, %v7816_v28  ;;  %v6160_v34 = vld [vmem:[%s6331_s19 + $0x50] ss:$0 sps:$4 sm:$0x33]   ;;  %v5162_v7 = vld [vmem:[%s6331_s19 + $0x9c] sm:$0xe] }
 0x13d   : > { %v3577_v39 = vpop.permute.xlu0 %3576  ;;  %v4341_v51 = vsel %vm4339_vm11, %v4308_v52, %v7723_v30  ;;  %v3722_v22 = vor.u32 %v7810_v3, %v7808_v32  ;;  %v2530_v37 = vor.u32 %v2529_v42, %v2525_v8  ;;  %v3854_v3 = vrot.slane %v3852_v58, 1  ;;  %v7895_v46 = vld [vmem:[%s6331_s19 + $0xb0] ss:$0 sps:$4 sm:$0x11]  }
 0x13e   : > { %v2601_v43 = vpop.permute.xlu1 %2600  ;;  %v3857_v18 = vrot.slane %v3855_v25, 2  ;;  %v3000_v8 = vshll.u32 %v7845_v5, 16  ;;  %v3005_v42 = vshrl.u32 %v6159_v63, 16  ;;  %v3008_v26 = vshll.u32 %v6159_v63, 16 }
 0x13f   : > { %2222 = vrot.lane.b32.xlu0 %v2131_v49, %s6281_s21  ;;  %v4242_v20 = vsel %vm4224_vm14, %v4209_v9, %v2601_v43  ;;  %v3849_v43 = vrot.slane %v3847_v59, 2  ;;  %v9018_v9 = vshrl.u32 %v9015_v29, 16  ;;  %v2700_v52 = vrot.slane %v7845_v5, 1 }
 0x140   : > { %2318 = vrot.lane.b32.xlu1 %v7727_v54, %s6283_s7  ;;  %v4160_v54 = vsel %vm4158_vm10, %v4127_v35, %v7747_v27  ;;  %v4374_v27 = vsel %vm4372_vm13, %v4341_v51, %v7765_v60  ;;  %v4283_v30 = vsel %vm8972_vm4, %v4242_v20, %v7633_v19  ;;  %v3846_v60 = vrot.slane %v3844_v14, 1  ;;  %v7901_v35 = vld [vmem:[%s6331_s19 + $0x50] ss:$0 sps:$4 sm:$0x11]  }
 0x141   : > { %v2585_v53 = vpop.permute.xlu0 %2584  ;;  %v4193_v49 = vsel %vm4191_vm12, %v4160_v54, %v2313_v45  ;;  %v1680_v45 = vshll.u32 %v7813_v36, 16  ;;  %v4407_v1 = vsel %vm4405_vm15, %v4374_v27, %v3577_v39  ;;  %v2997_v19 = vshrl.u32 %v7845_v5, 16 }
 0x142   : > { %v3945_v48 = vpop.permute.xlu1 %3944  ;;  %v4226_v44 = vsel %vm4224_vm14, %v4193_v49, %v2585_v53  ;;  %v3858_v58 = vor.u32 %v3857_v18, %v3854_v3  ;;  %v3002_v29 = vrot.slane %v3000_v8, 2  ;;  %v3007_v41 = vrot.slane %v3005_v42, 1  ;;  %v7926_v3 = vld [vmem:[%s6331_s19 + $0x58] sm:$0xf]  ;;  %v6240_v8 = vld [vmem:[%s6331_s19 + $0x40] sm:$0xf] }
 0x143   : > { %3470 = vrot.lane.b32.xlu0 %v3399_v2, %s6282_s27  ;;  %v4456_v55 = vsel %vm8974_vm6, %v4423_v23, %v3945_v48  ;;  %v5234_v2 = vld [vmem:[%s6331_s19 + $0x48] sm:$0xe]  ;;  %v4259_v39 = vsel %vm8972_vm4, %v4226_v44, %v7647_v11  ;;  %v3723_v11 = vsel %vm1063_vm2, %v3714_v4, %v3722_v22  ;;  %v1682_v59 = vrot.slane %v1680_v45, 1  ;;  %v5154_v23 = vld [vmem:[%s6331_s19 + $0x3c] sm:$0xe] }
 0x144   : > { %3582 = vrot.lane.b32.xlu1 %v3539_v61, %s6284_s17  ;;  %5623 = vmatprep.mubr.msk.bf16.mxu1 %vm8973_vm5, %v4456_v55  ;;  %v5506_v14 = vcombine.low %v5234_v2, %v7863_v0  ;;  %v2999_v31 = vrot.slane %v2997_v19, 1  ;;  %v2869_v53 = vshrl.u32 %v6160_v34, 16  ;;  %v2701_v54 = vrot.slane %v7895_v46, 1  ;;  %v6239_v48 = vld [vmem:[%s6331_s19 + $0xa0] sm:$0xf] }
 0x145   : > { %v3929_v15 = vpop.permute.xlu0 %3928  ;;  %4737 = vmatmul.mubr.bf16.vlgmr.msra.gmra.mrb[0].mxu1 %v4283_v30  ;;  %v5450_v51 = vcombine.low %v5162_v7, %v6239_v48  ;;  %v2677_v55 = vrot.slane %v7901_v35, 1  ;;  %v5286_v30 = vld [vmem:[%s6331_s19 + $0xb4] sm:$0xf]  ;;  %v5287_v45 = vld [vmem:[%s6331_s19 + $0xb8] sm:$0xf]  ;;  %v9019_v19 = vld [vmem:[#allocation6_spill] sm:$0xff]  ;;  %v5442_v42 = vcombine.low %v5154_v23, %v6240_v8 }
 0x146   : > { %v4440_v61 = vsel %vm8974_vm6, %v4407_v1, %v3929_v15  ;;  %v7868_v32 = vpop.permute.xlu1 %2714  ;;  %v2861_v4 = vshrl.u32 %v5506_v14, 16  ;;  %v2864_v20 = vshll.u32 %v5506_v14, 16  ;;  %v2676_v27 = vrot.slane %v5506_v14, 1  ;;  %v6165_v18 = vld [vmem:[%s6331_s19 + $0xa4] ss:$0 sps:$4 sm:$0x33]  }
 0x147   : > { %2334 = vrot.lane.b32.xlu0 %v7775_v33, %s6283_s7  ;;  %5615 = vmatprep.mubr.msk.bf16.mxu0 %vm8973_vm5, %v4440_v61  ;;  %v3563_v33 = vsel %vm934_vm1, %v3561_v50, %v3562_v56  ;;  %v2535_v50 = vsel %vm661_vm0, %v2530_v37, %v2534_v47  ;;  %v3850_v56 = vor.u32 %v3849_v43, %v3846_v60  ;;  %v2872_v47 = vshll.u32 %v6160_v34, 16  ;;  %v5270_v60 = vld [vmem:[%s6331_s19 + $0x54] sm:$0xf]  ;;  %v6166_v34 = vld [vmem:[%s6331_s19 + $0x44] ss:$0 sps:$4 sm:$0x33]  }
 0x148   : > { %4673 = vmatmul.mubr.bf16.vlgmr.msra.gmra.mrb[0].mxu0 %v4259_v39  ;;  %2590 = vrot.lane.b32.xlu1 %v2439_v40, %s6285_s26  ;;  %v1678_v40 = vor.u32 %v7705_v38, %v9018_v9  ;;  %v3010_v38 = vrot.slane %v3008_v26, 2  ;;  %v3003_v44 = vor.u32 %v3002_v29, %v2999_v31  ;;  %v2863_v2 = vrot.slane %v2861_v4, 1  ;;  %v9020_v26 = vld [vmem:[#allocation13_spill] sm:$0xff] }
 0x149   : > { %v7885_v6 = vpop.permute.xlu0 %1738  ;;  %v3859_v22 = vsel %vm1063_vm2, %v3850_v56, %v3858_v58  ;;  %v2866_v1 = vrot.slane %v2864_v20, 2  ;;  %v2871_v15 = vrot.slane %v2869_v53, 1  ;;  %v2874_v37 = vrot.slane %v2872_v47, 2  ;;  %v5322_v53 = vld [vmem:[%s6331_s19 + $0xb4] sm:$0xe] }
 0x14a   : > { %v7897_v17 = vpop.permute.xlu1 %3066  ;;  %v1683_v63 = vsel %vm661_vm0, %v1678_v40, %v1682_v59  ;;  %v3011_v5 = vor.u32 %v3010_v38, %v3007_v41  ;;  %v2702_v61 = vsel %vm934_vm1, %v2700_v52, %v2701_v54  ;;  %v1836_v40 = vrot.slane %v5450_v51, 1  ;;  %v7953_v48 = vld [vmem:[%s6331_s19 + $0xbc] ss:$0 sps:$4 sm:$0x11]  }
 0x14b   : > { %3598 = vrot.lane.b32.xlu0 %v3563_v33, %s6284_s17  ;;  %v7938_v59 = vcombine.low %v5286_v30, %v5287_v45  ;;  %v2875_v56 = vor.u32 %v2874_v37, %v2871_v15  ;;  %v1837_v58 = vrot.slane %v7813_v36, 1  ;;  %v7943_v7 = vcombine.low %v5270_v60, %v7926_v3  ;;  %v9025_v33 = vld [vmem:[#allocation19_spill] sm:$0xff] }
 0x14c   : > { %3934 = vrot.lane.b32.xlu1 %v3723_v11, %s6286_s28  ;;  %v2678_v11 = vsel %vm934_vm1, %v2676_v27, %v2677_v55  ;;  %v3012_v9 = vsel %vm1063_vm2, %v3003_v44, %v3011_v5  ;;  %v2133_v29 = vshrl.u32 %v5450_v51, 16  ;;  %v2136_v41 = vshll.u32 %v5450_v51, 16  ;;  %v6241_v27 = vld [vmem:[%s6331_s19 + $0x44] ss:$0 sps:$4 sm:$0x11]  }
 0x14d   : > { %v7906_v25 = vpop.permute.xlu0 %2730  ;;  %v2141_v38 = vshrl.u32 %v6165_v18, 16  ;;  %v2144_v4 = vshll.u32 %v6165_v18, 16  ;;  %v1997_v47 = vshrl.u32 %v5442_v42, 16  ;;  %v2005_v52 = vshrl.u32 %v6166_v34, 16  ;;  %v5314_v18 = vld [vmem:[%s6331_s19 + $0x54] sm:$0xe] }
 0x14e   : > { %v7913_v49 = vpop.permute.xlu1 %1850  ;;  %v2008_v54 = vshll.u32 %v6166_v34, 16  ;;  %v1687_v36 = vshll.u32 %v9020_v26, 16  ;;  %v1812_v23 = vrot.slane %v5442_v42, 1  ;;  %v3403_v51 = vshll.u32 %v7938_v59, 16 }
 0x14f   : > { %2606 = vrot.lane.b32.xlu0 %v2535_v50, %s6285_s26  ;;  %v2867_v50 = vor.u32 %v2866_v1, %v2863_v2  ;;  %v1813_v44 = vrot.slane %v6241_v27, 1  ;;  %v7961_v5 = vld [vmem:[%s6331_s19 + $0x5c] ss:$0 sps:$4 sm:$0x11]   ;;  %v3307_v30 = vshll.u32 %v7943_v7, 16  ;;  %v2135_v1 = vrot.slane %v2133_v29, 1 }
 0x150   : > { %1744 = vrot.lane.b32.xlu1 %v1683_v63, %s6276_s24  ;;  %v2000_v63 = vshll.u32 %v5442_v42, 16  ;;  %v2138_v15 = vrot.slane %v2136_v41, 2  ;;  %v2143_v37 = vrot.slane %v2141_v38, 1  ;;  %v2146_v60 = vrot.slane %v2144_v4, 2 }
 0x151   : > { %v7922_v43 = vpop.permute.xlu0 %3082  ;;  %v2876_v55 = vsel %vm1063_vm2, %v2867_v50, %v2875_v56  ;;  %v1999_v8 = vrot.slane %v1997_v47, 1  ;;  %v2007_v34 = vrot.slane %v2005_v52, 1  ;;  %v3405_v50 = vrot.slane %v3403_v51, 1  ;;  %v5190_v47 = vld [vmem:[%s6331_s19 + $0x48] sm:$0xf] }
 0x152   : > { %v7932_v14 = vpop.permute.xlu1 %3178  ;;  %v2002_v42 = vrot.slane %v2000_v63, 2  ;;  %v3408_v56 = vshll.u32 %v7953_v48, 16  ;;  %v1814_v29 = vsel %vm934_vm1, %v1812_v23, %v1813_v44  ;;  %v3305_v41 = vshrl.u32 %v7943_v7, 16  ;;  %v9021_v63 = vld [vmem:[#allocation12_spill] sm:$0xff]  ;;  %v9022_v52 = vld [vmem:[#allocation3_spill] sm:$0xff] }
 0x153   : > { %3950 = vrot.lane.b32.xlu0 %v3859_v22, %s6286_s28  ;;  %v1838_v22 = vsel %vm934_vm1, %v1836_v40, %v1837_v58  ;;  %v3401_v40 = vshrl.u32 %v7938_v59, 16  ;;  %v5206_v58 = vld [vmem:[%s6331_s19 + $0xa8] sm:$0xf]  ;;  %v3309_v38 = vrot.slane %v3307_v30, 1  ;;  %v3312_v4 = vshll.u32 %v7961_v5, 16 }
 0x154   : > { %2736 = vrot.lane.b32.xlu1 %v2702_v61, %s6277_s29  ;;  %v2139_v27 = vor.u32 %v2138_v15, %v2135_v1  ;;  %vm9026_vm4 = vcmask 195584   ;;  %v7991_v30 = vcombine.low %v5314_v18, %v7926_v3  ;;  %v2003_v39 = vor.u32 %v2002_v42, %v1999_v8 }
 0x155   : > { %v7945_v31 = vpop.permute.xlu0 %1866  ;;  %v7995_v13 = vcombine.low %v5206_v58, %v7816_v28  ;;  %v3314_v1 = vrot.slane %v3312_v4, 1  ;;  %v3565_v15 = vrot.slane %v7953_v48, 1  ;;  %vm9030_vm6 = vcmask 392192  }
 0x156   : > { %v7947_v20 = vpop.permute.xlu1 %2202  ;;  %v3541_v48 = vrot.slane %v7961_v5, 1  ;;  %v4310_v4 = vsel %vm4306_vm9, %v7868_v32, %v7897_v17 }
 0x157   : > { %2720 = vrot.lane.b32.xlu0 %v2678_v11, %s6277_s29  ;;  %v2010_v11 = vrot.slane %v2008_v54, 2  ;;  %v9024_v54 = vld [vmem:[#allocation4_spill] sm:$0xff] }
 0x158   : > { %3088 = vrot.lane.b32.xlu1 %v3012_v9, %s6278_s5  ;;  %v7970_v9 = vcombine.low %v5322_v53, %v5287_v45  ;;  %v3964_v45 = vsel %vm3960_vm3, %v9022_v52, %v9021_v63  ;;  %v9023_v53 = vld [vmem:[#allocation17_spill] sm:$0xff]  ;;  %v3406_v63 = vor.u32 %v3405_v50, %v3401_v40  ;;  %v3410_v52 = vrot.slane %v3408_v56, 1 }
 0x159   : > { %v7964_v2 = vpop.permute.xlu0 %3194  ;;  %v3980_v51 = vsel %vm3960_vm3, %v9024_v54, %v9023_v53  ;;  %v3997_v23 = vsel %vm9026_vm4, %v3964_v45, %v9025_v33  ;;  %v2011_v12 = vor.u32 %v2010_v11, %v2007_v34  ;;  %v7998_v53 = vcombine.low %v5190_v47, %v7863_v0  ;;  %vm9027_vm3 = vmmov %vm9026_vm4  ;;  %v6171_v34 = vld [vmem:[%s6331_s19 + $0xbc] ss:$0 sps:$4 sm:$0x33]  }
 0x15a   : > { %v7966_v61 = vpop.permute.xlu1 %3450  ;;  %v3310_v33 = vor.u32 %v3309_v38, %v3305_v41  ;;  %v3564_v3 = vrot.slane %v7970_v9, 1  ;;  %vm9028_vm4 = vcmask 293888   ;;  %v3411_v11 = vsel %vm661_vm0, %v3406_v63, %v3410_v52 }
 0x15b   : > { %3072 = vrot.lane.b32.xlu0 %v2876_v55, %s6278_s5  ;;  %v4030_v28 = vsel %vm9028_vm4, %v3997_v23, %v7292_v24  ;;  %vm9029_vm5 = vmmov %vm9028_vm4  ;;  %v2539_v40 = vshll.u32 %v7995_v13, 16  ;;  %v3869_v41 = vshrl.u32 %v6171_v34, 16  ;;  %v3872_v38 = vshll.u32 %v6171_v34, 16 }
 0x15c   : > { %1872 = vrot.lane.b32.xlu1 %v1838_v22, %s6279_s10  ;;  %v2147_v22 = vor.u32 %v2146_v60, %v2143_v37  ;;  %v8004_v37 = vrot.slane %v1687_v36, 1  ;;  %v4013_v60 = vsel %vm9027_vm3, %v3980_v51, %v7171_v16  ;;  %v4063_v8 = vsel %vm9030_vm6, %v4030_v28, %v7441_v21  ;;  %vm9031_vm3 = vmmov %vm9030_vm6 }
 0x15d   : > { %v7986_v55 = vpop.permute.xlu0 %2218  ;;  %v3540_v36 = vrot.slane %v7991_v30, 1  ;;  %v4096_v24 = vsel %vm4092_vm7, %v4063_v8, %v7584_v62  ;;  %v3315_v21 = vsel %vm661_vm0, %v3310_v33, %v3314_v1  ;;  %v8031_v5 = vsel %vm934_vm1, %v3564_v3, %v3565_v15 }
 0x15e   : > { %v2315_v44 = vpop.permute.xlu1 %2314  ;;  %v2148_v18 = vsel %vm1063_vm2, %v2139_v27, %v2147_v22  ;;  %v2537_v62 = vshrl.u32 %v7995_v13, 16  ;;  %v4129_v56 = vsel %vm4125_vm8, %v4096_v24, %v7913_v49  ;;  %v2448_v47 = vshll.u32 %v7901_v35, 16  ;;  %v6172_v27 = vld [vmem:[%s6331_s19 + $0x5c] ss:$0 sps:$4 sm:$0x33]  }
 0x15f   : > { %1856 = vrot.lane.b32.xlu0 %v1814_v29, %s6279_s10  ;;  %v8042_v29 = vsel %vm934_vm1, %v3540_v36, %v3541_v48  ;;  %v4343_v49 = vsel %vm4339_vm11, %v4310_v4, %v7932_v14  ;;  %v2541_v54 = vrot.slane %v2539_v40, 1  ;;  %v3874_v52 = vrot.slane %v3872_v38, 2  ;;  %v8094_v24 = vld [vmem:[%s6331_s19 + $0xb8] sm:$0xf] }
 0x160   : > { %3200 = vrot.lane.b32.xlu1 %v7938_v59, %s6280_s20  ;;  %v4046_v59 = vsel %vm9029_vm5, %v4013_v60, %v7367_v10  ;;  %v2012_v10 = vsel %vm1063_vm2, %v2003_v39, %v2011_v12  ;;  %v3861_v12 = vshrl.u32 %v7970_v9, 16  ;;  %v3864_v39 = vshll.u32 %v7970_v9, 16  ;;  %v8072_v60 = vld [vmem:[%s6331_s19 + $0xb0] ss:$0 sps:$4 sm:$0x11]  }
 0x161   : > { %v8010_v0 = vpop.permute.xlu0 %3466  ;;  %v4079_v16 = vsel %vm9031_vm3, %v4046_v59, %v7522_v57  ;;  %v2443_v57 = vshll.u32 %v7998_v53, 16  ;;  %v2441_v9 = vshrl.u32 %v7998_v53, 16  ;;  %v4376_v17 = vsel %vm4372_vm13, %v4343_v49, %v7966_v61  ;;  %v8104_v40 = vld [vmem:[%s6331_s19 + $0x50] ss:$0 sps:$4 sm:$0x11]  }
 0x162   : > { %v3579_v42 = vpop.permute.xlu1 %3578  ;;  %v8060_v23 = vrot.slane %v3861_v12, 1  ;;  %v8062_v35 = vrot.slane %v3864_v39, 2  ;;  %v3725_v33 = vshrl.u32 %v7991_v30, 16  ;;  %vm9032_vm5 = vcmask 424960  }
 0x163   : > { %3184 = vrot.lane.b32.xlu0 %v7943_v7, %s6280_s20  ;;  %v2544_v7 = vshll.u32 %v7895_v46, 16  ;;  %v4162_v46 = vsel %vm4158_vm10, %v4129_v56, %v7947_v20  ;;  %v2445_v51 = vrot.slane %v2443_v57, 1  ;;  %v4409_v14 = vsel %vm4405_vm15, %v4376_v17, %v3579_v42  ;;  %vm9036_vm3 = vmmov %vm9032_vm5 }
 0x164   : > { %2224 = vrot.lane.b32.xlu1 %v2148_v18, %s6281_s21  ;;  %v4195_v45 = vsel %vm4191_vm12, %v4162_v46, %v2315_v44  ;;  %v8065_v44 = vrot.slane %v3869_v41, 1  ;;  %v2450_v3 = vrot.slane %v2448_v47, 1  ;;  %v3728_v15 = vshll.u32 %v7991_v30, 16  ;;  %v6179_v41 = vld [vmem:[%s6331_s19 + $0xbc] ss:$0 sps:$4 sm:$0x33]  }
 0x165   : > { %v2331_v50 = vpop.permute.xlu0 %2330  ;;  %v2546_v61 = vrot.slane %v2544_v7, 1  ;;  %v4112_v28 = vsel %vm4092_vm7, %v4079_v16, %v7885_v6  ;;  %vm9033_vm6 = vcmask 523264   ;;  %vm9034_vm4 = vcmask 982016   ;;  %v8112_v7 = vld [vmem:[%s6331_s19 + $0x58] sm:$0xf] }
 0x166   : > { %v2587_v58 = vpop.permute.xlu1 %2586  ;;  %v3733_v59 = vshrl.u32 %v6172_v27, 16  ;;  %v3736_v8 = vshll.u32 %v6172_v27, 16  ;;  %v4145_v30 = vsel %vm4125_vm8, %v4112_v28, %v7945_v31  ;;  %v2542_v36 = vor.u32 %v2541_v54, %v2537_v62 }
 0x167   : > { %2208 = vrot.lane.b32.xlu0 %v2012_v10, %s6281_s21  ;;  %v4228_v20 = vsel %vm4224_vm14, %v4195_v45, %v2587_v58  ;;  %v2446_v6 = vor.u32 %v2445_v51, %v2441_v9  ;;  %v4326_v48 = vsel %vm4306_vm9, %v7906_v25, %v7922_v43  ;;  %v3875_v31 = vor.u32 %v3874_v52, %v8065_v44  ;;  %v5243_v10 = vld [vmem:[%s6331_s19 + $0xb4] sm:$0xe]  ;;  %v8132_v45 = vld [vmem:[%s6331_s19 + $0xbc] ss:$0 sps:$4 sm:$0x11]  }
 0x168   : > { %3472 = vrot.lane.b32.xlu1 %v3411_v11, %s6282_s27  ;;  %v4262_v18 = vsel %vm9034_vm4, %v4228_v20, %v7868_v32  ;;  %v4178_v32 = vsel %vm4158_vm10, %v4145_v30, %v7986_v55  ;;  %v3727_v16 = vrot.slane %v3725_v33, 1  ;;  %v4359_v11 = vsel %vm4339_vm11, %v4326_v48, %v7964_v2  ;;  %v6242_v48 = vld [vmem:[%s6331_s19 + $0xac] sm:$0xf] }
 0x169   : > { %v3595_v22 = vpop.permute.xlu0 %3594  ;;  %v3730_v43 = vrot.slane %v3728_v15, 2  ;;  %v1692_v55 = vshll.u32 %v8072_v60, 16  ;;  %v4392_v57 = vsel %vm4372_vm13, %v4359_v11, %v8010_v0  ;;  %v3735_v2 = vrot.slane %v3733_v59, 1 }
 0x16a   : > { %v3931_v63 = vpop.permute.xlu1 %3930  ;;  %v1589_v12 = vshrl.u32 %v9019_v19, 16  ;;  %v4425_v39 = vsel %vm4405_vm15, %v4392_v57, %v3595_v22  ;;  %v2547_v58 = vsel %vm661_vm0, %v2542_v36, %v2546_v61  ;;  %v8119_v0 = vcombine.low %v5243_v10, %v8094_v24  ;;  %v8155_v61 = vld [vmem:[%s6331_s19 + $0x5c] ss:$0 sps:$4 sm:$0x11]  }
 0x16b   : > { %3456 = vrot.lane.b32.xlu0 %v3315_v21, %s6282_s27  ;;  %v4442_v1 = vsel %vm9032_vm5, %v4409_v14, %v3931_v63  ;;  %v4211_v21 = vsel %vm4191_vm12, %v4178_v32, %v2331_v50  ;;  %v3738_v50 = vrot.slane %v3736_v8, 2  ;;  %v9035_v38 = vshll.u32 %v9019_v19, 16  ;;  %vm9038_vm5 = vmmov %vm9033_vm6  ;;  %v5163_v14 = vld [vmem:[%s6331_s19 + $0xa8] sm:$0xe] }
 0x16c   : > { %2336 = vrot.lane.b32.xlu1 %v7995_v13, %s6283_s7  ;;  %5616 = vmatprep.mubr.msk.bf16.mxu0 %vm9033_vm6, %v4442_v1  ;;  %v3867_v13 = vor.u32 %v8062_v35, %v8060_v23  ;;  %v2451_v9 = vsel %vm661_vm0, %v2446_v6, %v2450_v3  ;;  %v9037_v47 = vshrl.u32 %v9020_v26, 16  ;;  %vm9039_vm6 = vmmov %vm9034_vm4  ;;  %v1694_v54 = vrot.slane %v1692_v55, 1 }
 0x16d   : > { %v2603_v42 = vpop.permute.xlu0 %2602  ;;  %4681 = vmatmul.mubr.bf16.gmra.mrb[4].mxu0 %v4262_v18  ;;  %v1596_v51 = vshll.u32 %v8104_v40, 16  ;;  %v3739_v17 = vor.u32 %v3738_v50, %v3735_v2  ;;  %v3014_v22 = vshrl.u32 %v8119_v0, 16  ;;  %v3022_v23 = vshrl.u32 %v6179_v41, 16  ;;  %v5288_v2 = vld [vmem:[%s6331_s19 + $0xc0] sm:$0xf]  ;;  %vm9045_vm4 = vmmov %vm9036_vm3 }
 0x16e   : > { %v8090_v34 = vpop.permute.xlu1 %1740  ;;  %v4244_v62 = vsel %vm4224_vm14, %v4211_v21, %v2603_v42  ;;  %v1690_v49 = vor.u32 %v8004_v37, %v9037_v47  ;;  %v3876_v26 = vsel %vm1063_vm2, %v3867_v13, %v3875_v31  ;;  %v3731_v37 = vor.u32 %v3730_v43, %v3727_v16  ;;  %v5155_v16 = vld [vmem:[%s6331_s19 + $0x48] sm:$0xe]  ;;  %v8172_v50 = vld [vmem:[%s6331_s19 + $0xc4] sm:$0xf] }
 0x16f   : > { %2320 = vrot.lane.b32.xlu0 %v7998_v53, %s6283_s7  ;;  %v5235_v53 = vld [vmem:[%s6331_s19 + $0x54] sm:$0xe]  ;;  %v4286_v19 = vsel %vm9039_vm6, %v4244_v62, %v7906_v25  ;;  %v3017_v25 = vshll.u32 %v8119_v0, 16  ;;  %v3025_v35 = vshll.u32 %v6179_v41, 16  ;;  %v2704_v52 = vrot.slane %v8132_v45, 1 }
 0x170   : > { %3600 = vrot.lane.b32.xlu1 %v8031_v5, %s6284_s17  ;;  %v1593_v5 = vrot.slane %v9035_v38, 1  ;;  %v5507_v27 = vcombine.low %v5235_v53, %v8112_v7  ;;  %v1695_v33 = vsel %vm661_vm0, %v1690_v49, %v1694_v54  ;;  %v1598_v1 = vrot.slane %v1596_v51, 1  ;;  %v6243_v41 = vld [vmem:[%s6331_s19 + $0x4c] sm:$0xf] }
 0x171   : > { %v3947_v56 = vpop.permute.xlu0 %3946  ;;  %v3740_v28 = vsel %vm1063_vm2, %v3731_v37, %v3739_v17  ;;  %v2703_v18 = vrot.slane %v8119_v0, 1  ;;  %v3016_v42 = vrot.slane %v3014_v22, 1  ;;  %v3019_v36 = vrot.slane %v3017_v25, 2  ;;  %v6185_v0 = vld [vmem:[%s6331_s19 + $0xb0] ss:$0 sps:$4 sm:$0x33]  }
 0x172   : > { %v4458_v4 = vsel %vm9036_vm3, %v4425_v39, %v3947_v56  ;;  %v8125_v46 = vpop.permute.xlu1 %2732  ;;  %v1594_v44 = vor.u32 %v1593_v5, %v1589_v12  ;;  %v2878_v3 = vshrl.u32 %v5507_v27, 16  ;;  %v2881_v15 = vshll.u32 %v5507_v27, 16  ;;  %vm9046_vm3 = vmmov %vm9038_vm5 }
 0x173   : > { %3584 = vrot.lane.b32.xlu0 %v8042_v29, %s6284_s17  ;;  %5624 = vmatprep.mubr.msk.bf16.mxu1 %vm9038_vm5, %v4458_v4  ;;  %v6180_v29 = vld [vmem:[%s6331_s19 + $0x5c] ss:$0 sps:$4 sm:$0x33]   ;;  %v3024_v6 = vrot.slane %v3022_v23, 1  ;;  %v3027_v13 = vrot.slane %v3025_v35, 2  ;;  %v5451_v32 = vcombine.low %v5163_v14, %v6242_v48  ;;  %v2679_v10 = vrot.slane %v5507_v27, 1  ;;  %vm9047_vm5 = vmmov %vm9039_vm6 }
 0x174   : > { %4745 = vmatmul.mubr.bf16.gmra.mrb[4].mxu1 %v4286_v19  ;;  %2608 = vrot.lane.b32.xlu1 %v2547_v58, %s6285_s26  ;;  %v2886_v59 = vshrl.u32 %v6180_v29, 16  ;;  %v2889_v8 = vshll.u32 %v6180_v29, 16  ;;  %v2680_v11 = vrot.slane %v8155_v61, 1  ;;  %v2880_v21 = vrot.slane %v2878_v3, 1  ;;  %v5272_v58 = vld [vmem:[%s6331_s19 + $0x60] sm:$0xf]  ;;  %vm9048_vm6 = vmmov %vm9045_vm4 }
 0x175   : > { %v8144_v20 = vpop.permute.xlu0 %2716  ;;  %v2883_v43 = vrot.slane %v2881_v15, 2  ;;  %v1599_v55 = vsel %vm661_vm0, %v1594_v44, %v1598_v1  ;;  %v2705_v12 = vsel %vm934_vm1, %v2703_v18, %v2704_v52  ;;  %v3020_v39 = vor.u32 %v3019_v36, %v3016_v42  ;;  %v8183_v4 = vld [vmem:[%s6331_s19 + $0x64] sm:$0xf]  ;;  %v8203_v1 = vld [vmem:[%s6331_s19 + $0xc8] ss:$0 sps:$4 sm:$0x11]  }
 0x176   : > { %v8149_v63 = vpop.permute.xlu1 %3084  ;;  %v2888_v57 = vrot.slane %v2886_v59, 1  ;;  %v2891_v62 = vrot.slane %v2889_v8, 2  ;;  %v3028_v56 = vor.u32 %v3027_v13, %v3024_v6  ;;  %v5443_v38 = vcombine.low %v5155_v16, %v6243_v41  ;;  %v5323_v18 = vld [vmem:[%s6331_s19 + $0xc0] sm:$0xe] }
 0x177   : > { %2592 = vrot.lane.b32.xlu0 %v2451_v9, %s6285_s26  ;;  %v6186_v9 = vld [vmem:[%s6331_s19 + $0x50] ss:$0 sps:$4 sm:$0x33]   ;;  %v2681_v47 = vsel %vm934_vm1, %v2679_v10, %v2680_v11  ;;  %v2884_v49 = vor.u32 %v2883_v43, %v2880_v21  ;;  %v1839_v19 = vrot.slane %v5451_v32, 1  ;;  %v8189_v54 = vcombine.low %v5288_v2, %v8172_v50  ;;  %v5208_v43 = vld [vmem:[%s6331_s19 + $0xb4] sm:$0xf] }
 0x178   : > { %3952 = vrot.lane.b32.xlu1 %v3876_v26, %s6286_s28  ;;  %v2892_v51 = vor.u32 %v2891_v62, %v2888_v57  ;;  %v1840_v27 = vrot.slane %v8072_v60, 1  ;;  %v2150_v26 = vshrl.u32 %v5451_v32, 16  ;;  %v2153_v37 = vshll.u32 %v5451_v32, 16  ;;  %v8214_v48 = vld [vmem:[%s6331_s19 + $0x68] ss:$0 sps:$4 sm:$0x11]  }
 0x179   : > { %v8160_v30 = vpop.permute.xlu0 %3068  ;;  %v3029_v29 = vsel %vm1063_vm2, %v3020_v39, %v3028_v56  ;;  %v8197_v22 = vcombine.low %v5272_v58, %v8183_v4  ;;  %v2158_v25 = vshrl.u32 %v6185_v0, 16  ;;  %v2161_v23 = vshll.u32 %v6185_v0, 16  ;;  %v5192_v2 = vld [vmem:[%s6331_s19 + $0x54] sm:$0xf]  ;;  %v5315_v0 = vld [vmem:[%s6331_s19 + $0x60] sm:$0xe] }
 0x17a   : > { %v8163_v31 = vpop.permute.xlu1 %1868  ;;  %v2014_v14 = vshrl.u32 %v5443_v38, 16  ;;  %v2017_v44 = vshll.u32 %v5443_v38, 16  ;;  %v2022_v52 = vshrl.u32 %v6186_v9, 16  ;;  %v1815_v60 = vrot.slane %v5443_v38, 1 }
 0x17b   : > { %3936 = vrot.lane.b32.xlu0 %v3740_v28, %s6286_s28  ;;  %v3415_v3 = vshll.u32 %v8189_v54, 16  ;;  %v2893_v15 = vsel %vm1063_vm2, %v2884_v49, %v2892_v51  ;;  %v1816_v28 = vrot.slane %v8104_v40, 1  ;;  %v2152_v59 = vrot.slane %v2150_v26, 1 }
 0x17c   : > { %1746 = vrot.lane.b32.xlu1 %v1695_v33, %s6276_s24  ;;  %v2025_v33 = vshll.u32 %v6186_v9, 16  ;;  %v2155_v8 = vrot.slane %v2153_v37, 2  ;;  %v1841_v36 = vsel %vm934_vm1, %v1839_v19, %v1840_v27  ;;  %v2160_v6 = vrot.slane %v2158_v25, 1 }
 0x17d   : > { %v8174_v53 = vpop.permute.xlu0 %1852  ;;  %v2163_v13 = vrot.slane %v2161_v23, 2  ;;  %v3319_v32 = vshll.u32 %v8197_v22, 16  ;;  %v2016_v10 = vrot.slane %v2014_v14, 1  ;;  %v2019_v11 = vrot.slane %v2017_v44, 2  ;;  %v9041_v14 = vld [vmem:[#allocation8_spill] sm:$0xff] }
 0x17e   : > { %v8180_v5 = vpop.permute.xlu1 %3196  ;;  %v2024_v40 = vrot.slane %v2022_v52, 1  ;;  %v2027_v21 = vrot.slane %v2025_v33, 2  ;;  %v3417_v57 = vrot.slane %v3415_v3, 1  ;;  %v3420_v62 = vshll.u32 %v8203_v1, 16 }
 0x17f   : > { %1730 = vrot.lane.b32.xlu0 %v1599_v55, %s6276_s24  ;;  %v3413_v55 = vshrl.u32 %v8189_v54, 16  ;;  %v1817_v56 = vsel %vm934_vm1, %v1815_v60, %v1816_v28  ;;  %v8228_v58 = vcombine.low %v5323_v18, %v8172_v50  ;;  %v2156_v41 = vor.u32 %v2155_v8, %v2152_v59  ;;  %v9042_v60 = vld [vmem:[#allocation32_spill] sm:$0xff]  ;;  %v6191_v59 = vld [vmem:[%s6331_s19 + $0xc8] ss:$0 sps:$4 sm:$0x33]  }
 0x180   : > { %2738 = vrot.lane.b32.xlu1 %v2705_v12, %s6277_s29  ;;  %v9040_v12 = vld [vmem:[#allocation16_spill] sm:$0xff]  ;;  %v2164_v9 = vor.u32 %v2163_v13, %v2160_v6  ;;  %v3321_v49 = vrot.slane %v3319_v32, 1  ;;  %v3324_v19 = vshll.u32 %v8214_v48, 16  ;;  %v2020_v27 = vor.u32 %v2019_v11, %v2016_v10 }
 0x181   : > { %v8193_v17 = vpop.permute.xlu0 %3180  ;;  %v1699_v39 = vshll.u32 %v9040_v12, 16  ;;  %v2028_v26 = vor.u32 %v2027_v21, %v2024_v40  ;;  %v8236_v37 = vcombine.low %v5208_v43, %v8094_v24  ;;  %v8239_v50 = vcombine.low %v5192_v2, %v8112_v7  ;;  %v9043_v24 = vld [vmem:[#allocation20_spill] sm:$0xff] }
 0x182   : > { %v8199_v35 = vpop.permute.xlu1 %2220  ;;  %v3418_v25 = vor.u32 %v3417_v57, %v3413_v55  ;;  %v3422_v23 = vrot.slane %v3420_v62, 1  ;;  %v1603_v44 = vshll.u32 %v9041_v14, 16  ;;  %v1697_v52 = vshrl.u32 %v9040_v12, 16 }
 0x183   : > { %2722 = vrot.lane.b32.xlu0 %v2681_v47, %s6277_s29  ;;  %v3317_v47 = vshrl.u32 %v8197_v22, 16  ;;  %v8247_v33 = vrot.slane %v1699_v39, 1  ;;  %v4098_v3 = vsel %vm4092_vm7, %v9043_v24, %v9042_v60  ;;  %v3326_v28 = vrot.slane %v3324_v19, 1 }
 0x184   : > { %3090 = vrot.lane.b32.xlu1 %v3029_v29, %s6278_s5  ;;  %v8243_v29 = vcombine.low %v5315_v0, %v8183_v4  ;;  %v3567_v18 = vrot.slane %v8228_v58, 1  ;;  %v3568_v6 = vrot.slane %v8203_v1, 1  ;;  %v2551_v13 = vshll.u32 %v8236_v37, 16 }
 0x185   : > { %v8210_v42 = vpop.permute.xlu0 %2204  ;;  %v3322_v4 = vor.u32 %v3321_v49, %v3317_v47  ;;  %v2455_v32 = vshll.u32 %v8239_v50, 16  ;;  %v3544_v11 = vrot.slane %v8214_v48, 1  ;;  %v2549_v40 = vshrl.u32 %v8236_v37, 16  ;;  %v6192_v49 = vld [vmem:[%s6331_s19 + $0x68] ss:$0 sps:$4 sm:$0x33]  }
 0x186   : > { %v8217_v16 = vpop.permute.xlu1 %3468  ;;  %v3543_v10 = vrot.slane %v8243_v29, 1  ;;  %v2556_v21 = vshll.u32 %v8132_v45, 16  ;;  %v2453_v1 = vshrl.u32 %v8239_v50, 16  ;;  %v3878_v43 = vshrl.u32 %v8228_v58, 16 }
 0x187   : > { %3074 = vrot.lane.b32.xlu0 %v2893_v15, %s6278_s5  ;;  %v2165_v15 = vsel %vm1063_vm2, %v2156_v41, %v2164_v9  ;;  %v3881_v55 = vshll.u32 %v8228_v58, 16  ;;  %v3327_v48 = vsel %vm661_vm0, %v3322_v4, %v3326_v28  ;;  %v2460_v2 = vshll.u32 %v8155_v61, 16 }
 0x188   : > { %1874 = vrot.lane.b32.xlu1 %v1841_v36, %s6279_s10  ;;  %v2029_v36 = vsel %vm1063_vm2, %v2020_v27, %v2028_v26  ;;  %v3886_v39 = vshrl.u32 %v6191_v59, 16  ;;  %v2553_v0 = vrot.slane %v2551_v13, 1  ;;  %v2457_v41 = vrot.slane %v2455_v32, 1 }
 0x189   : > { %v8231_v38 = vpop.permute.xlu0 %3452  ;;  %v3889_v9 = vshll.u32 %v6191_v59, 16  ;;  %v4328_v47 = vsel %vm4306_vm9, %v8125_v46, %v8149_v63  ;;  %v3742_v61 = vshrl.u32 %v8243_v29, 16  ;;  %v3745_v19 = vshll.u32 %v8243_v29, 16 }
 0x18a   : > { %v2333_v51 = vpop.permute.xlu1 %2332  ;;  %v8292_v26 = vrot.slane %v3878_v43, 1  ;;  %v8294_v63 = vrot.slane %v3881_v55, 2  ;;  %v8301_v60 = vrot.slane %v3886_v39, 1  ;;  %v3750_v28 = vshrl.u32 %v6192_v49, 16 }
 0x18b   : > { %1858 = vrot.lane.b32.xlu0 %v1817_v56, %s6279_s10  ;;  %v2558_v13 = vrot.slane %v2556_v21, 1  ;;  %v2458_v43 = vor.u32 %v2457_v41, %v2453_v1  ;;  %v2462_v55 = vrot.slane %v2460_v2, 1  ;;  %v5164_v41 = vld [vmem:[%s6331_s19 + $0xb4] sm:$0xe] }
 0x18c   : > { %3202 = vrot.lane.b32.xlu1 %v8189_v54, %s6280_s20  ;;  %v3423_v54 = vsel %vm661_vm0, %v3418_v25, %v3422_v23  ;;  %v3752_v21 = vrot.slane %v3750_v28, 1 }
 0x18d   : > { %v2317_v7 = vpop.permute.xlu0 %2316 }
 0x18e   : > { %v3597_v8 = vpop.permute.xlu1 %3596 }
 0x18f   : > { %3186 = vrot.lane.b32.xlu0 %v8197_v22, %s6280_s20  ;;  %v9044_v22 = vld [vmem:[#allocation26_spill] sm:$0xff] }
 0x190   : > { %2226 = vrot.lane.b32.xlu1 %v2165_v15, %s6281_s21  ;;  %v4114_v57 = vsel %vm4092_vm7, %v9044_v22, %v8090_v34  ;;  %v8334_v22 = vld [vmem:[%s6331_s19 + $0xc4] sm:$0xf] }
 0x191   : > { %v3581_v62 = vpop.permute.xlu0 %3580  ;;  %v4147_v45 = vsel %vm4125_vm8, %v4114_v57, %v8163_v31  ;;  %v4361_v31 = vsel %vm4339_vm11, %v4328_v47, %v8180_v5  ;;  %v4312_v5 = vsel %vm4306_vm9, %v8144_v20, %v8160_v30  ;;  %v5244_v57 = vld [vmem:[%s6331_s19 + $0xc0] sm:$0xe] }
 0x192   : > { %v2605_v56 = vpop.permute.xlu1 %2604  ;;  %v4180_v34 = vsel %vm4158_vm10, %v4147_v45, %v8199_v35  ;;  %v4131_v35 = vsel %vm4125_vm8, %v4098_v3, %v8174_v53  ;;  %v4394_v25 = vsel %vm4372_vm13, %v4361_v31, %v8217_v16  ;;  %v3891_v53 = vrot.slane %v3889_v9, 2  ;;  %v6199_v45 = vld [vmem:[%s6331_s19 + $0xc8] ss:$0 sps:$4 sm:$0x33]  }
 0x193   : > { %2210 = vrot.lane.b32.xlu0 %v2029_v36, %s6281_s21  ;;  %v4213_v27 = vsel %vm4191_vm12, %v4180_v34, %v2333_v51  ;;  %v4164_v51 = vsel %vm4158_vm10, %v4131_v35, %v8210_v42  ;;  %v4427_v24 = vsel %vm4405_vm15, %v4394_v25, %v3597_v8  ;;  %v4345_v16 = vsel %vm4339_vm11, %v4312_v5, %v8193_v17  ;;  %v6244_v25 = vld [vmem:[%s6331_s19 + $0xb8] sm:$0xf] }
 0x194   : > { %3474 = vrot.lane.b32.xlu1 %v3423_v54, %s6282_s27  ;;  %v4246_v23 = vsel %vm4224_vm14, %v4213_v27, %v2605_v56  ;;  %v4197_v3 = vsel %vm4191_vm12, %v4164_v51, %v2317_v7  ;;  %v4378_v30 = vsel %vm4372_vm13, %v4345_v16, %v8231_v38  ;;  %v3753_v42 = vshll.u32 %v6192_v49, 16  ;;  %v8323_v7 = vld [vmem:[%s6331_s19 + $0xbc] ss:$0 sps:$4 sm:$0x11]  }
 0x195   : > { %v2589_v29 = vpop.permute.xlu0 %2588  ;;  %v4289_v17 = vsel %vm9047_vm5, %v4246_v23, %v8125_v46  ;;  %v4411_v8 = vsel %vm4405_vm15, %v4378_v30, %v3581_v62  ;;  %v3569_v38 = vsel %vm934_vm1, %v3567_v18, %v3568_v6  ;;  %v3545_v46 = vsel %vm934_vm1, %v3543_v10, %v3544_v11  ;;  %v8345_v11 = vld [vmem:[%s6331_s19 + $0x64] sm:$0xf]  ;;  %v8352_v62 = vld [vmem:[%s6331_s19 + $0x5c] ss:$0 sps:$4 sm:$0x11]  }
 0x196   : > { %v3949_v15 = vpop.permute.xlu1 %3948  ;;  %v4230_v59 = vsel %vm4224_vm14, %v4197_v3, %v2589_v29  ;;  %v3884_v18 = vor.u32 %v8294_v63, %v8292_v26  ;;  %v3744_v6 = vrot.slane %v3742_v61, 1  ;;  %v3747_v10 = vrot.slane %v3745_v19, 2  ;;  %v8376_v19 = vld [vmem:[%s6331_s19 + $0xc8] ss:$0 sps:$4 sm:$0x11]  }
 0x197   : > { %3458 = vrot.lane.b32.xlu0 %v3327_v48, %s6282_s27  ;;  %v4460_v4 = vsel %vm9045_vm4, %v4427_v24, %v3949_v15  ;;  %vm9049_vm4 = vmmov %vm9046_vm3  ;;  %v3755_v1 = vrot.slane %v3753_v42, 2  ;;  %v8358_v39 = vcombine.low %v5244_v57, %v8334_v22  ;;  %v1601_v56 = vshrl.u32 %v9041_v14, 16  ;;  %v6200_v14 = vld [vmem:[%s6331_s19 + $0x68] ss:$0 sps:$4 sm:$0x33]  }
 0x198   : > { %2338 = vrot.lane.b32.xlu1 %v8236_v37, %s6283_s7  ;;  %5625 = vmatprep.mubr.msk.bf16.mxu1 %vm9046_vm3, %v4460_v4  ;;  %v2554_v37 = vor.u32 %v2553_v0, %v2549_v40  ;;  %vm9050_vm3 = vmmov %vm9047_vm5  ;;  %v5236_v40 = vld [vmem:[%s6331_s19 + $0x60] sm:$0xe]  ;;  %v1605_v0 = vrot.slane %v1603_v44, 1  ;;  %v2463_v34 = vsel %vm661_vm0, %v2458_v43, %v2462_v55  ;;  %v3748_v49 = vor.u32 %v3747_v10, %v3744_v6  ;;  %v5156_v3 = vld [vmem:[%s6331_s19 + $0x54] sm:$0xe] }
 0x199   : > { %v3933_v36 = vpop.permute.xlu0 %3932  ;;  %4753 = vmatmul.mubr.bf16.gmra.mrb[8].mxu1 %v4289_v17  ;;  %v4265_v58 = vsel %vm9050_vm3, %v4230_v59, %v8144_v20  ;;  %v1704_v20 = vshll.u32 %v8323_v7, 16  ;;  %v8368_v47 = vcombine.low %v5236_v40, %v8345_v11  ;;  %v1702_v61 = vor.u32 %v8247_v33, %v1697_v52  ;;  %v8411_v57 = vld [vmem:[%s6331_s19 + $0xd0] sm:$0xf]  ;;  %v6205_v6 = vld [vmem:[%s6331_s19 + $0xbc] ss:$0 sps:$4 sm:$0x33]   ;;  %vm9055_vm5 = vmmov %vm9048_vm6 }
 0x19a   : > { %v4444_v32 = vsel %vm9048_vm6, %v4411_v8, %v3933_v36  ;;  %v8330_v54 = vpop.permute.xlu1 %2718  ;;  %v2559_v2 = vsel %vm661_vm0, %v2554_v37, %v2558_v13  ;;  %v3756_v31 = vor.u32 %v3755_v1, %v3752_v21  ;;  %v1608_v26 = vshll.u32 %v8352_v62, 16  ;;  %v5290_v37 = vld [vmem:[%s6331_s19 + $0xcc] sm:$0xf]  ;;  %v6245_v10 = vld [vmem:[%s6331_s19 + $0x58] sm:$0xf]  ;;  %vm9057_vm6 = vmmov %vm9049_vm4 }
 0x19b   : > { %2322 = vrot.lane.b32.xlu0 %v8239_v50, %s6283_s7  ;;  %5617 = vmatprep.mubr.msk.bf16.mxu0 %vm9049_vm4, %v4444_v32  ;;  %v3892_v50 = vor.u32 %v3891_v53, %v8301_v60  ;;  %v1706_v27 = vrot.slane %v1704_v20, 1  ;;  %v3031_v35 = vshrl.u32 %v8358_v39, 16  ;;  %v3034_v12 = vshll.u32 %v8358_v39, 16  ;;  %v8392_v60 = vld [vmem:[%s6331_s19 + $0x68] ss:$0 sps:$4 sm:$0x11]   ;;  %vm9058_vm4 = vmmov %vm9050_vm3 }
 0x19c   : > { %4689 = vmatmul.mubr.bf16.gmra.mrb[8].mxu0 %v4265_v58  ;;  %3602 = vrot.lane.b32.xlu1 %v3569_v38, %s6284_s17  ;;  %v3039_v52 = vshrl.u32 %v6199_v45, 16  ;;  %v3042_v33 = vshll.u32 %v6199_v45, 16  ;;  %v8387_v23 = vcombine.low %v5164_v41, %v6244_v25  ;;  %v2895_v5 = vshrl.u32 %v8368_v47, 16  ;;  %v6206_v21 = vld [vmem:[%s6331_s19 + $0x5c] ss:$0 sps:$4 sm:$0x33]   ;;  %vm9059_vm3 = vmmov %vm9055_vm5 }
 0x19d   : > { %v8354_v48 = vpop.permute.xlu0 %1742  ;;  %v3893_v44 = vsel %vm1063_vm2, %v3884_v18, %v3892_v50  ;;  %v2898_v51 = vshll.u32 %v8368_v47, 16  ;;  %v1606_v24 = vor.u32 %v1605_v0, %v1601_v56  ;;  %v2707_v15 = vrot.slane %v8376_v19, 1 }
 0x19e   : > { %v8365_v9 = vpop.permute.xlu1 %3070  ;;  %v2903_v53 = vshrl.u32 %v6200_v14, 16  ;;  %v2906_v16 = vshll.u32 %v6200_v14, 16  ;;  %v3757_v4 = vsel %vm1063_vm2, %v3748_v49, %v3756_v31  ;;  %v1707_v28 = vsel %vm661_vm0, %v1702_v61, %v1706_v27  ;;  %v5274_v49 = vld [vmem:[%s6331_s19 + $0x6c] sm:$0xf]  ;;  %v5275_v14 = vld [vmem:[%s6331_s19 + $0x70] sm:$0xf] }
 0x19f   : > { %3586 = vrot.lane.b32.xlu0 %v3545_v46, %s6284_s17  ;;  %v1610_v30 = vrot.slane %v1608_v26, 1  ;;  %v2706_v59 = vrot.slane %v8358_v39, 1  ;;  %v3033_v42 = vrot.slane %v3031_v35, 1  ;;  %v3036_v8 = vrot.slane %v3034_v12, 2 }
 0x1a0   : > { %2610 = vrot.lane.b32.xlu1 %v2559_v2, %s6285_s26  ;;  %v3041_v36 = vrot.slane %v3039_v52, 1  ;;  %v3044_v38 = vrot.slane %v3042_v33, 2  ;;  %v2682_v32 = vrot.slane %v8368_v47, 1  ;;  %v2683_v46 = vrot.slane %v8392_v60, 1 }
 0x1a1   : > { %v8382_v63 = vpop.permute.xlu0 %2734  ;;  %v2897_v43 = vrot.slane %v2895_v5, 1  ;;  %v2900_v55 = vrot.slane %v2898_v51, 2  ;;  %v2905_v58 = vrot.slane %v2903_v53, 1  ;;  %v2908_v18 = vrot.slane %v2906_v16, 2 }
 0x1a2   : > { %v8389_v29 = vpop.permute.xlu1 %1854  ;;  %v5444_v40 = vcombine.low %v5156_v3, %v6245_v10  ;;  %v1611_v50 = vsel %vm661_vm0, %v1606_v24, %v1610_v30  ;;  %v2708_v20 = vsel %vm934_vm1, %v2706_v59, %v2707_v15  ;;  %v3037_v2 = vor.u32 %v3036_v8, %v3033_v42  ;;  %v8440_v5 = vld [vmem:[%s6331_s19 + $0xd4] ss:$0 sps:$4 sm:$0x11]  }
 0x1a3   : > { %2594 = vrot.lane.b32.xlu0 %v2463_v34, %s6285_s26  ;;  %v3045_v39 = vor.u32 %v3044_v38, %v3041_v36  ;;  %v8423_v45 = vcombine.low %v5290_v37, %v8411_v57  ;;  %v2684_v0 = vsel %vm934_vm1, %v2682_v32, %v2683_v46  ;;  %v2901_v41 = vor.u32 %v2900_v55, %v2897_v43  ;;  %v5324_v37 = vld [vmem:[%s6331_s19 + $0xcc] sm:$0xe] }
 0x1a4   : > { %3954 = vrot.lane.b32.xlu1 %v3893_v44, %s6286_s28  ;;  %v1842_v47 = vrot.slane %v8387_v23, 1  ;;  %v1843_v34 = vrot.slane %v8323_v7, 1  ;;  %v2909_v61 = vor.u32 %v2908_v18, %v2905_v58  ;;  %v2167_v44 = vshrl.u32 %v8387_v23, 16  ;;  %v8456_v58 = vld [vmem:[%s6331_s19 + $0x74] ss:$0 sps:$4 sm:$0x11]  }
 0x1a5   : > { %v8403_v17 = vpop.permute.xlu0 %3086  ;;  %v2170_v31 = vshll.u32 %v8387_v23, 16  ;;  %v2175_v27 = vshrl.u32 %v6205_v6, 16  ;;  %v2178_v26 = vshll.u32 %v6205_v6, 16  ;;  %v2031_v35 = vshrl.u32 %v5444_v40, 16  ;;  %v9051_v6 = vld [vmem:[#allocation15_spill] sm:$0xff] }
 0x1a6   : > { %v8406_v13 = vpop.permute.xlu1 %3182  ;;  %v2034_v12 = vshll.u32 %v5444_v40, 16  ;;  %v2039_v52 = vshrl.u32 %v6206_v21, 16  ;;  %v3046_v7 = vsel %vm1063_vm2, %v3037_v2, %v3045_v39  ;;  %v2042_v25 = vshll.u32 %v6206_v21, 16  ;;  %v5316_v21 = vld [vmem:[%s6331_s19 + $0x6c] sm:$0xe] }
 0x1a7   : > { %3938 = vrot.lane.b32.xlu0 %v3757_v4, %s6286_s28  ;;  %v3427_v51 = vshll.u32 %v8423_v45, 16  ;;  %v1844_v23 = vsel %vm934_vm1, %v1842_v47, %v1843_v34  ;;  %v1818_v15 = vrot.slane %v5444_v40, 1  ;;  %v1819_v53 = vrot.slane %v8352_v62, 1 }
 0x1a8   : > { %1748 = vrot.lane.b32.xlu1 %v1707_v28, %s6276_s24  ;;  %v5540_v16 = vcombine.low %v5274_v49, %v5275_v14  ;;  %v2910_v3 = vsel %vm1063_vm2, %v2901_v41, %v2909_v61  ;;  %v2169_v4 = vrot.slane %v2167_v44, 1  ;;  %v2172_v28 = vrot.slane %v2170_v31, 2  ;;  %v5210_v49 = vld [vmem:[%s6331_s19 + $0xc0] sm:$0xf] }
 0x1a9   : > { %v8419_v1 = vpop.permute.xlu0 %1870  ;;  %v2177_v30 = vrot.slane %v2175_v27, 1  ;;  %v2180_v59 = vrot.slane %v2178_v26, 2  ;;  %v2033_v42 = vrot.slane %v2031_v35, 1  ;;  %v2036_v8 = vrot.slane %v2034_v12, 2  ;;  %v5194_v26 = vld [vmem:[%s6331_s19 + $0x60] sm:$0xf] }
 0x1aa   : > { %v8425_v56 = vpop.permute.xlu1 %2206  ;;  %v2041_v36 = vrot.slane %v2039_v52, 1  ;;  %v2044_v62 = vrot.slane %v2042_v25, 2  ;;  %v3425_v32 = vshrl.u32 %v8423_v45, 16  ;;  %v3429_v46 = vrot.slane %v3427_v51, 1  ;;  %v9052_v35 = vld [vmem:[#allocation7_spill] sm:$0xff] }
 0x1ab   : > { %1732 = vrot.lane.b32.xlu0 %v1611_v50, %s6276_s24  ;;  %v3432_v43 = vshll.u32 %v8440_v5, 16  ;;  %v3331_v18 = vshll.u32 %v5540_v16, 16  ;;  %v1711_v10 = vshll.u32 %v9051_v6, 16  ;;  %v1820_v40 = vsel %vm934_vm1, %v1818_v15, %v1819_v53  ;;  %v9053_v25 = vld [vmem:[#allocation31_spill] sm:$0xff] }
 0x1ac   : > { %2740 = vrot.lane.b32.xlu1 %v2708_v20, %s6277_s29  ;;  %v8463_v50 = vcombine.low %v5324_v37, %v8411_v57  ;;  %v2173_v20 = vor.u32 %v2172_v28, %v2169_v4  ;;  %v2181_v2 = vor.u32 %v2180_v59, %v2177_v30  ;;  %v2045_v41 = vor.u32 %v2044_v62, %v2041_v36  ;;  %v9054_v51 = vld [vmem:[#allocation11_spill] sm:$0xff] }
 0x1ad   : > { %v8436_v33 = vpop.permute.xlu0 %3198  ;;  %v3430_v47 = vor.u32 %v3429_v46, %v3425_v32  ;;  %v3434_v34 = vrot.slane %v3432_v43, 1  ;;  %v3329_v44 = vshrl.u32 %v5540_v16, 16  ;;  %v3333_v31 = vrot.slane %v3331_v18, 1 }
 0x1ae   : > { %v8443_v24 = vpop.permute.xlu1 %3454  ;;  %v3336_v27 = vshll.u32 %v8456_v58, 16  ;;  %v1615_v12 = vshll.u32 %v9052_v35, 16  ;;  %v1709_v57 = vshrl.u32 %v9051_v6, 16  ;;  %v8474_v52 = vcombine.low %v5316_v21, %v5275_v14 }
 0x1af   : > { %2724 = vrot.lane.b32.xlu0 %v2684_v0, %s6277_s29  ;;  %v2037_v0 = vor.u32 %v2036_v8, %v2033_v42  ;;  %v2182_v15 = vsel %vm1063_vm2, %v2173_v20, %v2181_v2  ;;  %v8485_v53 = vcombine.low %v5210_v49, %v8334_v22  ;;  %v3435_v14 = vsel %vm661_vm0, %v3430_v47, %v3434_v34  ;;  %v6211_v22 = vld [vmem:[%s6331_s19 + $0xd4] ss:$0 sps:$4 sm:$0x33]  }
 0x1b0   : > { %3092 = vrot.lane.b32.xlu1 %v3046_v7, %s6278_s5  ;;  %v8476_v7 = vrot.slane %v1711_v10, 1  ;;  %v8490_v28 = vcombine.low %v5194_v26, %v8345_v11  ;;  %v3570_v30 = vrot.slane %v8463_v50, 1  ;;  %v3338_v8 = vrot.slane %v3336_v27, 1 }
 0x1b1   : > { %v8450_v38 = vpop.permute.xlu0 %2222  ;;  %v2046_v4 = vsel %vm1063_vm2, %v2037_v0, %v2045_v41  ;;  %v3571_v36 = vrot.slane %v8440_v5, 1  ;;  %v4314_v37 = vsel %vm4306_vm9, %v8330_v54, %v8365_v9  ;;  %v3546_v11 = vrot.slane %v8474_v52, 1  ;;  %v9056_v41 = vld [vmem:[#allocation25_spill] sm:$0xff] }
 0x1b2   : > { %v2319_v55 = vpop.permute.xlu1 %2318  ;;  %v3547_v32 = vrot.slane %v8456_v58, 1  ;;  %v2561_v5 = vshrl.u32 %v8485_v53, 16  ;;  %v2563_v9 = vshll.u32 %v8485_v53, 16  ;;  %v2467_v18 = vshll.u32 %v8490_v28, 16 }
 0x1b3   : > { %3076 = vrot.lane.b32.xlu0 %v2910_v3, %s6278_s5  ;;  %v3895_v58 = vshrl.u32 %v8463_v50, 16  ;;  %v2568_v10 = vshll.u32 %v8376_v19, 16  ;;  %v3903_v21 = vshrl.u32 %v6211_v22, 16  ;;  %v2465_v2 = vshrl.u32 %v8490_v28, 16 }
 0x1b4   : > { %1876 = vrot.lane.b32.xlu1 %v1844_v23, %s6279_s10  ;;  %v4100_v23 = vsel %vm4092_vm7, %v9054_v51, %v9053_v25  ;;  %v3906_v0 = vshll.u32 %v6211_v22, 16  ;;  %v4116_v47 = vsel %vm4092_vm7, %v9056_v41, %v8354_v48  ;;  %v2565_v34 = vrot.slane %v2563_v9, 1  ;;  %v5245_v9 = vld [vmem:[%s6331_s19 + $0xcc] sm:$0xe] }
 0x1b5   : > { %v8466_v39 = vpop.permute.xlu0 %3470  ;;  %v4133_v59 = vsel %vm4125_vm8, %v4100_v23, %v8389_v29  ;;  %v4347_v29 = vsel %vm4339_vm11, %v4314_v37, %v8406_v13  ;;  %v2472_v49 = vshll.u32 %v8392_v60, 16  ;;  %v2469_v27 = vrot.slane %v2467_v18, 1 }
 0x1b6   : > { %v3583_v61 = vpop.permute.xlu1 %3582  ;;  %v4166_v62 = vsel %vm4158_vm10, %v4133_v59, %v8425_v56  ;;  %v4380_v56 = vsel %vm4372_vm13, %v4347_v29, %v8443_v24  ;;  %v8534_v26 = vrot.slane %v3895_v58, 1  ;;  %v3759_v48 = vshrl.u32 %v8474_v52, 16  ;;  %v8550_v59 = vld [vmem:[%s6331_s19 + $0xc8] ss:$0 sps:$4 sm:$0x11]  }
 0x1b7   : > { %1860 = vrot.lane.b32.xlu0 %v1820_v40, %s6279_s10  ;;  %v4199_v46 = vsel %vm4191_vm12, %v4166_v62, %v2319_v55  ;;  %v4413_v13 = vsel %vm4405_vm15, %v4380_v56, %v3583_v61  ;;  %v3898_v40 = vshll.u32 %v8463_v50, 16  ;;  %v6212_v61 = vld [vmem:[%s6331_s19 + $0x74] ss:$0 sps:$4 sm:$0x33]   ;;  %v4330_v25 = vsel %vm4306_vm9, %v8382_v63, %v8403_v17 }
 0x1b8   : > { %3204 = vrot.lane.b32.xlu1 %v8423_v45, %s6280_s20  ;;  %v3334_v45 = vor.u32 %v3333_v31, %v3329_v44  ;;  %v4149_v44 = vsel %vm4125_vm8, %v4116_v47, %v8419_v1  ;;  %v3905_v23 = vrot.slane %v3903_v21, 1  ;;  %v4363_v1 = vsel %vm4339_vm11, %v4330_v25, %v8436_v33  ;;  %v8595_v21 = vld [vmem:[%s6331_s19 + $0xd4] ss:$0 sps:$4 sm:$0x11]  }
 0x1b9   : > { %v2335_v3 = vpop.permute.xlu0 %2334  ;;  %v3900_v51 = vrot.slane %v3898_v40, 2  ;;  %v4396_v17 = vsel %vm4372_vm13, %v4363_v1, %v8466_v39  ;;  %v3767_v33 = vshrl.u32 %v6212_v61, 16  ;;  %v2570_v22 = vrot.slane %v2568_v10, 1  ;;  %v6219_v10 = vld [vmem:[%s6331_s19 + $0xd4] ss:$0 sps:$4 sm:$0x33]  }
 0x1ba   : > { %v2591_v42 = vpop.permute.xlu1 %2590  ;;  %v3339_v20 = vsel %vm661_vm0, %v3334_v45, %v3338_v8  ;;  %v2566_v8 = vor.u32 %v2565_v34, %v2561_v5  ;;  %v3548_v62 = vsel %vm934_vm1, %v3546_v11, %v3547_v32  ;;  %v2474_v29 = vrot.slane %v2472_v49, 1  ;;  %v8577_v32 = vld [vmem:[%s6331_s19 + $0x70] sm:$0xf]  ;;  %v5237_v5 = vld [vmem:[%s6331_s19 + $0x6c] sm:$0xe] }
 0x1bb   : > { %3188 = vrot.lane.b32.xlu0 %v5540_v16, %s6280_s20  ;;  %v4232_v16 = vsel %vm4224_vm14, %v4199_v46, %v2591_v42  ;;  %v3770_v42 = vshll.u32 %v6212_v61, 16  ;;  %v8566_v46 = vld [vmem:[%s6331_s19 + $0xd0] sm:$0xf]  ;;  %v1716_v11 = vshll.u32 %v8550_v59, 16  ;;  %v1613_v18 = vshrl.u32 %v9052_v35, 16 }
 0x1bc   : > { %2228 = vrot.lane.b32.xlu1 %v2182_v15, %s6281_s21  ;;  %v4268_v19 = vsel %vm9058_vm4, %v4232_v16, %v8330_v54  ;;  %v4182_v54 = vsel %vm4158_vm10, %v4149_v44, %v8450_v38  ;;  %v3769_v16 = vrot.slane %v3767_v33, 1  ;;  %v1714_v41 = vor.u32 %v8476_v7, %v1709_v57 }
 0x1bd   : > { %v3599_v43 = vpop.permute.xlu0 %3598  ;;  %v4215_v15 = vsel %vm4191_vm12, %v4182_v54, %v2335_v3  ;;  %v1718_v47 = vrot.slane %v1716_v11, 1  ;;  %v3056_v6 = vshrl.u32 %v6219_v10, 16 }
 0x1be   : > { %v3935_v55 = vpop.permute.xlu1 %3934  ;;  %v4429_v3 = vsel %vm4405_vm15, %v4396_v17, %v3599_v43  ;;  %v3772_v43 = vrot.slane %v3770_v42, 2 }
 0x1bf   : > { %2212 = vrot.lane.b32.xlu0 %v2046_v4, %s6281_s21  ;;  %v4446_v24 = vsel %vm9055_vm5, %v4413_v13, %v3935_v55  ;;  %v3908_v4 = vrot.slane %v3906_v0, 2  ;;  %vm9060_vm5 = vmmov %vm9057_vm6  ;;  %v2571_v13 = vsel %vm661_vm0, %v2566_v8, %v2570_v22  ;;  %v8589_v55 = vcombine.low %v5245_v9, %v8566_v46  ;;  %v5157_v8 = vld [vmem:[%s6331_s19 + $0x60] sm:$0xe]  ;;  %v6225_v9 = vld [vmem:[%s6331_s19 + $0xc8] ss:$0 sps:$4 sm:$0x33]  }
 0x1c0   : > { %3476 = vrot.lane.b32.xlu1 %v3435_v14, %s6282_s27  ;;  %5618 = vmatprep.mubr.msk.bf16.mxu0 %vm9057_vm6, %v4446_v24  ;;  %v3762_v14 = vshll.u32 %v8474_v52, 16  ;;  %v3572_v52 = vsel %vm934_vm1, %v3570_v30, %v3571_v36  ;;  %vm9061_vm6 = vmmov %vm9058_vm4  ;;  %v3901_v30 = vor.u32 %v3900_v51, %v8534_v26  ;;  %v3761_v36 = vrot.slane %v3759_v48, 1 }
 0x1c1   : > { %v2607_v31 = vpop.permute.xlu0 %2606  ;;  %4697 = vmatmul.mubr.bf16.gmra.mrb[12].mxu0 %v4268_v19  ;;  %v8598_v24 = vcombine.low %v5237_v5, %v8577_v32  ;;  %v8609_v19 = vld [vmem:[%s6331_s19 + $0x74] ss:$0 sps:$4 sm:$0x11]   ;;  %v3773_v61 = vor.u32 %v3772_v43, %v3769_v16  ;;  %v3048_v44 = vshrl.u32 %v8589_v55, 16  ;;  %v1719_v54 = vsel %vm661_vm0, %v1714_v41, %v1718_v47  ;;  %v5292_v5 = vld [vmem:[%s6331_s19 + $0xd8] sm:$0xf]  ;;  %vm9065_vm4 = vmmov %vm9059_vm3 }
 0x1c2   : > { %v8542_v60 = vpop.permute.xlu1 %1744  ;;  %v4248_v38 = vsel %vm4224_vm14, %v4215_v15, %v2607_v31  ;;  %v3764_v56 = vrot.slane %v3762_v14, 2  ;;  %v3051_v31 = vshll.u32 %v8589_v55, 16  ;;  %v2686_v1 = vrot.slane %v8609_v19, 1  ;;  %v5277_v41 = vld [vmem:[%s6331_s19 + $0x7c] sm:$0xf] }
 0x1c3   : > { %3460 = vrot.lane.b32.xlu0 %v3339_v20, %s6282_s27  ;;  %v4292_v50 = vsel %vm9061_vm6, %v4248_v38, %v8382_v63  ;;  %v8582_v63 = vld [vmem:[%s6331_s19 + $0x68] ss:$0 sps:$4 sm:$0x11]   ;;  %v6220_v20 = vld [vmem:[%s6331_s19 + $0x74] ss:$0 sps:$4 sm:$0x33]  }
 0x1c4   : > { %2340 = vrot.lane.b32.xlu1 %v8485_v53, %s6283_s7  ;;  %v2470_v53 = vor.u32 %v2469_v27, %v2465_v2  ;;  %v1617_v2 = vrot.slane %v1615_v12, 1  ;;  %v3765_v49 = vor.u32 %v3764_v56, %v3761_v36  ;;  %v1620_v35 = vshll.u32 %v8582_v63, 16  ;;  %v5165_v38 = vld [vmem:[%s6331_s19 + $0xc0] sm:$0xe]  ;;  %v6247_v56 = vld [vmem:[%s6331_s19 + $0x64] sm:$0xf] }
 0x1c5   : > { %v3951_v45 = vpop.permute.xlu0 %3950  ;;  %v3059_v27 = vshll.u32 %v6219_v10, 16  ;;  %v2912_v7 = vshrl.u32 %v8598_v24, 16  ;;  %v2915_v26 = vshll.u32 %v8598_v24, 16  ;;  %v2920_v48 = vshrl.u32 %v6220_v20, 16 }
 0x1c6   : > { %v4462_v39 = vsel %vm9059_vm3, %v4429_v3, %v3951_v45  ;;  %v8562_v37 = vpop.permute.xlu1 %2736  ;;  %v2475_v0 = vsel %vm661_vm0, %v2470_v53, %v2474_v29  ;;  %v2923_v25 = vshll.u32 %v6220_v20, 16  ;;  %v1618_v51 = vor.u32 %v1617_v2, %v1613_v18  ;;  %vm9066_vm3 = vmmov %vm9060_vm5 }
 0x1c7   : > { %2324 = vrot.lane.b32.xlu0 %v8490_v28, %s6283_s7  ;;  %5626 = vmatprep.mubr.msk.bf16.mxu1 %vm9060_vm5, %v4462_v39  ;;  %v3909_v28 = vor.u32 %v3908_v4, %v3905_v23  ;;  %v2710_v23 = vrot.slane %v8595_v21, 1  ;;  %v3774_v15 = vsel %vm1063_vm2, %v3765_v49, %v3773_v61  ;;  %v1622_v4 = vrot.slane %v1620_v35, 1  ;;  %vm9067_vm5 = vmmov %vm9061_vm6 }
 0x1c8   : > { %4761 = vmatmul.mubr.bf16.gmra.mrb[12].mxu1 %v4292_v50  ;;  %3604 = vrot.lane.b32.xlu1 %v3572_v52, %s6284_s17  ;;  %v2709_v14 = vrot.slane %v8589_v55, 1  ;;  %v2685_v17 = vrot.slane %v8598_v24, 1  ;;  %v3050_v42 = vrot.slane %v3048_v44, 1  ;;  %v3053_v3 = vrot.slane %v3051_v31, 2  ;;  %vm9068_vm6 = vmmov %vm9065_vm4 }
 0x1c9   : > { %v8585_v58 = vpop.permute.xlu0 %2720  ;;  %v3910_v34 = vsel %vm1063_vm2, %v3901_v30, %v3909_v28  ;;  %v3058_v45 = vrot.slane %v3056_v6, 1  ;;  %v3061_v52 = vrot.slane %v3059_v27, 2  ;;  %v2914_v39 = vrot.slane %v2912_v7, 1  ;;  %v6226_v50 = vld [vmem:[%s6331_s19 + $0x68] ss:$0 sps:$4 sm:$0x33]  }
 0x1ca   : > { %v8592_v40 = vpop.permute.xlu1 %3088  ;;  %v2922_v53 = vrot.slane %v2920_v48, 1  ;;  %v2925_v29 = vrot.slane %v2923_v25, 2  ;;  %v6246_v30 = vld [vmem:[%s6331_s19 + $0xc4] sm:$0xf]  ;;  %v1623_v11 = vsel %vm661_vm0, %v1618_v51, %v1622_v4  ;;  %v8644_v28 = vld [vmem:[%s6331_s19 + $0xdc] sm:$0xf]  ;;  %v5445_v16 = vcombine.low %v5157_v8, %v6247_v56 }
 0x1cb   : > { %3588 = vrot.lane.b32.xlu0 %v3548_v62, %s6284_s17  ;;  %v2917_v62 = vrot.slane %v2915_v26, 2  ;;  %v5453_v36 = vcombine.low %v5165_v38, %v6246_v30  ;;  %v2711_v18 = vsel %vm934_vm1, %v2709_v14, %v2710_v23  ;;  %v3062_v55 = vor.u32 %v3061_v52, %v3058_v45  ;;  %v8669_v14 = vld [vmem:[%s6331_s19 + $0xe0] ss:$0 sps:$4 sm:$0x11]   ;;  %v5212_v56 = vld [vmem:[%s6331_s19 + $0xcc] sm:$0xf] }
 0x1cc   : > { %2612 = vrot.lane.b32.xlu1 %v2571_v13, %s6285_s26  ;;  %v3054_v13 = vor.u32 %v3053_v3, %v3050_v42  ;;  %v2687_v24 = vsel %vm934_vm1, %v2685_v17, %v2686_v1  ;;  %v2926_v2 = vor.u32 %v2925_v29, %v2922_v53  ;;  %v2192_v61 = vshrl.u32 %v6225_v9, 16 }
 0x1cd   : > { %v8614_v12 = vpop.permute.xlu0 %3072  ;;  %v2918_v20 = vor.u32 %v2917_v62, %v2914_v39  ;;  %v2184_v47 = vshrl.u32 %v5453_v36, 16  ;;  %v2187_v49 = vshll.u32 %v5453_v36, 16  ;;  %v2195_v35 = vshll.u32 %v6225_v9, 16  ;;  %v8677_v62 = vld [vmem:[%s6331_s19 + $0x80] ss:$0 sps:$4 sm:$0x11]  }
 0x1ce   : > { %v8618_v57 = vpop.permute.xlu1 %1872  ;;  %v2048_v44 = vshrl.u32 %v5445_v16, 16  ;;  %v2051_v31 = vshll.u32 %v5445_v16, 16  ;;  %v2056_v6 = vshrl.u32 %v6226_v50, 16  ;;  %v2059_v27 = vshll.u32 %v6226_v50, 16  ;;  %v5325_v9 = vld [vmem:[%s6331_s19 + $0xd8] sm:$0xe] }
 0x1cf   : > { %2596 = vrot.lane.b32.xlu0 %v2475_v0, %s6285_s26  ;;  %v5276_v0 = vld [vmem:[%s6331_s19 + $0x78] sm:$0xf]  ;;  %v3063_v26 = vsel %vm1063_vm2, %v3054_v13, %v3062_v55  ;;  %v1845_v48 = vrot.slane %v5453_v36, 1  ;;  %v1846_v25 = vrot.slane %v8550_v59, 1  ;;  %v2927_v23 = vsel %vm1063_vm2, %v2918_v20, %v2926_v2 }
 0x1d0   : > { %3956 = vrot.lane.b32.xlu1 %v3910_v34, %s6286_s28  ;;  %v5549_v34 = vcombine.low %v5292_v5, %v8644_v28  ;;  %v1821_v1 = vrot.slane %v5445_v16, 1  ;;  %v2186_v4 = vrot.slane %v2184_v47, 1  ;;  %v2189_v17 = vrot.slane %v2187_v49, 2  ;;  %v5317_v50 = vld [vmem:[%s6331_s19 + $0x78] sm:$0xe] }
 0x1d1   : > { %v8631_v33 = vpop.permute.xlu0 %1856  ;;  %v2194_v38 = vrot.slane %v2192_v61, 1  ;;  %v2197_v59 = vrot.slane %v2195_v35, 2  ;;  %v2050_v3 = vrot.slane %v2048_v44, 1  ;;  %v2053_v45 = vrot.slane %v2051_v31, 2  ;;  %v5196_v49 = vld [vmem:[%s6331_s19 + $0x6c] sm:$0xf] }
 0x1d2   : > { %v8634_v22 = vpop.permute.xlu1 %3200  ;;  %v3439_v42 = vshll.u32 %v5549_v34, 16  ;;  %v2058_v52 = vrot.slane %v2056_v6, 1  ;;  %v2061_v8 = vrot.slane %v2059_v27, 2  ;;  %v3437_v36 = vshrl.u32 %v5549_v34, 16  ;;  %v9062_v27 = vld [vmem:[#allocation10_spill] sm:$0xff] }
 0x1d3   : > { %3940 = vrot.lane.b32.xlu0 %v3774_v15, %s6286_s28  ;;  %v1822_v15 = vrot.slane %v8582_v63, 1  ;;  %v1847_v63 = vsel %vm934_vm1, %v1845_v48, %v1846_v25  ;;  %v3444_v5 = vshll.u32 %v8669_v14, 16  ;;  %v2190_v16 = vor.u32 %v2189_v17, %v2186_v4 }
 0x1d4   : > { %1750 = vrot.lane.b32.xlu1 %v1719_v54, %s6276_s24  ;;  %v8662_v54 = vcombine.low %v5276_v0, %v5277_v41  ;;  %v2054_v13 = vor.u32 %v2053_v45, %v2050_v3  ;;  %v2062_v55 = vor.u32 %v2061_v8, %v2058_v52  ;;  %v8688_v20 = vcombine.low %v5325_v9, %v8644_v28 }
 0x1d5   : > { %v8647_v43 = vpop.permute.xlu0 %3184  ;;  %v1823_v30 = vsel %vm934_vm1, %v1821_v1, %v1822_v15  ;;  %v3348_v47 = vshll.u32 %v8677_v62, 16  ;;  %v8693_v35 = vcombine.low %v5317_v50, %v5277_v41  ;;  %v8696_v44 = vcombine.low %v5212_v56, %v8566_v46  ;;  %v9064_v46 = vld [vmem:[#allocation28_spill] sm:$0xff]  ;;  %v6232_v56 = vld [vmem:[%s6331_s19 + $0x80] ss:$0 sps:$4 sm:$0x33]  }
 0x1d6   : > { %v8650_v10 = vpop.permute.xlu1 %2224  ;;  %v3343_v53 = vshll.u32 %v8662_v54, 16  ;;  %v3341_v2 = vshrl.u32 %v8662_v54, 16  ;;  %v3446_v6 = vrot.slane %v3444_v5, 1  ;;  %v2063_v25 = vsel %vm1063_vm2, %v2054_v13, %v2062_v55 }
 0x1d7   : > { %1734 = vrot.lane.b32.xlu0 %v1623_v11, %s6276_s24  ;;  %v3441_v11 = vrot.slane %v3439_v42, 1  ;;  %v8706_v41 = vcombine.low %v5196_v49, %v8577_v32  ;;  %v3350_v4 = vrot.slane %v3348_v47, 1  ;;  %v3573_v17 = vrot.slane %v8688_v20, 1 }
 0x1d8   : > { %2742 = vrot.lane.b32.xlu1 %v2711_v18, %s6277_s29  ;;  %v2198_v18 = vor.u32 %v2197_v59, %v2194_v38  ;;  %v3345_v0 = vrot.slane %v3343_v53, 1  ;;  %v3574_v59 = vrot.slane %v8669_v14, 1  ;;  %v3549_v42 = vrot.slane %v8693_v35, 1 }
 0x1d9   : > { %v8658_v7 = vpop.permute.xlu0 %2208  ;;  %v3442_v31 = vor.u32 %v3441_v11, %v3437_v36  ;;  %v2575_v32 = vshll.u32 %v8696_v44, 16  ;;  %v3550_v45 = vrot.slane %v8677_v62, 1  ;;  %v2573_v8 = vshrl.u32 %v8696_v44, 16 }
 0x1da   : > { %v8664_v51 = vpop.permute.xlu1 %3472  ;;  %v2199_v48 = vsel %vm1063_vm2, %v2190_v16, %v2198_v18  ;;  %v3346_v15 = vor.u32 %v3345_v0, %v3341_v2  ;;  %v2479_v11 = vshll.u32 %v8706_v41, 16  ;;  %v3912_v5 = vshrl.u32 %v8688_v20, 16 }
 0x1db   : > { %2726 = vrot.lane.b32.xlu0 %v2687_v24, %s6277_s29  ;;  %v2577_v50 = vrot.slane %v2575_v32, 1  ;;  %v3915_v13 = vshll.u32 %v8688_v20, 16  ;;  %v3575_v0 = vsel %vm934_vm1, %v3573_v17, %v3574_v59  ;;  %v2477_v49 = vshrl.u32 %v8706_v41, 16  ;;  %s5665_s29 = sshll.u32 %s9100_s12, 7 }
 0x1dc   : > { %3094 = vrot.lane.b32.xlu1 %v3063_v26, %s6278_s5  ;;  %v9063_v26 = vld [vmem:[#allocation22_spill] sm:$0xff]  ;;  %v3351_v53 = vsel %vm661_vm0, %v3346_v15, %v3350_v4  ;;  %v2484_v20 = vshll.u32 %v8609_v19, 16  ;;  %v3551_v19 = vsel %vm934_vm1, %v3549_v42, %v3550_v45 }
 0x1dd   : > { %v8673_v39 = vpop.permute.xlu0 %3456  ;;  %v4102_v28 = vsel %vm4092_vm7, %v9063_v26, %v9062_v27  ;;  %v3779_v27 = vshll.u32 %v8693_v35, 16  ;;  %v3784_v26 = vshrl.u32 %v6232_v56, 16 }
 0x1de   : > { %v2337_v29 = vpop.permute.xlu1 %2336  ;;  %v2486_v15 = vrot.slane %v2484_v20, 1 }
 0x1df   : > { %3078 = vrot.lane.b32.xlu0 %v2927_v23, %s6278_s5  ;;  %v4118_v23 = vsel %vm4092_vm7, %v9064_v46, %v8542_v60  ;;  %v4332_v60 = vsel %vm4306_vm9, %v8562_v37, %v8592_v40  ;;  %v2580_v40 = vshll.u32 %v8595_v21, 16  ;;  %v3917_v46 = vrot.slane %v3915_v13, 2 }
 0x1e0   : > { %1878 = vrot.lane.b32.xlu1 %v1847_v63, %s6279_s10  ;;  %v4151_v38 = vsel %vm4125_vm8, %v4118_v23, %v8618_v57  ;;  %v3447_v57 = vsel %vm661_vm0, %v3442_v31, %v3446_v6  ;;  %v4365_v14 = vsel %vm4339_vm11, %v4332_v60, %v8634_v22  ;;  %v6231_v22 = vld [vmem:[%s6331_s19 + $0xe0] ss:$0 sps:$4 sm:$0x33]   ;;  %v2481_v31 = vrot.slane %v2479_v11, 1 }
 0x1e1   : > { %v2321_v24 = vpop.permute.xlu0 %2320  ;;  %v4184_v3 = vsel %vm4158_vm10, %v4151_v38, %v8650_v10  ;;  %v4135_v10 = vsel %vm4125_vm8, %v4102_v28, %v8631_v33  ;;  %v3920_v55 = vshrl.u32 %v6231_v22, 16  ;;  %v2582_v47 = vrot.slane %v2580_v40, 1 }
 0x1e2   : > { %v3601_v61 = vpop.permute.xlu1 %3600  ;;  %v4217_v52 = vsel %vm4191_vm12, %v4184_v3, %v2337_v29  ;;  %v4316_v29 = vsel %vm4306_vm9, %v8585_v58, %v8614_v12  ;;  %v4168_v21 = vsel %vm4158_vm10, %v4135_v10, %v8658_v7  ;;  %v3776_v6 = vshrl.u32 %v8693_v35, 16 }
 0x1e3   : > { %1862 = vrot.lane.b32.xlu0 %v1823_v30, %s6279_s10  ;;  %v4201_v30 = vsel %vm4191_vm12, %v4168_v21, %v2321_v24  ;;  %v3787_v28 = vshll.u32 %v6232_v56, 16  ;;  %v3922_v23 = vrot.slane %v3920_v55, 1  ;;  %v3781_v17 = vrot.slane %v3779_v27, 2 }
 0x1e4   : > { %3206 = vrot.lane.b32.xlu1 %v5549_v34, %s6280_s20  ;;  %v3778_v4 = vrot.slane %v3776_v6, 1  ;;  %v3786_v38 = vrot.slane %v3784_v26, 1 }
 0x1e5   : > { %v3585_v1 = vpop.permute.xlu0 %3584 }
 0x1e6   : > { %v2609_v34 = vpop.permute.xlu1 %2608 }
 0x1e7   : > { %3190 = vrot.lane.b32.xlu0 %v8662_v54, %s6280_s20  ;;  %v4398_v54 = vsel %vm4372_vm13, %v4365_v14, %v8664_v51  ;;  %v4250_v63 = vsel %vm4224_vm14, %v4217_v52, %v2609_v34  ;;  %v4349_v51 = vsel %vm4339_vm11, %v4316_v29, %v8647_v43  ;;  %v3789_v34 = vrot.slane %v3787_v28, 2  ;;  %v8818_v28 = vld [vmem:[%s8945_s2] ss:$0 sm:$0xff]  ;;  %s8831_s20 = scalar_lea.vmem %s8946_s3, %s5665_s29 }
 0x1e8   : > { %2230 = vrot.lane.b32.xlu1 %v2199_v48, %s6281_s21  ;;  %v4431_v9 = vsel %vm4405_vm15, %v4398_v54, %v3601_v61  ;;  %v4382_v12 = vsel %vm4372_vm13, %v4349_v51, %v8673_v39  ;;  %v4295_v43 = vsel %vm9067_vm5, %v4250_v63, %v8562_v37  ;;  %v3923_v39 = vshll.u32 %v6231_v22, 16 }
 0x1e9   : > { %v2593_v62 = vpop.permute.xlu0 %2592  ;;  %v4415_v16 = vsel %vm4405_vm15, %v4382_v12, %v3585_v1  ;;  %v2578_v61 = vor.u32 %v2577_v50, %v2573_v8  ;;  %v3790_v42 = vor.u32 %v3789_v34, %v3786_v38 }
 0x1ea   : > { %v3953_v33 = vpop.permute.xlu1 %3952  ;;  %v4234_v7 = vsel %vm4224_vm14, %v4201_v30, %v2593_v62  ;;  %v3925_v1 = vrot.slane %v3923_v39, 2 }
 0x1eb   : > { %2214 = vrot.lane.b32.xlu0 %v2063_v25, %s6281_s21  ;;  %v4464_v36 = vsel %vm9065_vm4, %v4431_v9, %v3953_v33  ;;  %vm9069_vm4 = vmmov %vm9066_vm3  ;;  %v3914_v25 = vrot.slane %v3912_v5, 1  ;;  %v2583_v32 = vsel %vm661_vm0, %v2578_v61, %v2582_v47  ;;  %v9071_v33 = vld [vmem:[#allocation27_spill] sm:$0xff] }
 0x1ec   : > { %3478 = vrot.lane.b32.xlu1 %v3447_v57, %s6282_s27  ;;  %5627 = vmatprep.mubr.msk.bf16.mxu1 %vm9066_vm3, %v4464_v36  ;;  %vm9070_vm3 = vmmov %vm9067_vm5  ;;  %v3926_v3 = vor.u32 %v3925_v1, %v3922_v23 }
 0x1ed   : > { %v3937_v18 = vpop.permute.xlu0 %3936  ;;  %4769 = vmatmul.mubr.bf16.gmra.mrb[16].mxu1 %v4295_v43  ;;  %v4271_v37 = vsel %vm9070_vm3, %v4234_v7, %v8585_v58  ;;  %v3918_v60 = vor.u32 %v3917_v46, %v3914_v25  ;;  %v9072_v7 = vld [vmem:[#allocation21_spill] sm:$0xff]  ;;  %vm9074_vm1 = vmmov %vm9069_vm4 }
 0x1ee   : > { %v4448_v24 = vsel %vm9068_vm6, %v4415_v16, %v3937_v18  ;;  %v1747_v2 = vpop.permute.xlu1 %1746 }
 0x1ef   : > { %3462 = vrot.lane.b32.xlu0 %v3351_v53, %s6282_s27  ;;  %5619 = vmatprep.mubr.msk.bf16.mxu0 %vm9069_vm4, %v4448_v24  ;;  %v3927_v14 = vsel %vm1063_vm2, %v3918_v60, %v3926_v3  ;;  %v4120_v50 = vsel %vm4092_vm7, %v9071_v33, %v1747_v2 }
 0x1f0   : > { %4705 = vmatmul.mubr.bf16.gmra.mrb[16].mxu0 %v4271_v37  ;;  %2342 = vrot.lane.b32.xlu1 %v8696_v44, %s6283_s7  ;;  %v2482_v44 = vor.u32 %v2481_v31, %v2477_v49 }
 0x1f1   : > { %v1731_v48 = vpop.permute.xlu0 %1730 }
 0x1f2   : > { %v2739_v58 = vpop.permute.xlu1 %2738  ;;  %v2487_v35 = vsel %vm661_vm0, %v2482_v44, %v2486_v15  ;;  %v4104_v43 = vsel %vm4092_vm7, %v9072_v7, %v1731_v48  ;;  %vm9073_vm0 = vmmov %vm9068_vm6 }
 0x1f3   : > { %2326 = vrot.lane.b32.xlu0 %v8706_v41, %s6283_s7  ;;  %v3782_v41 = vor.u32 %v3781_v17, %v3778_v4  ;;  %vm9076_vm5 = vmmov %vm9073_vm0 }
 0x1f4   : > { %3606 = vrot.lane.b32.xlu1 %v3575_v0, %s6284_s17  ;;  %vm9077_vm6 = vmmov %vm9074_vm1 }
 0x1f5   : > { %v8780_v59 = vpop.permute.xlu0 %2722  ;;  %v3791_v8 = vsel %vm1063_vm2, %v3782_v41, %v3790_v42  ;;  %vm9075_vm2 = vmmov %vm9070_vm3 }
 0x1f6   : > { %v3091_v57 = vpop.permute.xlu1 %3090  ;;  %vm9078_vm4 = vmmov %vm9075_vm2 }
 0x1f7   : > { %3590 = vrot.lane.b32.xlu0 %v3551_v19, %s6284_s17  ;;  %v4334_v11 = vsel %vm4306_vm9, %v2739_v58, %v3091_v57  ;;  %vm9081_vm3 = vmmov %vm9073_vm0 }
 0x1f8   : > { %2614 = vrot.lane.b32.xlu1 %v2583_v32, %s6285_s26 }
 0x1f9   : > { %v3075_v45 = vpop.permute.xlu0 %3074 }
 0x1fa   : > { %v1875_v52 = vpop.permute.xlu1 %1874  ;;  %v4318_v39 = vsel %vm4306_vm9, %v8780_v59, %v3075_v45 }
 0x1fb   : > { %2598 = vrot.lane.b32.xlu0 %v2487_v35, %s6285_s26  ;;  %v4153_v30 = vsel %vm4125_vm8, %v4120_v50, %v1875_v52 }
 0x1fc   : > { %3958 = vrot.lane.b32.xlu1 %v3927_v14, %s6286_s28 }
 0x1fd   : > { %v1859_v40 = vpop.permute.xlu0 %1858 }
 0x1fe   : > { %v3203_v10 = vpop.permute.xlu1 %3202  ;;  %v4137_v16 = vsel %vm4125_vm8, %v4104_v43, %v1859_v40 }
 0x1ff   : > { %3942 = vrot.lane.b32.xlu0 %v3791_v8, %s6286_s28  ;;  %v4367_v5 = vsel %vm4339_vm11, %v4334_v11, %v3203_v10  ;;  %v9079_v11 = vld [vmem:[#allocation30_spill] sm:$0xff] }
 0x201   : > { %v3187_v54 = vpop.permute.xlu0 %3186 }
 0x202   : > { %v2227_v63 = vpop.permute.xlu1 %2226  ;;  %v4351_v47 = vsel %vm4339_vm11, %v4318_v39, %v3187_v54 }
 0x203   : > { %v4186_v12 = vsel %vm4158_vm10, %v4153_v30, %v2227_v63 }
 0x205   : > { %v2211_v62 = vpop.permute.xlu0 %2210 }
 0x206   : > { %v3475_v53 = vpop.permute.xlu1 %3474  ;;  %v4170_v24 = vsel %vm4158_vm10, %v4137_v16, %v2211_v62 }
 0x207   : > { %v4400_v18 = vsel %vm4372_vm13, %v4367_v5, %v3475_v53 }
 0x209   : > { %v3459_v22 = vpop.permute.xlu0 %3458 }
 0x20a   : > { %v2339_v29 = vpop.permute.xlu1 %2338  ;;  %v4384_v61 = vsel %vm4372_vm13, %v4351_v47, %v3459_v22 }
 0x20b   : > { %v4219_v56 = vsel %vm4191_vm12, %v4186_v12, %v2339_v29 }
 0x20d   : > { %v2323_v21 = vpop.permute.xlu0 %2322 }
 0x20e   : > { %v3603_v9 = vpop.permute.xlu1 %3602  ;;  %v4203_v49 = vsel %vm4191_vm12, %v4170_v24, %v2323_v21 }
 0x20f   : > { %v4433_v2 = vsel %vm4405_vm15, %v4400_v18, %v3603_v9  ;;  %v9080_v18 = vld [vmem:[#allocation24_spill] sm:$0xff] }
 0x211   : > { %v3587_v51 = vpop.permute.xlu0 %3586 }
 0x212   : > { %v2611_v36 = vpop.permute.xlu1 %2610  ;;  %v4417_v27 = vsel %vm4405_vm15, %v4384_v61, %v3587_v51 }
 0x213   : > { %v4252_v13 = vsel %vm4224_vm14, %v4219_v56, %v2611_v36 }
 0x214   : > { %v4298_v6 = vsel %vm9075_vm2, %v4252_v13, %v2739_v58 }
 0x215   : > { %v2595_v55 = vpop.permute.xlu0 %2594 }
 0x216   : > { %v3955_v0 = vpop.permute.xlu1 %3954  ;;  %v4236_v31 = vsel %vm4224_vm14, %v4203_v49, %v2595_v55 }
 0x217   : > { %v4466_v37 = vsel %vm9073_vm0, %v4433_v2, %v3955_v0  ;;  %v4274_v58 = vsel %vm9078_vm4, %v4236_v31, %v8780_v59  ;;  %vm9082_vm0 = vmmov %vm9074_vm1 }
 0x218   : > { %v5857_v20 = vpop.f32.mrb[0].mxu1  ;;  %5628 = vmatprep.mubr.msk.bf16.mxu1 %vm9074_vm1, %v4466_v37  ;;  %vm9083_vm1 = vmmov %vm9075_vm2 }
 0x219   : > { %v3939_v26 = vpop.permute.xlu0 %3938  ;;  %v5858_v48 = vpop.f32.mrb[1].mxu1  ;;  %4777 = vmatmul.mubr.bf16.gmra.mrb[20].mxu1 %v4298_v6  ;;  %vm9084_vm2 = vmmov %vm9081_vm3 }
 0x21a   : > { %v4450_v25 = vsel %vm9076_vm5, %v4417_v27, %v3939_v26  ;;  %v5859_v46 = vadd.f32 %v5858_v48, %v5857_v20  ;;  %v1749_v23 = vpop.permute.xlu1 %1748  ;;  %v5860_v1 = vpop.f32.mrb[2].mxu1  ;;  %vm9085_vm5 = vmmov %vm9082_vm0 }
 0x21b   : > { %v5809_v19 = vpop.f32.mrb[0].mxu0  ;;  %5620 = vmatprep.mubr.msk.bf16.mxu0 %vm9077_vm6, %v4450_v25  ;;  %v5861_v44 = vpop.f32.mrb[3].mxu1  ;;  %v4122_v12 = vsel %vm4092_vm7, %v9079_v11, %v1749_v23  ;;  %vm9086_vm6 = vmmov %vm9083_vm1 }
 0x21c   : > { %v5810_v15 = vpop.f32.mrb[1].mxu0  ;;  %4713 = vmatmul.mubr.bf16.gmra.mrb[20].mxu0 %v4274_v58  ;;  %v4739_v4 = vadd.f32 %v5859_v46, %v8818_v28  ;;  %v5862_v17 = vadd.f32 %v5861_v44, %v5860_v1 }
 0x21d   : > { %v5811_v38 = vadd.f32 %v5810_v15, %v5809_v19  ;;  %v5812_v34 = vpop.f32.mrb[2].mxu0  ;;  %v1733_v32 = vpop.permute.xlu0 %1732 }
 0x21e   : > { %v5813_v60 = vpop.f32.mrb[3].mxu0  ;;  %v4742_v3 = vadd.f32 %v5862_v17, %v8818_v28  ;;  %v2741_v57 = vpop.permute.xlu1 %2740  ;;  %v4817_v42 = vmax.f32 %v4739_v4, 0.0  ;;  %v4106_v13 = vsel %vm4092_vm7, %v9080_v18, %v1733_v32 }
 0x21f   : > { %v4675_v35 = vadd.f32 %v5811_v38, %v8818_v28  ;;  %v5814_v41 = vadd.f32 %v5813_v60, %v5812_v34 }
 0x220   : > { %v4818_v45 = vmax.f32 %v4742_v3, 0.0 }
 0x221   : > { %v4678_v59 = vadd.f32 %v5814_v41, %v8818_v28  ;;  %v2725_v14 = vpop.permute.xlu0 %2724  ;;  %v4801_v40 = vmax.f32 %v4675_v35, 0.0 }
 0x222   : > { %v5741_v52 = vpack.c.bf16 %v4818_v45, %v4817_v42  ;;  %v3093_v8 = vpop.permute.xlu1 %3092 }
 0x223   : > { %v4802_v10 = vmax.f32 %v4678_v59, 0.0  ;;  %v4336_v56 = vsel %vm4306_vm9, %v2741_v57, %v3093_v8 }
 0x224   : > { %5785 = vst [vmem:[%s8831_s20 + $0x40] sm:$0xff] %v5741_v52  }
 0x225   : > { %v5701_v54 = vpack.c.bf16 %v4802_v10, %v4801_v40  ;;  %v3077_v63 = vpop.permute.xlu0 %3076 }
 0x226   : > { %v1877_v62 = vpop.permute.xlu1 %1876  ;;  %v4320_v2 = vsel %vm4306_vm9, %v2725_v14, %v3077_v63 }
 0x227   : > { %5702 = vst [vmem:[%s8831_s20] sm:$0xff] %v5701_v54   ;;  %v4155_v43 = vsel %vm4125_vm8, %v4122_v12, %v1877_v62 }
 0x229   : > { %v1861_v53 = vpop.permute.xlu0 %1860 }
 0x22a   : > { %v3205_v22 = vpop.permute.xlu1 %3204  ;;  %v4139_v0 = vsel %vm4125_vm8, %v4106_v13, %v1861_v53 }
 0x22b   : > { %v4369_v55 = vsel %vm4339_vm11, %v4336_v56, %v3205_v22  ;;  %v9087_v56 = vld [vmem:[#allocation29_spill] sm:$0xff] }
 0x22d   : > { %v3189_v29 = vpop.permute.xlu0 %3188 }
 0x22e   : > { %v2229_v21 = vpop.permute.xlu1 %2228  ;;  %v4353_v31 = vsel %vm4339_vm11, %v4320_v2, %v3189_v29  ;;  %v9088_v2 = vld [vmem:[#allocation23_spill] sm:$0xff] }
 0x22f   : > { %v4188_v16 = vsel %vm4158_vm10, %v4155_v43, %v2229_v21 }
 0x231   : > { %v2213_v9 = vpop.permute.xlu0 %2212 }
 0x232   : > { %v3477_v33 = vpop.permute.xlu1 %3476  ;;  %v4172_v20 = vsel %vm4158_vm10, %v4139_v0, %v2213_v9 }
 0x233   : > { %v4402_v47 = vsel %vm4372_vm13, %v4369_v55, %v3477_v33 }
 0x235   : > { %v3461_v50 = vpop.permute.xlu0 %3460 }
 0x236   : > { %v2341_v51 = vpop.permute.xlu1 %2340  ;;  %v4386_v25 = vsel %vm4372_vm13, %v4353_v31, %v3461_v50 }
 0x237   : > { %v4221_v39 = vsel %vm4191_vm12, %v4188_v16, %v2341_v51 }
 0x239   : > { %v2325_v30 = vpop.permute.xlu0 %2324 }
 0x23a   : > { %v3605_v36 = vpop.permute.xlu1 %3604  ;;  %v4205_v46 = vsel %vm4191_vm12, %v4172_v20, %v2325_v30 }
 0x23b   : > { %v4435_v6 = vsel %vm4405_vm15, %v4402_v47, %v3605_v36 }
 0x23d   : > { %v3589_v7 = vpop.permute.xlu0 %3588 }
 0x23e   : > { %v2613_v5 = vpop.permute.xlu1 %2612  ;;  %v4419_v4 = vsel %vm4405_vm15, %v4386_v25, %v3589_v7 }
 0x23f   : > { %v4254_v49 = vsel %vm4224_vm14, %v4221_v39, %v2613_v5 }
 0x240   : > { %v5815_v24 = vpop.f32.mrb[4].mxu0  ;;  %v4301_v15 = vsel %vm9083_vm1, %v4254_v49, %v2741_v57 }
 0x241   : > { %v2597_v37 = vpop.permute.xlu0 %2596  ;;  %v5816_v61 = vpop.f32.mrb[5].mxu0 }
 0x242   : > { %v5817_v27 = vadd.f32 %v5816_v61, %v5815_v24  ;;  %v3957_v26 = vpop.permute.xlu1 %3956  ;;  %v5818_v48 = vpop.f32.mrb[6].mxu0  ;;  %v4238_v19 = vsel %vm4224_vm14, %v4205_v46, %v2597_v37 }
 0x243   : > { %v4468_v23 = vsel %vm9081_vm3, %v4435_v6, %v3957_v26  ;;  %v5819_v1 = vpop.f32.mrb[7].mxu0  ;;  %v4277_v3 = vsel %vm9086_vm6, %v4238_v19, %v2725_v14 }
 0x244   : > { %v4683_v58 = vadd.f32 %v5817_v27, %v8818_v28  ;;  %v5820_v44 = vadd.f32 %v5819_v1, %v5818_v48  ;;  %5629 = vmatprep.mubr.msk.bf16.mxu1 %vm9082_vm0, %v4468_v23 }
 0x245   : > { %v3941_v17 = vpop.permute.xlu0 %3940  ;;  %4785 = vmatmul.mubr.bf16.gmra.mrb[24].mxu1 %v4301_v15 }
 0x246   : > { %v4452_v38 = vsel %vm9084_vm2, %v4419_v4, %v3941_v17  ;;  %v4686_v34 = vadd.f32 %v5820_v44, %v8818_v28  ;;  %v1751_v32 = vpop.permute.xlu1 %1750  ;;  %v4803_v35 = vmax.f32 %v4683_v58, 0.0 }
 0x247   : > { %5621 = vmatprep.mubr.msk.bf16.mxu0 %vm9085_vm5, %v4452_v38  ;;  %v5863_v60 = vpop.f32.mrb[4].mxu1  ;;  %v4124_v16 = vsel %vm4092_vm7, %v9087_v56, %v1751_v32 }
 0x248   : > { %v4804_v41 = vmax.f32 %v4686_v34, 0.0  ;;  %4721 = vmatmul.mubr.bf16.gmra.mrb[24].mxu0 %v4277_v3  ;;  %v5864_v42 = vpop.f32.mrb[5].mxu1 }
 0x249   : > { %v5865_v57 = vadd.f32 %v5864_v42, %v5863_v60  ;;  %v5866_v45 = vpop.f32.mrb[6].mxu1  ;;  %v1735_v59 = vpop.permute.xlu0 %1734 }
 0x24a   : > { %v5706_v52 = vpack.c.bf16 %v4804_v41, %v4803_v35  ;;  %v5867_v8 = vpop.f32.mrb[7].mxu1  ;;  %v2743_v40 = vpop.permute.xlu1 %2742  ;;  %v4108_v0 = vsel %vm4092_vm7, %v9088_v2, %v1735_v59  ;;  %vm9089_vm7 = vmmov %vm9084_vm2 }
 0x24b   : > { %v4747_v10 = vadd.f32 %v5865_v57, %v8818_v28  ;;  %v5868_v54 = vadd.f32 %v5867_v8, %v5866_v45 }
 0x24c   : > { %5778 = vst [vmem:[%s8831_s20 + $0x8] sm:$0xff] %v5706_v52  }
 0x24d   : > { %v4750_v63 = vadd.f32 %v5868_v54, %v8818_v28  ;;  %v8867_v62 = vpop.permute.xlu0 %2726  ;;  %v4819_v53 = vmax.f32 %v4747_v10, 0.0 }
 0x24e   : > { %v3095_v14 = vpop.permute.xlu1 %3094 }
 0x24f   : > { %v4820_v22 = vmax.f32 %v4750_v63, 0.0  ;;  %v4338_v39 = vsel %vm4306_vm9, %v2743_v40, %v3095_v14 }
 0x251   : > { %v5746_v29 = vpack.c.bf16 %v4820_v22, %v4819_v53  ;;  %v3079_v21 = vpop.permute.xlu0 %3078 }
 0x252   : > { %v1879_v9 = vpop.permute.xlu1 %1878  ;;  %v4322_v61 = vsel %vm4306_vm9, %v8867_v62, %v3079_v21  ;;  %vm9091_vm9 = vmmov %vm9083_vm1 }
 0x253   : > { %5786 = vst [vmem:[%s8831_s20 + $0x48] sm:$0xff] %v5746_v29   ;;  %v4157_v13 = vsel %vm4125_vm8, %v4124_v16, %v1879_v9 }
 0x255   : > { %v1863_v33 = vpop.permute.xlu0 %1862 }
 0x256   : > { %v3207_v50 = vpop.permute.xlu1 %3206  ;;  %v4141_v31 = vsel %vm4125_vm8, %v4108_v0, %v1863_v33  ;;  %vm9090_vm8 = vmmov %vm9082_vm0 }
 0x257   : > { %v4371_v47 = vsel %vm4339_vm11, %v4338_v39, %v3207_v50 }
 0x259   : > { %v3191_v51 = vpop.permute.xlu0 %3190 }
 0x25a   : > { %v2231_v30 = vpop.permute.xlu1 %2230  ;;  %v4355_v48 = vsel %vm4339_vm11, %v4322_v61, %v3191_v51  ;;  %vm9093_vm11 = vmmov %vm9082_vm0 }
 0x25b   : > { %v4190_v24 = vsel %vm4158_vm10, %v4157_v13, %v2231_v30 }
 0x25d   : > { %v2215_v36 = vpop.permute.xlu0 %2214 }
 0x25e   : > { %v3479_v11 = vpop.permute.xlu1 %3478  ;;  %v4174_v25 = vsel %vm4158_vm10, %v4141_v31, %v2215_v36  ;;  %vm9092_vm10 = vmmov %vm9084_vm2 }
 0x25f   : > { %v4404_v20 = vsel %vm4372_vm13, %v4371_v47, %v3479_v11 }
 0x261   : > { %v3463_v12 = vpop.permute.xlu0 %3462 }
 0x262   : > { %v2343_v7 = vpop.permute.xlu1 %2342  ;;  %v4388_v58 = vsel %vm4372_vm13, %v4355_v48, %v3463_v12 }
 0x263   : > { %v4223_v49 = vsel %vm4191_vm12, %v4190_v24, %v2343_v7 }
 0x265   : > { %v2327_v43 = vpop.permute.xlu0 %2326 }
 0x266   : > { %v3607_v5 = vpop.permute.xlu1 %3606  ;;  %v4207_v44 = vsel %vm4191_vm12, %v4174_v25, %v2327_v43  ;;  %vm9094_vm12 = vmmov %vm9083_vm1 }
 0x267   : > { %v4437_v46 = vsel %vm4405_vm15, %v4404_v20, %v3607_v5 }
 0x269   : > { %v3591_v18 = vpop.permute.xlu0 %3590 }
 0x26a   : > { %v2615_v55 = vpop.permute.xlu1 %2614  ;;  %v4421_v35 = vsel %vm4405_vm15, %v4388_v58, %v3591_v18 }
 0x26b   : > { %v4256_v6 = vsel %vm4224_vm14, %v4223_v49, %v2615_v55 }
 0x26c   : > { %v5869_v37 = vpop.f32.mrb[8].mxu1  ;;  %v4304_v3 = vsel %vm9091_vm9, %v4256_v6, %v2743_v40 }
 0x26d   : > { %v2599_v27 = vpop.permute.xlu0 %2598  ;;  %v5870_v26 = vpop.f32.mrb[9].mxu1 }
 0x26e   : > { %v5871_v23 = vadd.f32 %v5870_v26, %v5869_v37  ;;  %v3959_v1 = vpop.permute.xlu1 %3958  ;;  %v5872_v19 = vpop.f32.mrb[10].mxu1  ;;  %v4240_v38 = vsel %vm4224_vm14, %v4207_v44, %v2599_v27 }
 0x26f   : > { %v5821_v15 = vpop.f32.mrb[8].mxu0  ;;  %v4470_v4 = vsel %vm9089_vm7, %v4437_v46, %v3959_v1  ;;  %v5873_v17 = vpop.f32.mrb[11].mxu1  ;;  %v4280_v40 = vsel %vm9094_vm12, %v4240_v38, %v8867_v62 }
 0x270   : > { %v5822_v34 = vpop.f32.mrb[9].mxu0  ;;  %v4755_v32 = vadd.f32 %v5871_v23, %v8818_v28  ;;  %v5874_v60 = vadd.f32 %v5873_v17, %v5872_v19  ;;  %5630 = vmatprep.mubr.msk.bf16.mxu1 %vm9090_vm8, %v4470_v4 }
 0x271   : > { %v5823_v41 = vadd.f32 %v5822_v34, %v5821_v15  ;;  %v5824_v42 = vpop.f32.mrb[10].mxu0  ;;  %v3943_v57 = vpop.permute.xlu0 %3942  ;;  %4793 = vmatmul.mubr.bf16.gmra.mrb[28].mxu1 %v4304_v3 }
 0x272   : > { %v4454_v45 = vsel %vm9092_vm10, %v4421_v35, %v3943_v57  ;;  %v5825_v59 = vpop.f32.mrb[11].mxu0  ;;  %v4758_v52 = vadd.f32 %v5874_v60, %v8818_v28  ;;  %v4821_v54 = vmax.f32 %v4755_v32, 0.0 }
 0x273   : > { %v4691_v8 = vadd.f32 %v5823_v41, %v8818_v28  ;;  %v5826_v10 = vadd.f32 %v5825_v59, %v5824_v42  ;;  %5622 = vmatprep.mubr.msk.bf16.mxu0 %vm9093_vm11, %v4454_v45 }
 0x274   : > { %v4822_v63 = vmax.f32 %v4758_v52, 0.0  ;;  %4729 = vmatmul.mubr.bf16.gmra.mrb[28].mxu0 %v4280_v40 }
 0x275   : > { %v4694_v14 = vadd.f32 %v5826_v10, %v8818_v28  ;;  %v4805_v22 = vmax.f32 %v4691_v8, 0.0 }
 0x276   : > { %v5751_v53 = vpack.c.bf16 %v4822_v63, %v4821_v54 }
 0x277   : > { %v4806_v29 = vmax.f32 %v4694_v14, 0.0 }
 0x278   : > { %5787 = vst [vmem:[%s8831_s20 + $0x50] sm:$0xff] %v5751_v53  }
 0x279   : > { %v5711_v21 = vpack.c.bf16 %v4806_v29, %v4805_v22 }
 0x27b   : > { %5779 = vst [vmem:[%s8831_s20 + $0x10] sm:$0xff] %v5711_v21  }
 0x294   : > { %v5827_v9 = vpop.f32.mrb[12].mxu0 }
 0x295   : > { %v5828_v33 = vpop.f32.mrb[13].mxu0 }
 0x296   : > { %v5829_v50 = vadd.f32 %v5828_v33, %v5827_v9  ;;  %v5830_v51 = vpop.f32.mrb[14].mxu0 }
 0x297   : > { %v5831_v30 = vpop.f32.mrb[15].mxu0 }
 0x298   : > { %v4699_v36 = vadd.f32 %v5829_v50, %v8818_v28  ;;  %v5832_v62 = vadd.f32 %v5831_v30, %v5830_v51 }
 0x29a   : > { %v4702_v11 = vadd.f32 %v5832_v62, %v8818_v28  ;;  %v4807_v7 = vmax.f32 %v4699_v36, 0.0 }
 0x29b   : > { %v5875_v12 = vpop.f32.mrb[12].mxu1 }
 0x29c   : > { %v4808_v43 = vmax.f32 %v4702_v11, 0.0  ;;  %v5876_v5 = vpop.f32.mrb[13].mxu1 }
 0x29d   : > { %v5877_v56 = vadd.f32 %v5876_v5, %v5875_v12  ;;  %v5878_v16 = vpop.f32.mrb[14].mxu1 }
 0x29e   : > { %v5716_v18 = vpack.c.bf16 %v4808_v43, %v4807_v7  ;;  %v5879_v13 = vpop.f32.mrb[15].mxu1 }
 0x29f   : > { %v4763_v55 = vadd.f32 %v5877_v56, %v8818_v28  ;;  %v5880_v39 = vadd.f32 %v5879_v13, %v5878_v16 }
 0x2a0   : > { %5780 = vst [vmem:[%s8831_s20 + $0x18] sm:$0xff] %v5716_v18  }
 0x2a1   : > { %v4766_v24 = vadd.f32 %v5880_v39, %v8818_v28  ;;  %v4823_v2 = vmax.f32 %v4763_v55, 0.0 }
 0x2a3   : > { %v4824_v0 = vmax.f32 %v4766_v24, 0.0 }
 0x2a5   : > { %v5756_v47 = vpack.c.bf16 %v4824_v0, %v4823_v2 }
 0x2a7   : > { %5788 = vst [vmem:[%s8831_s20 + $0x58] sm:$0xff] %v5756_v47  }
 0x2c0   : > { %v5881_v49 = vpop.f32.mrb[16].mxu1 }
 0x2c1   : > { %v5882_v37 = vpop.f32.mrb[17].mxu1 }
 0x2c2   : > { %v5883_v61 = vadd.f32 %v5882_v37, %v5881_v49  ;;  %v5884_v31 = vpop.f32.mrb[18].mxu1 }
 0x2c3   : > { %v5833_v20 = vpop.f32.mrb[16].mxu0  ;;  %v5885_v6 = vpop.f32.mrb[19].mxu1 }
 0x2c4   : > { %v5834_v27 = vpop.f32.mrb[17].mxu0  ;;  %v4771_v26 = vadd.f32 %v5883_v61, %v8818_v28  ;;  %v5886_v48 = vadd.f32 %v5885_v6, %v5884_v31 }
 0x2c5   : > { %v5835_v25 = vadd.f32 %v5834_v27, %v5833_v20  ;;  %v5836_v46 = vpop.f32.mrb[18].mxu0 }
 0x2c6   : > { %v5837_v23 = vpop.f32.mrb[19].mxu0  ;;  %v4774_v1 = vadd.f32 %v5886_v48, %v8818_v28  ;;  %v4825_v44 = vmax.f32 %v4771_v26, 0.0 }
 0x2c7   : > { %v4707_v19 = vadd.f32 %v5835_v25, %v8818_v28  ;;  %v5838_v58 = vadd.f32 %v5837_v23, %v5836_v46 }
 0x2c8   : > { %v4826_v15 = vmax.f32 %v4774_v1, 0.0 }
 0x2c9   : > { %v4710_v4 = vadd.f32 %v5838_v58, %v8818_v28  ;;  %v4809_v38 = vmax.f32 %v4707_v19, 0.0 }
 0x2ca   : > { %v5761_v17 = vpack.c.bf16 %v4826_v15, %v4825_v44 }
 0x2cb   : > { %v4810_v34 = vmax.f32 %v4710_v4, 0.0 }
 0x2cc   : > { %5789 = vst [vmem:[%s8831_s20 + $0x60] sm:$0xff] %v5761_v17  }
 0x2cd   : > { %v5721_v32 = vpack.c.bf16 %v4810_v34, %v4809_v38 }
 0x2cf   : > { %5781 = vst [vmem:[%s8831_s20 + $0x20] sm:$0xff] %v5721_v32  }
 0x2ec   : > { %v5887_v60 = vpop.f32.mrb[20].mxu1 }
 0x2ed   : > { %v5888_v3 = vpop.f32.mrb[21].mxu1 }
 0x2ee   : > { %v5889_v35 = vadd.f32 %v5888_v3, %v5887_v60  ;;  %v5890_v41 = vpop.f32.mrb[22].mxu1 }
 0x2ef   : > { %v5839_v42 = vpop.f32.mrb[20].mxu0  ;;  %v5891_v57 = vpop.f32.mrb[23].mxu1 }
 0x2f0   : > { %v5840_v45 = vpop.f32.mrb[21].mxu0  ;;  %v4779_v59 = vadd.f32 %v5889_v35, %v8818_v28  ;;  %v5892_v52 = vadd.f32 %v5891_v57, %v5890_v41 }
 0x2f1   : > { %v5841_v8 = vadd.f32 %v5840_v45, %v5839_v42  ;;  %v5842_v10 = vpop.f32.mrb[22].mxu0 }
 0x2f2   : > { %v5843_v40 = vpop.f32.mrb[23].mxu0  ;;  %v4782_v54 = vadd.f32 %v5892_v52, %v8818_v28  ;;  %v4827_v53 = vmax.f32 %v4779_v59, 0.0 }
 0x2f3   : > { %v4715_v63 = vadd.f32 %v5841_v8, %v8818_v28  ;;  %v5844_v14 = vadd.f32 %v5843_v40, %v5842_v10 }
 0x2f4   : > { %v4828_v22 = vmax.f32 %v4782_v54, 0.0 }
 0x2f5   : > { %v4718_v29 = vadd.f32 %v5844_v14, %v8818_v28  ;;  %v4811_v9 = vmax.f32 %v4715_v63, 0.0 }
 0x2f6   : > { %v5766_v21 = vpack.c.bf16 %v4828_v22, %v4827_v53 }
 0x2f7   : > { %v4812_v33 = vmax.f32 %v4718_v29, 0.0 }
 0x2f8   : > { %5790 = vst [vmem:[%s8831_s20 + $0x68] sm:$0xff] %v5766_v21  }
 0x2f9   : > { %v5726_v50 = vpack.c.bf16 %v4812_v33, %v4811_v9 }
 0x2fb   : > { %5782 = vst [vmem:[%s8831_s20 + $0x28] sm:$0xff] %v5726_v50  }
 0x318   : > { %v5893_v51 = vpop.f32.mrb[24].mxu1 }
 0x319   : > { %v5894_v30 = vpop.f32.mrb[25].mxu1 }
 0x31a   : > { %v5895_v36 = vadd.f32 %v5894_v30, %v5893_v51  ;;  %v5896_v62 = vpop.f32.mrb[26].mxu1 }
 0x31b   : > { %v5845_v11 = vpop.f32.mrb[24].mxu0  ;;  %v5897_v12 = vpop.f32.mrb[27].mxu1 }
 0x31c   : > { %v5846_v7 = vpop.f32.mrb[25].mxu0  ;;  %v4787_v43 = vadd.f32 %v5895_v36, %v8818_v28  ;;  %v5898_v5 = vadd.f32 %v5897_v12, %v5896_v62 }
 0x31d   : > { %v5847_v56 = vadd.f32 %v5846_v7, %v5845_v11  ;;  %v5848_v16 = vpop.f32.mrb[26].mxu0 }
 0x31e   : > { %v5849_v18 = vpop.f32.mrb[27].mxu0  ;;  %v4790_v13 = vadd.f32 %v5898_v5, %v8818_v28  ;;  %v4829_v24 = vmax.f32 %v4787_v43, 0.0 }
 0x31f   : > { %v4723_v55 = vadd.f32 %v5847_v56, %v8818_v28  ;;  %v5850_v39 = vadd.f32 %v5849_v18, %v5848_v16 }
 0x320   : > { %v4830_v2 = vmax.f32 %v4790_v13, 0.0 }
 0x321   : > { %v4726_v0 = vadd.f32 %v5850_v39, %v8818_v28  ;;  %v4813_v49 = vmax.f32 %v4723_v55, 0.0 }
 0x322   : > { %v5771_v47 = vpack.c.bf16 %v4830_v2, %v4829_v24 }
 0x323   : > { %v4814_v37 = vmax.f32 %v4726_v0, 0.0 }
 0x324   : > { %5791 = vst [vmem:[%s8831_s20 + $0x70] sm:$0xff] %v5771_v47  }
 0x325   : > { %v5731_v61 = vpack.c.bf16 %v4814_v37, %v4813_v49 }
 0x327   : > { %5783 = vst [vmem:[%s8831_s20 + $0x30] sm:$0xff] %v5731_v61  }
 0x344   : > { %v5899_v31 = vpop.f32.mrb[28].mxu1 }
 0x345   : > { %v5900_v20 = vpop.f32.mrb[29].mxu1 }
 0x346   : > { %v5901_v6 = vadd.f32 %v5900_v20, %v5899_v31  ;;  %v5902_v27 = vpop.f32.mrb[30].mxu1 }
 0x347   : > { %v5851_v26 = vpop.f32.mrb[28].mxu0  ;;  %v5903_v48 = vpop.f32.mrb[31].mxu1 }
 0x348   : > { %v5852_v25 = vpop.f32.mrb[29].mxu0  ;;  %v4795_v46 = vadd.f32 %v5901_v6, %v8818_v28  ;;  %v5904_v23 = vadd.f32 %v5903_v48, %v5902_v27 }
 0x349   : > { %v5853_v1 = vadd.f32 %v5852_v25, %v5851_v26  ;;  %v5854_v19 = vpop.f32.mrb[30].mxu0 }
 0x34a   : > { %v5855_v58 = vpop.f32.mrb[31].mxu0  ;;  %v4798_v44 = vadd.f32 %v5904_v23, %v8818_v28  ;;  %v4831_v17 = vmax.f32 %v4795_v46, 0.0 }
 0x34b   : > { %v4731_v15 = vadd.f32 %v5853_v1, %v8818_v28  ;;  %v5856_v4 = vadd.f32 %v5855_v58, %v5854_v19 }
 0x34c   : > { %v4832_v38 = vmax.f32 %v4798_v44, 0.0 }
 0x34d   : > { %v4734_v34 = vadd.f32 %v5856_v4, %v8818_v28  ;;  %v4815_v60 = vmax.f32 %v4731_v15, 0.0 }
 0x34e   : > { %v5776_v32 = vpack.c.bf16 %v4832_v38, %v4831_v17 }
 0x34f   : > { %v4816_v3 = vmax.f32 %v4734_v34, 0.0 }
 0x350   : > { %5792 = vst [vmem:[%s8831_s20 + $0x78] sm:$0xff] %v5776_v32  }
 0x351   : > { %v5736_v35 = vpack.c.bf16 %v4816_v3, %v4815_v60 }
 0x353   : > { %5784 = vst [vmem:[%s8831_s20 + $0x38] sm:$0xff] %v5736_v35  }
 0x354 PF: > { %s13_s14 = sadd.s32 1, %s6270_s14   ;;  %s9095_s12 = smov %s6266_s13 }
 0x355   : > { %p10_p5 = scmp.ge.s32.totalorder %s13_s14, 4   ;;  %s9096_s13 = smov %s9098_s15 }
 0x357   :  { %12 = sbr.rel (!%p10_p5) target bundleno = 2 (0x2), region = 66 }

</bundles_post_ra>
